<compile_context>
chip_gen: v7x
topology: tpu7x:2x2x1
jax: 0.10.0
libtpu: 0.0.40
codegen_flags: <defaults>
</compile_context>

<pallas_src>
import functools

import jax
import jax.numpy as jnp
import numpy as np
from jax.experimental import pallas as pl
from jax.experimental.pallas import tpu as pltpu


def _dot(a, b, precision):
    return jnp.dot(a, b, preferred_element_type=jnp.float32,
                   precision=precision)


def _spectrum_mix_kernel(flag_ref, w_ref, x1_ref, x2_ref,
                         fh2_ref, fhi_ref, gw_ref, gwi_ref, o_ref,
                         *, TP, H, W, precision):
    tile = pl.program_id(0)

    @pl.when(flag_ref[tile] == 0)
    def _identity():
        # every plane in this tile has mix weight 0 -> amplitude mix is a no-op
        o_ref[...] = x1_ref[...]

    @pl.when(flag_ref[tile] != 0)
    def _mix():
        dot = functools.partial(_dot, precision=precision)
        FH2 = fh2_ref[...]          # (H, 2H)   = [Ch | Sh]
        FHI = fhi_ref[...]          # (2H, 2H)  = [[Ch, Sh], [-Sh, Ch]]
        GW = gw_ref[...]            # (W, 2W)   = [Cw | Sw]
        GWI = gwi_ref[...]          # (2W, W)   = [[Cw], [-Sw]] / (H*W)
        w = w_ref[...]              # (TP, 1, 1) per-plane mix weights

        # ---- forward 2-D DFT of both images (2 fused matmuls) ----
        # right transform (contract W): all 2*TP planes stacked on sublanes
        xx = jnp.concatenate([x1_ref[...].reshape(TP * H, W),
                              x2_ref[...].reshape(TP * H, W)], axis=0)
        s1 = dot(xx, GW)                            # (2TP*H, 2W) = [xC | xS]
        # per-plane 2-D transpose so the H-contraction is also a right matmul
        t = jnp.concatenate(
            [s1[p * H:(p + 1) * H, :].T for p in range(2 * TP)], axis=0)
        s2 = dot(t, FH2).reshape(2 * TP, 2 * W, 2 * H)
        # transposed spectra, planes on the leading dim
        xr = s2[:, :W, :H] - s2[:, W:, H:]          # Re(F)^T   (2TP, W, H)
        xi = -(s2[:, W:, :H] + s2[:, :W, H:])       # Im(F)^T   (2TP, W, H)

        x1r, x2r = xr[:TP], xr[TP:]
        x1i, x2i = xi[:TP], xi[TP:]

        # amplitude mix (per-plane weight), keep img1's phase (angle(0) = 0)
        abs2 = jnp.sqrt(x2r * x2r + x2i * x2i)
        sq1 = x1r * x1r + x1i * x1i
        abs1 = jnp.sqrt(sq1)
        mixed = abs1 + w * (abs2 - abs1)
        safe = sq1 > 0.0
        scale = mixed * jax.lax.rsqrt(jnp.where(safe, sq1, 1.0))
        yr = jnp.where(safe, x1r * scale, mixed)
        yi = jnp.where(safe, x1i * scale, 0.0)

        # ---- inverse 2-D DFT, real part only (2 fused matmuls) ----
        # left transform (contract H), still in the transposed layout:
        # [yr^T | yi^T] @ [[Ch, Sh], [-Sh, Ch]] = [br^T | bi^T]
        s3 = dot(jnp.concatenate([yr, yi], axis=2).reshape(TP * W, 2 * H), FHI)
        # per-plane 2-D transpose back, split real / imag row blocks
        br, bi = [], []
        for p in range(TP):
            blk = s3[p * W:(p + 1) * W, :].T        # (2H, W) = [[br_p],[bi_p]]
            br.append(blk[:H, :])
            bi.append(blk[H:, :])
        bb = jnp.concatenate([jnp.concatenate(br, axis=0),
                              jnp.concatenate(bi, axis=0)], axis=1)  # (TP*H,2W)
        # right transform (contract W); 1/(H*W) is folded into GWI
        o_ref[...] = dot(bb, GWI).reshape(TP, H, W)


def _build_call(num_tiles, TP, H, W, precision):
    kernel = functools.partial(_spectrum_mix_kernel, TP=TP, H=H, W=W,
                               precision=precision)
    return pl.pallas_call(
        kernel,
        out_shape=jax.ShapeDtypeStruct((num_tiles * TP, H, W), jnp.float32),
        grid_spec=pltpu.PrefetchScalarGridSpec(
            num_scalar_prefetch=1,                   # per-tile skip flags, SMEM
            grid=(num_tiles,),
            in_specs=[
                pl.BlockSpec((TP, 1, 1), lambda i, flags: (i, 0, 0)),   # weights
                pl.BlockSpec((TP, H, W), lambda i, flags: (i, 0, 0)),   # img1
                pl.BlockSpec((TP, H, W), lambda i, flags: (i, 0, 0)),   # img2
                pl.BlockSpec((H, 2 * H), lambda i, flags: (0, 0)),      # [Ch|Sh]
                pl.BlockSpec((2 * H, 2 * H), lambda i, flags: (0, 0)),  # inv-H mat
                pl.BlockSpec((W, 2 * W), lambda i, flags: (0, 0)),      # [Cw|Sw]
                pl.BlockSpec((2 * W, W), lambda i, flags: (0, 0)),      # inv-W mat
            ],
            out_specs=pl.BlockSpec((TP, H, W), lambda i, flags: (i, 0, 0)),
        ),
        compiler_params=pltpu.CompilerParams(
            dimension_semantics=("parallel",)),      # tiles are independent
    )


def color_spectrum_mix(img1, img2, lam, *, ratio=1.0, planes_per_tile=8):
    """img1, img2: (B, C, H, W) float32. Returns (img21, None)."""
    assert img1.shape == img2.shape
    B, C, H, W = img1.shape
    assert H % 8 == 0 and W % 8 == 0, "kernel assumes H, W multiples of 8"
    h_crop = int(H * ratio ** 0.5)
    w_crop = int(W * ratio ** 0.5)
    h_start = H // 2 - h_crop // 2
    w_start = W // 2 - w_crop // 2

    # Crop mask over dims (0, 1) = (batch, channel), exactly as the torch code
    # slices the first two axes of a (B, C, H, W) tensor.
    b_idx = jnp.arange(B)
    c_idx = jnp.arange(C)
    in_b = (b_idx >= h_start) & (b_idx < h_start + h_crop)
    in_c = (c_idx >= w_start) & (c_idx < w_start + w_crop)
    mask = (in_b[:, None] & in_c[None, :]).reshape(B * C)          # (BC,) bool
    w_flat = mask.astype(jnp.float32) * jnp.asarray(lam, dtype=jnp.float32)

    BC = B * C
    TP = int(max(1, min(planes_per_tile, BC)))       # planes fused per tile
    num_tiles = -(-BC // TP)
    BC_pad = num_tiles * TP

    x1 = img1.reshape(BC, H, W).astype(jnp.float32)
    x2 = img2.reshape(BC, H, W).astype(jnp.float32)
    if BC_pad != BC:
        pad = BC_pad - BC
        x1 = jnp.pad(x1, ((0, pad), (0, 0), (0, 0)))
        x2 = jnp.pad(x2, ((0, pad), (0, 0), (0, 0)))
        w_flat = jnp.pad(w_flat, (0, pad))           # padded planes: weight 0

    w_tiles = w_flat.reshape(num_tiles, TP)
    flags = jnp.any(w_tiles != 0.0, axis=1).astype(jnp.int32)      # tile skip
    w_map = w_flat.reshape(BC_pad, 1, 1)

    # Fused real-arithmetic DFT basis matrices (host glue, deterministic).
    kh = np.arange(H)
    kw = np.arange(W)
    ang_h = 2.0 * np.pi * np.outer(kh, kh) / H
    ang_w = 2.0 * np.pi * np.outer(kw, kw) / W
    Ch, Sh = np.cos(ang_h), np.sin(ang_h)
    Cw, Sw = np.cos(ang_w), np.sin(ang_w)
    FH2 = jnp.asarray(np.concatenate([Ch, Sh], axis=1), jnp.float32)   # (H,2H)
    FHI = jnp.asarray(np.block([[Ch, Sh], [-Sh, Ch]]), jnp.float32)    # (2H,2H)
    GW = jnp.asarray(np.concatenate([Cw, Sw], axis=1), jnp.float32)    # (W,2W)
    GWI = jnp.asarray(np.concatenate([Cw, -Sw], axis=0) / (H * W),
                      jnp.float32)                                     # (2W,W)

    args = (flags, w_map, x1, x2, FH2, FHI, GW, GWI)
    try:
        # Precision.HIGH (bf16_3x): ~2x MXU throughput vs HIGHEST on this
        # matmul-bound kernel, still well within tolerance.
        out = _build_call(num_tiles, TP, H, W, jax.lax.Precision.HIGH)(*args)
    except Exception:
        # Fallback for Mosaic versions that only lower DEFAULT/HIGHEST.
        out = _build_call(num_tiles, TP, H, W, jax.lax.Precision.HIGHEST)(*args)

    if BC_pad != BC:
        out = out[:BC]
    return out.reshape(B, C, H, W), None


def _reference(img1, img2, lam, ratio=1.0):
    """Direct jnp.fft translation of the torch forward (for verification)."""
    B, C, H, W = img1.shape
    h_crop = int(H * ratio ** 0.5)
    w_crop = int(W * ratio ** 0.5)
    h_start = H // 2 - h_crop // 2
    w_start = W // 2 - w_crop // 2

    f1 = jnp.fft.fft2(img1, axes=(-2, -1))
    f2 = jnp.fft.fft2(img2, axes=(-2, -1))
    a1, p1 = jnp.abs(f1), jnp.angle(f1)
    a2 = jnp.abs(f2)
    a1 = jnp.fft.fftshift(a1, axes=(-2, -1))
    a2 = jnp.fft.fftshift(a2, axes=(-2, -1))
    a1_, a2_ = a1, a2
    # note: the slice indexes dims 0 and 1 (batch, channel), as in torch code
    a1 = a1.at[h_start:h_start + h_crop, w_start:w_start + w_crop].set(
        lam * a2_[h_start:h_start + h_crop, w_start:w_start + w_crop]
        + (1 - lam) * a1_[h_start:h_start + h_crop, w_start:w_start + w_crop])
    a1 = jnp.fft.ifftshift(a1, axes=(-2, -1))
    out = a1 * jnp.exp(1j * p1)
    out = jnp.real(jnp.fft.ifft2(out, axes=(-2, -1)))
    return out


if __name__ == "__main__":
    key = jax.random.PRNGKey(0)
    k1, k2, k3 = jax.random.split(key, 3)

    B, C, H, W = 2, 4, 16, 16
    img1 = jax.random.normal(k1, (B, C, H, W), dtype=jnp.float32)
    img2 = jax.random.normal(k2, (B, C, H, W), dtype=jnp.float32)

    alpha, ratio = 1.0, 1.0
    # deterministic stand-in for np.random.uniform(0, alpha)
    lam = float(jax.random.uniform(k3, ()) * alpha)

    out, _ = color_spectrum_mix(img1, img2, lam, ratio=ratio)
    out = jax.block_until_ready(out)

    ref = _reference(img1, img2, lam, ratio=ratio)
    np.testing.assert_allclose(np.asarray(out), np.asarray(ref),
                               rtol=1e-2, atol=1e-2)
    print("KERNEL_OK")
</pallas_src>

<mosaic_0001>
module attributes {stable_mosaic.version = 11 : i64} {
  func.func @_spectrum_mix_kernel(%arg0: i32, %arg1: memref<1xi32, #tpu.memory_space<smem>>, %arg2: memref<8x1x1xf32, #tpu.memory_space<vmem>>, %arg3: memref<8x16x16xf32, #tpu.memory_space<vmem>>, %arg4: memref<8x16x16xf32, #tpu.memory_space<vmem>>, %arg5: memref<16x32xf32, #tpu.memory_space<vmem>>, %arg6: memref<32x32xf32, #tpu.memory_space<vmem>>, %arg7: memref<16x32xf32, #tpu.memory_space<vmem>>, %arg8: memref<32x16xf32, #tpu.memory_space<vmem>>, %arg9: memref<8x16x16xf32, #tpu.memory_space<vmem>>) attributes {dimension_semantics = [#tpu.dimension_semantics<parallel>], iteration_bounds = array<i64: 1>, scalar_prefetch = 1 : i64, scratch_operands = 0 : i64, tpu.core_type = #tpu.core_type<tc>, window_params = [{transform_indices = @transform_0, window_bounds = array<i64: 8, 1, 1>}, {transform_indices = @transform_1, window_bounds = array<i64: 8, 16, 16>}, {transform_indices = @transform_2, window_bounds = array<i64: 8, 16, 16>}, {pipeline_mode = #tpu.pipeline_mode<synchronous>, transform_indices = @transform_3, window_bounds = array<i64: 16, 32>}, {pipeline_mode = #tpu.pipeline_mode<synchronous>, transform_indices = @transform_4, window_bounds = array<i64: 32, 32>}, {pipeline_mode = #tpu.pipeline_mode<synchronous>, transform_indices = @transform_5, window_bounds = array<i64: 16, 32>}, {pipeline_mode = #tpu.pipeline_mode<synchronous>, transform_indices = @transform_6, window_bounds = array<i64: 32, 16>}, {transform_indices = @transform_7, window_bounds = array<i64: 8, 16, 16>}]} {
    %0 = arith.index_cast %arg0 : i32 to index
    %1 = memref.load %arg1[%0] : memref<1xi32, #tpu.memory_space<smem>>
    %c0_i32 = arith.constant 0 : i32
    %2 = arith.cmpi eq, %1, %c0_i32 : i32
    %3 = arith.extui %2 : i1 to i32
    %c0_i32_0 = arith.constant 0 : i32
    %4 = arith.cmpi ne, %3, %c0_i32_0 : i32
    scf.if %4 {
      %c0 = arith.constant 0 : index
      %c0_3 = arith.constant 0 : index
      %c0_4 = arith.constant 0 : index
      %10 = vector.load %arg3[%c0, %c0_3, %c0_4] : memref<8x16x16xf32, #tpu.memory_space<vmem>>, vector<8x16x16xf32>
      %c0_5 = arith.constant 0 : index
      %c0_6 = arith.constant 0 : index
      %c0_7 = arith.constant 0 : index
      %11 = vector.load %arg9[%c0_5, %c0_6, %c0_7] : memref<8x16x16xf32, #tpu.memory_space<vmem>>, vector<8x16x16xf32>
      tpu.vector_store %arg9[%c0_5, %c0_6, %c0_7], %10 {strides = array<i32>} : memref<8x16x16xf32, #tpu.memory_space<vmem>>, vector<8x16x16xf32>,
    } else {
    }
    %5 = arith.index_cast %arg0 : i32 to index
    %6 = memref.load %arg1[%5] : memref<1xi32, #tpu.memory_space<smem>>
    %c0_i32_1 = arith.constant 0 : i32
    %7 = arith.cmpi ne, %6, %c0_i32_1 : i32
    %8 = arith.extui %7 : i1 to i32
    %c0_i32_2 = arith.constant 0 : i32
    %9 = arith.cmpi ne, %8, %c0_i32_2 : i32
    scf.if %9 {
      %c0 = arith.constant 0 : index
      %c0_3 = arith.constant 0 : index
      %10 = vector.load %arg5[%c0, %c0_3] : memref<16x32xf32, #tpu.memory_space<vmem>>, vector<16x32xf32>
      %c0_4 = arith.constant 0 : index
      %c0_5 = arith.constant 0 : index
      %11 = vector.load %arg6[%c0_4, %c0_5] : memref<32x32xf32, #tpu.memory_space<vmem>>, vector<32x32xf32>
      %c0_6 = arith.constant 0 : index
      %c0_7 = arith.constant 0 : index
      %12 = vector.load %arg7[%c0_6, %c0_7] : memref<16x32xf32, #tpu.memory_space<vmem>>, vector<16x32xf32>
      %c0_8 = arith.constant 0 : index
      %c0_9 = arith.constant 0 : index
      %13 = vector.load %arg8[%c0_8, %c0_9] : memref<32x16xf32, #tpu.memory_space<vmem>>, vector<32x16xf32>
      %c0_10 = arith.constant 0 : index
      %c0_11 = arith.constant 0 : index
      %c0_12 = arith.constant 0 : index
      %14 = vector.load %arg2[%c0_10, %c0_11, %c0_12] : memref<8x1x1xf32, #tpu.memory_space<vmem>>, vector<8x1x1xf32>
      %c0_13 = arith.constant 0 : index
      %c0_14 = arith.constant 0 : index
      %c0_15 = arith.constant 0 : index
      %15 = vector.load %arg3[%c0_13, %c0_14, %c0_15] : memref<8x16x16xf32, #tpu.memory_space<vmem>>, vector<8x16x16xf32>
      %16 = vector.shape_cast %15 : vector<8x16x16xf32> to vector<128x16xf32>
      %c0_16 = arith.constant 0 : index
      %c0_17 = arith.constant 0 : index
      %c0_18 = arith.constant 0 : index
      %17 = vector.load %arg4[%c0_16, %c0_17, %c0_18] : memref<8x16x16xf32, #tpu.memory_space<vmem>>, vector<8x16x16xf32>
      %18 = vector.shape_cast %17 : vector<8x16x16xf32> to vector<128x16xf32>
      %19 = tpu.concatenate %16, %18 in 0 : vector<128x16xf32>, vector<128x16xf32> -> vector<256x16xf32>
      %cst = arith.constant dense<0.000000e+00> : vector<256x32xf32>
      %20 = tpu.matmul %19, %12, %cst {dimension_numbers = #tpu.dot_dimension_numbers<[1], [0], [0], [1], [0, 0, 1, 1], [], []>, precision = #tpu.contract_precision<fp32>} : vector<256x16xf32>, vector<16x32xf32>, vector<256x32xf32> -> vector<256x32xf32>
      %21 = vector.extract_strided_slice %20 {offsets = [0, 0], sizes = [16, 32], strides = [1, 1]} : vector<256x32xf32> to vector<16x32xf32>
      %22 = tpu.transpose %21, [1, 0] : vector<16x32xf32> -> vector<32x16xf32>
      %23 = vector.extract_strided_slice %20 {offsets = [16, 0], sizes = [16, 32], strides = [1, 1]} : vector<256x32xf32> to vector<16x32xf32>
      %24 = tpu.transpose %23, [1, 0] : vector<16x32xf32> -> vector<32x16xf32>
      %25 = vector.extract_strided_slice %20 {offsets = [32, 0], sizes = [16, 32], strides = [1, 1]} : vector<256x32xf32> to vector<16x32xf32>
      %26 = tpu.transpose %25, [1, 0] : vector<16x32xf32> -> vector<32x16xf32>
      %27 = vector.extract_strided_slice %20 {offsets = [48, 0], sizes = [16, 32], strides = [1, 1]} : vector<256x32xf32> to vector<16x32xf32>
      %28 = tpu.transpose %27, [1, 0] : vector<16x32xf32> -> vector<32x16xf32>
      %29 = vector.extract_strided_slice %20 {offsets = [64, 0], sizes = [16, 32], strides = [1, 1]} : vector<256x32xf32> to vector<16x32xf32>
      %30 = tpu.transpose %29, [1, 0] : vector<16x32xf32> -> vector<32x16xf32>
      %31 = vector.extract_strided_slice %20 {offsets = [80, 0], sizes = [16, 32], strides = [1, 1]} : vector<256x32xf32> to vector<16x32xf32>
      %32 = tpu.transpose %31, [1, 0] : vector<16x32xf32> -> vector<32x16xf32>
      %33 = vector.extract_strided_slice %20 {offsets = [96, 0], sizes = [16, 32], strides = [1, 1]} : vector<256x32xf32> to vector<16x32xf32>
      %34 = tpu.transpose %33, [1, 0] : vector<16x32xf32> -> vector<32x16xf32>
      %35 = vector.extract_strided_slice %20 {offsets = [112, 0], sizes = [16, 32], strides = [1, 1]} : vector<256x32xf32> to vector<16x32xf32>
      %36 = tpu.transpose %35, [1, 0] : vector<16x32xf32> -> vector<32x16xf32>
      %37 = vector.extract_strided_slice %20 {offsets = [128, 0], sizes = [16, 32], strides = [1, 1]} : vector<256x32xf32> to vector<16x32xf32>
      %38 = tpu.transpose %37, [1, 0] : vector<16x32xf32> -> vector<32x16xf32>
      %39 = vector.extract_strided_slice %20 {offsets = [144, 0], sizes = [16, 32], strides = [1, 1]} : vector<256x32xf32> to vector<16x32xf32>
      %40 = tpu.transpose %39, [1, 0] : vector<16x32xf32> -> vector<32x16xf32>
      %41 = vector.extract_strided_slice %20 {offsets = [160, 0], sizes = [16, 32], strides = [1, 1]} : vector<256x32xf32> to vector<16x32xf32>
      %42 = tpu.transpose %41, [1, 0] : vector<16x32xf32> -> vector<32x16xf32>
      %43 = vector.extract_strided_slice %20 {offsets = [176, 0], sizes = [16, 32], strides = [1, 1]} : vector<256x32xf32> to vector<16x32xf32>
      %44 = tpu.transpose %43, [1, 0] : vector<16x32xf32> -> vector<32x16xf32>
      %45 = vector.extract_strided_slice %20 {offsets = [192, 0], sizes = [16, 32], strides = [1, 1]} : vector<256x32xf32> to vector<16x32xf32>
      %46 = tpu.transpose %45, [1, 0] : vector<16x32xf32> -> vector<32x16xf32>
      %47 = vector.extract_strided_slice %20 {offsets = [208, 0], sizes = [16, 32], strides = [1, 1]} : vector<256x32xf32> to vector<16x32xf32>
      %48 = tpu.transpose %47, [1, 0] : vector<16x32xf32> -> vector<32x16xf32>
      %49 = vector.extract_strided_slice %20 {offsets = [224, 0], sizes = [16, 32], strides = [1, 1]} : vector<256x32xf32> to vector<16x32xf32>
      %50 = tpu.transpose %49, [1, 0] : vector<16x32xf32> -> vector<32x16xf32>
      %51 = vector.extract_strided_slice %20 {offsets = [240, 0], sizes = [16, 32], strides = [1, 1]} : vector<256x32xf32> to vector<16x32xf32>
      %52 = tpu.transpose %51, [1, 0] : vector<16x32xf32> -> vector<32x16xf32>
      %53 = tpu.concatenate %22, %24, %26, %28, %30, %32, %34, %36, %38, %40, %42, %44, %46, %48, %50, %52 in 0 : vector<32x16xf32>, vector<32x16xf32>, vector<32x16xf32>, vector<32x16xf32>, vector<32x16xf32>, vector<32x16xf32>, vector<32x16xf32>, vector<32x16xf32>, vector<32x16xf32>, vector<32x16xf32>, vector<32x16xf32>, vector<32x16xf32>, vector<32x16xf32>, vector<32x16xf32>, vector<32x16xf32>, vector<32x16xf32> -> vector<512x16xf32>
      %cst_19 = arith.constant dense<0.000000e+00> : vector<512x32xf32>
      %54 = tpu.matmul %53, %10, %cst_19 {dimension_numbers = #tpu.dot_dimension_numbers<[1], [0], [0], [1], [0, 0, 1, 1], [], []>, precision = #tpu.contract_precision<fp32>} : vector<512x16xf32>, vector<16x32xf32>, vector<512x32xf32> -> vector<512x32xf32>
      %55 = vector.shape_cast %54 : vector<512x32xf32> to vector<16x32x32xf32>
      %56 = vector.extract_strided_slice %55 {offsets = [0, 0, 0], sizes = [16, 16, 16], strides = [1, 1, 1]} : vector<16x32x32xf32> to vector<16x16x16xf32>
      %57 = vector.extract_strided_slice %55 {offsets = [0, 16, 16], sizes = [16, 16, 16], strides = [1, 1, 1]} : vector<16x32x32xf32> to vector<16x16x16xf32>
      %58 = arith.subf %56, %57 : vector<16x16x16xf32>
      %59 = vector.extract_strided_slice %55 {offsets = [0, 16, 0], sizes = [16, 16, 16], strides = [1, 1, 1]} : vector<16x32x32xf32> to vector<16x16x16xf32>
      %60 = vector.extract_strided_slice %55 {offsets = [0, 0, 16], sizes = [16, 16, 16], strides = [1, 1, 1]} : vector<16x32x32xf32> to vector<16x16x16xf32>
      %61 = arith.addf %59, %60 : vector<16x16x16xf32>
      %cst_20 = arith.constant 0.000000e+00 : f32
      %62 = vector.broadcast %cst_20 : f32 to vector<16x16x16xf32>
      %63 = arith.subf %62, %61 : vector<16x16x16xf32>
      %64 = vector.extract_strided_slice %58 {offsets = [0, 0, 0], sizes = [8, 16, 16], strides = [1, 1, 1]} : vector<16x16x16xf32> to vector<8x16x16xf32>
      %65 = vector.extract_strided_slice %58 {offsets = [8, 0, 0], sizes = [8, 16, 16], strides = [1, 1, 1]} : vector<16x16x16xf32> to vector<8x16x16xf32>
      %66 = vector.extract_strided_slice %63 {offsets = [0, 0, 0], sizes = [8, 16, 16], strides = [1, 1, 1]} : vector<16x16x16xf32> to vector<8x16x16xf32>
      %67 = vector.extract_strided_slice %63 {offsets = [8, 0, 0], sizes = [8, 16, 16], strides = [1, 1, 1]} : vector<16x16x16xf32> to vector<8x16x16xf32>
      %68 = arith.mulf %65, %65 : vector<8x16x16xf32>
      %69 = arith.mulf %67, %67 : vector<8x16x16xf32>
      %70 = arith.addf %68, %69 : vector<8x16x16xf32>
      %71 = math.sqrt %70 : vector<8x16x16xf32>
      %72 = arith.mulf %64, %64 : vector<8x16x16xf32>
      %73 = arith.mulf %66, %66 : vector<8x16x16xf32>
      %74 = arith.addf %72, %73 : vector<8x16x16xf32>
      %75 = math.sqrt %74 : vector<8x16x16xf32>
      %76 = arith.subf %71, %75 : vector<8x16x16xf32>
      %77 = vector.broadcast %14 : vector<8x1x1xf32> to vector<8x16x16xf32>
      %78 = arith.mulf %77, %76 : vector<8x16x16xf32>
      %79 = arith.addf %75, %78 : vector<8x16x16xf32>
      %cst_21 = arith.constant 0.000000e+00 : f32
      %80 = vector.broadcast %cst_21 : f32 to vector<8x16x16xf32>
      %81 = arith.cmpf ogt, %74, %80 : vector<8x16x16xf32>
      %cst_22 = arith.constant 1.000000e+00 : f32
      %82 = vector.broadcast %cst_22 : f32 to vector<8x16x16xf32>
      %83 = arith.select %81, %74, %82 : vector<8x16x16xi1>, vector<8x16x16xf32>
      %84 = math.rsqrt %83 : vector<8x16x16xf32>
      %85 = arith.mulf %79, %84 : vector<8x16x16xf32>
      %86 = arith.mulf %64, %85 : vector<8x16x16xf32>
      %87 = arith.select %81, %86, %79 : vector<8x16x16xi1>, vector<8x16x16xf32>
      %88 = arith.mulf %66, %85 : vector<8x16x16xf32>
      %cst_23 = arith.constant 0.000000e+00 : f32
      %89 = vector.broadcast %cst_23 : f32 to vector<8x16x16xf32>
      %90 = arith.select %81, %88, %89 : vector<8x16x16xi1>, vector<8x16x16xf32>
      %91 = tpu.concatenate %87, %90 in 2 : vector<8x16x16xf32>, vector<8x16x16xf32> -> vector<8x16x32xf32>
      %92 = vector.shape_cast %91 : vector<8x16x32xf32> to vector<128x32xf32>
      %cst_24 = arith.constant dense<0.000000e+00> : vector<128x32xf32>
      %93 = tpu.matmul %92, %11, %cst_24 {dimension_numbers = #tpu.dot_dimension_numbers<[1], [0], [0], [1], [0, 0, 1, 1], [], []>, precision = #tpu.contract_precision<fp32>} : vector<128x32xf32>, vector<32x32xf32>, vector<128x32xf32> -> vector<128x32xf32>
      %94 = vector.extract_strided_slice %93 {offsets = [0, 0], sizes = [16, 32], strides = [1, 1]} : vector<128x32xf32> to vector<16x32xf32>
      %95 = tpu.transpose %94, [1, 0] : vector<16x32xf32> -> vector<32x16xf32>
      %96 = vector.extract_strided_slice %95 {offsets = [0, 0], sizes = [16, 16], strides = [1, 1]} : vector<32x16xf32> to vector<16x16xf32>
      %97 = vector.extract_strided_slice %95 {offsets = [16, 0], sizes = [16, 16], strides = [1, 1]} : vector<32x16xf32> to vector<16x16xf32>
      %98 = vector.extract_strided_slice %93 {offsets = [16, 0], sizes = [16, 32], strides = [1, 1]} : vector<128x32xf32> to vector<16x32xf32>
      %99 = tpu.transpose %98, [1, 0] : vector<16x32xf32> -> vector<32x16xf32>
      %100 = vector.extract_strided_slice %99 {offsets = [0, 0], sizes = [16, 16], strides = [1, 1]} : vector<32x16xf32> to vector<16x16xf32>
      %101 = vector.extract_strided_slice %99 {offsets = [16, 0], sizes = [16, 16], strides = [1, 1]} : vector<32x16xf32> to vector<16x16xf32>
      %102 = vector.extract_strided_slice %93 {offsets = [32, 0], sizes = [16, 32], strides = [1, 1]} : vector<128x32xf32> to vector<16x32xf32>
      %103 = tpu.transpose %102, [1, 0] : vector<16x32xf32> -> vector<32x16xf32>
      %104 = vector.extract_strided_slice %103 {offsets = [0, 0], sizes = [16, 16], strides = [1, 1]} : vector<32x16xf32> to vector<16x16xf32>
      %105 = vector.extract_strided_slice %103 {offsets = [16, 0], sizes = [16, 16], strides = [1, 1]} : vector<32x16xf32> to vector<16x16xf32>
      %106 = vector.extract_strided_slice %93 {offsets = [48, 0], sizes = [16, 32], strides = [1, 1]} : vector<128x32xf32> to vector<16x32xf32>
      %107 = tpu.transpose %106, [1, 0] : vector<16x32xf32> -> vector<32x16xf32>
      %108 = vector.extract_strided_slice %107 {offsets = [0, 0], sizes = [16, 16], strides = [1, 1]} : vector<32x16xf32> to vector<16x16xf32>
      %109 = vector.extract_strided_slice %107 {offsets = [16, 0], sizes = [16, 16], strides = [1, 1]} : vector<32x16xf32> to vector<16x16xf32>
      %110 = vector.extract_strided_slice %93 {offsets = [64, 0], sizes = [16, 32], strides = [1, 1]} : vector<128x32xf32> to vector<16x32xf32>
      %111 = tpu.transpose %110, [1, 0] : vector<16x32xf32> -> vector<32x16xf32>
      %112 = vector.extract_strided_slice %111 {offsets = [0, 0], sizes = [16, 16], strides = [1, 1]} : vector<32x16xf32> to vector<16x16xf32>
      %113 = vector.extract_strided_slice %111 {offsets = [16, 0], sizes = [16, 16], strides = [1, 1]} : vector<32x16xf32> to vector<16x16xf32>
      %114 = vector.extract_strided_slice %93 {offsets = [80, 0], sizes = [16, 32], strides = [1, 1]} : vector<128x32xf32> to vector<16x32xf32>
      %115 = tpu.transpose %114, [1, 0] : vector<16x32xf32> -> vector<32x16xf32>
      %116 = vector.extract_strided_slice %115 {offsets = [0, 0], sizes = [16, 16], strides = [1, 1]} : vector<32x16xf32> to vector<16x16xf32>
      %117 = vector.extract_strided_slice %115 {offsets = [16, 0], sizes = [16, 16], strides = [1, 1]} : vector<32x16xf32> to vector<16x16xf32>
      %118 = vector.extract_strided_slice %93 {offsets = [96, 0], sizes = [16, 32], strides = [1, 1]} : vector<128x32xf32> to vector<16x32xf32>
      %119 = tpu.transpose %118, [1, 0] : vector<16x32xf32> -> vector<32x16xf32>
      %120 = vector.extract_strided_slice %119 {offsets = [0, 0], sizes = [16, 16], strides = [1, 1]} : vector<32x16xf32> to vector<16x16xf32>
      %121 = vector.extract_strided_slice %119 {offsets = [16, 0], sizes = [16, 16], strides = [1, 1]} : vector<32x16xf32> to vector<16x16xf32>
      %122 = vector.extract_strided_slice %93 {offsets = [112, 0], sizes = [16, 32], strides = [1, 1]} : vector<128x32xf32> to vector<16x32xf32>
      %123 = tpu.transpose %122, [1, 0] : vector<16x32xf32> -> vector<32x16xf32>
      %124 = vector.extract_strided_slice %123 {offsets = [0, 0], sizes = [16, 16], strides = [1, 1]} : vector<32x16xf32> to vector<16x16xf32>
      %125 = vector.extract_strided_slice %123 {offsets = [16, 0], sizes = [16, 16], strides = [1, 1]} : vector<32x16xf32> to vector<16x16xf32>
      %126 = tpu.concatenate %96, %100, %104, %108, %112, %116, %120, %124 in 0 : vector<16x16xf32>, vector<16x16xf32>, vector<16x16xf32>, vector<16x16xf32>, vector<16x16xf32>, vector<16x16xf32>, vector<16x16xf32>, vector<16x16xf32> -> vector<128x16xf32>
      %127 = tpu.concatenate %97, %101, %105, %109, %113, %117, %121, %125 in 0 : vector<16x16xf32>, vector<16x16xf32>, vector<16x16xf32>, vector<16x16xf32>, vector<16x16xf32>, vector<16x16xf32>, vector<16x16xf32>, vector<16x16xf32> -> vector<128x16xf32>
      %128 = tpu.concatenate %126, %127 in 1 : vector<128x16xf32>, vector<128x16xf32> -> vector<128x32xf32>
      %cst_25 = arith.constant dense<0.000000e+00> : vector<128x16xf32>
      %129 = tpu.matmul %128, %13, %cst_25 {dimension_numbers = #tpu.dot_dimension_numbers<[1], [0], [0], [1], [0, 0, 1, 1], [], []>, precision = #tpu.contract_precision<fp32>} : vector<128x32xf32>, vector<32x16xf32>, vector<128x16xf32> -> vector<128x16xf32>
      %130 = vector.shape_cast %129 : vector<128x16xf32> to vector<8x16x16xf32>
      %c0_26 = arith.constant 0 : index
      %c0_27 = arith.constant 0 : index
      %c0_28 = arith.constant 0 : index
      %131 = vector.load %arg9[%c0_26, %c0_27, %c0_28] : memref<8x16x16xf32, #tpu.memory_space<vmem>>, vector<8x16x16xf32>
      tpu.vector_store %arg9[%c0_26, %c0_27, %c0_28], %130 {strides = array<i32>} : memref<8x16x16xf32, #tpu.memory_space<vmem>>, vector<8x16x16xf32>,
    } else {
    }
    return
  }
  func.func @transform_0(%arg0: i32, %arg1: memref<1xi32, #tpu.memory_space<smem>>) -> (i32, i32, i32) {
    %c0_i32 = arith.constant 0 : i32
    %c0_i32_0 = arith.constant 0 : i32
    %c0_i32_1 = arith.constant 0 : i32
    return %arg0, %c0_i32, %c0_i32_0 : i32, i32, i32
  }
  func.func @transform_1(%arg0: i32, %arg1: memref<1xi32, #tpu.memory_space<smem>>) -> (i32, i32, i32) {
    %c0_i32 = arith.constant 0 : i32
    %c0_i32_0 = arith.constant 0 : i32
    %c0_i32_1 = arith.constant 0 : i32
    return %arg0, %c0_i32, %c0_i32_0 : i32, i32, i32
  }
  func.func @transform_2(%arg0: i32, %arg1: memref<1xi32, #tpu.memory_space<smem>>) -> (i32, i32, i32) {
    %c0_i32 = arith.constant 0 : i32
    %c0_i32_0 = arith.constant 0 : i32
    %c0_i32_1 = arith.constant 0 : i32
    return %arg0, %c0_i32, %c0_i32_0 : i32, i32, i32
  }
  func.func @transform_3(%arg0: i32, %arg1: memref<1xi32, #tpu.memory_space<smem>>) -> (i32, i32) {
    %c0_i32 = arith.constant 0 : i32
    %c0_i32_0 = arith.constant 0 : i32
    %c0_i32_1 = arith.constant 0 : i32
    return %c0_i32, %c0_i32_0 : i32, i32
  }
  func.func @transform_4(%arg0: i32, %arg1: memref<1xi32, #tpu.memory_space<smem>>) -> (i32, i32) {
    %c0_i32 = arith.constant 0 : i32
    %c0_i32_0 = arith.constant 0 : i32
    %c0_i32_1 = arith.constant 0 : i32
    return %c0_i32, %c0_i32_0 : i32, i32
  }
  func.func @transform_5(%arg0: i32, %arg1: memref<1xi32, #tpu.memory_space<smem>>) -> (i32, i32) {
    %c0_i32 = arith.constant 0 : i32
    %c0_i32_0 = arith.constant 0 : i32
    %c0_i32_1 = arith.constant 0 : i32
    return %c0_i32, %c0_i32_0 : i32, i32
  }
  func.func @transform_6(%arg0: i32, %arg1: memref<1xi32, #tpu.memory_space<smem>>) -> (i32, i32) {
    %c0_i32 = arith.constant 0 : i32
    %c0_i32_0 = arith.constant 0 : i32
    %c0_i32_1 = arith.constant 0 : i32
    return %c0_i32, %c0_i32_0 : i32, i32
  }
  func.func @transform_7(%arg0: i32, %arg1: memref<1xi32, #tpu.memory_space<smem>>) -> (i32, i32, i32) {
    %c0_i32 = arith.constant 0 : i32
    %c0_i32_0 = arith.constant 0 : i32
    %c0_i32_1 = arith.constant 0 : i32
    return %arg0, %c0_i32, %c0_i32_0 : i32, i32, i32
  }
}

</mosaic_0001>

<bundles_post_ra>
// kernel: tpu_custom_call.1
= control target key start
LH: loop header
LB: loop body
LE: loop exit
PB: predicated region body
PF: predicated region fallthrough
CT: control target
= control target key end

     0   :  { %s16654_s0 = inlined_call_operand.<no memory space> [shape: s32[1], index: 0, kind: input, shape index: {}]   ;;  %s16655_s1 = inlined_call_operand.vmem [shape: f32[8,1,1], index: 1, kind: input, shape index: {}]   ;;  %s16656_s2 = inlined_call_operand.hbm [shape: f32[8,16,16], index: 2, kind: input, shape index: {}]   ;;  %s16657_s3 = inlined_call_operand.hbm [shape: f32[8,16,16], index: 3, kind: input, shape index: {}]   ;;  %s16658_s4 = inlined_call_operand.vmem [shape: f32[16,32], index: 4, kind: input, shape index: {}]   ;;  %s16659_s5 = inlined_call_operand.vmem [shape: f32[32,32], index: 5, kind: input, shape index: {}]   ;;  %s16660_s6 = inlined_call_operand.hbm [shape: f32[16,32], index: 6, kind: input, shape index: {}]   ;;  %s16661_s7 = inlined_call_operand.vmem [shape: f32[32,16], index: 7, kind: input, shape index: {}]   ;;  %s16662_s8 = inlined_call_operand.hbm [shape: f32[8,16,16], index: 8, kind: output, shape index: {}]  }
   0x1   :  { %13 = sst [smem:[#allocation3]] %s16654_s0 }
   0x2   :  { %14 = vsyncpa [#allocation5], 0 }
   0x3   :  { %15 = vsyncpa [#allocation8], 0 }
   0x4   :  { %16 = vsyncpa [#allocation6], 0  ;;  %s12787_s29 = smov [#allocation7]   ;;  %s12788_s9 = smov [#allocation4]  }
   0x5   :  { %s36_s30 = sshll.u32 %s12787_s29, 4  ;;  %s24_s10 = sshll.u32 %s12788_s9, 4  ;;  %s37_s30 = int_to_ptr.vmem [resolvable:$true] %s36_s30  ;;  %s12844_s10 = int_to_ptr.vmem [resolvable:$true] %s24_s10 }
   0x6   :  { %s12693_s13 = scalar_lea.hbm %s16657_s3, 2048 }
   0x7   :  { %p12694_p0 = scmp.ne.s32.totalorder %s16657_s3, %s12693_s13  ;;  %p12697_p1 = scmp.lt.u32.totalorder %s12693_s13, %s16657_s3 }
   0x9   :  { %p12699_p2 = pnand %p12697_p1, %p12694_p0 }
   0xb   :  { %12702 = shalt.err (!%p12699_p2)
}
   0xc   :  { %s12703_s17 = scalar_lea.vmem %s37_s30, 2048  ;;  %p12708_p4 = scmp.lt.s32.totalorder %s37_s30, %s37_s30 }
   0xd   :  { %p12704_p3 = scmp.ne.s32.totalorder %s37_s30, %s12703_s17  ;;  %p12709_p5 = scmp.lt.s32.totalorder %s12703_s17, %s12703_s17 }
   0xf   :  { %p12710_p6 = por %p12709_p5, %p12708_p4 }
  0x11   :  { %p12711_p7 = pnand %p12710_p6, %p12704_p3 }
  0x13   :  { %12714 = shalt.err (!%p12711_p7)
}
  0x14   :  { %s12789_s18 = smov 128   ;;  %s12790_s19 = smov 8  }
  0x15   :  { %42 = dma.hbm_to_vmem [thread:$0]  %s16657_s3, 2048, %s37_s30, [#allocation8], %s12789_s18, %s12789_s18, %s12790_s19  }
  0x16   :  { %s12715_s24 = scalar_lea.hbm %s16656_s2, 2048 }
  0x17   :  { %p12716_p8 = scmp.ne.s32.totalorder %s16656_s2, %s12715_s24  ;;  %p12719_p9 = scmp.lt.u32.totalorder %s12715_s24, %s16656_s2 }
  0x19   :  { %p12721_p10 = pnand %p12719_p9, %p12716_p8 }
  0x1b   :  { %12724 = shalt.err (!%p12721_p10)
}
  0x1c   :  { %s12725_s29 = scalar_lea.vmem %s12844_s10, 2048  ;;  %p12730_p12 = scmp.lt.s32.totalorder %s12844_s10, %s12844_s10 }
  0x1d   :  { %p12726_p11 = scmp.ne.s32.totalorder %s12844_s10, %s12725_s29  ;;  %p12731_p13 = scmp.lt.s32.totalorder %s12725_s29, %s12725_s29 }
  0x1f   :  { %p12732_p0 = por %p12731_p13, %p12730_p12 }
  0x21   :  { %p12733_p1 = pnand %p12732_p0, %p12726_p11 }
  0x23   :  { %12736 = shalt.err (!%p12733_p1)
}
  0x24   :  { %30 = dma.hbm_to_vmem [thread:$0]  %s16656_s2, 2048, %s12844_s10, [#allocation5], %s12789_s18, %s12789_s18, %s12790_s19  }
  0x25   :  { %s12791_s9 = smov [#allocation9]   ;;  %s12737_s14 = scalar_lea.hbm %s16660_s6, 256 }
  0x26   :  { %s52_s11 = sshll.u32 %s12791_s9, 4  ;;  %p12738_p2 = scmp.ne.s32.totalorder %s16660_s6, %s12737_s14  ;;  %s53_s11 = int_to_ptr.vmem [resolvable:$true] %s52_s11 }
  0x27   :  { %p12741_p3 = scmp.lt.u32.totalorder %s12737_s14, %s16660_s6 }
  0x29   :  { %p12743_p4 = pnand %p12741_p3, %p12738_p2 }
  0x2b   :  { %12746 = shalt.err (!%p12743_p4)
}
  0x2c   :  { %s12747_s20 = scalar_lea.vmem %s53_s11, 256  ;;  %p12752_p6 = scmp.lt.s32.totalorder %s53_s11, %s53_s11 }
  0x2d   :  { %p12748_p5 = scmp.ne.s32.totalorder %s53_s11, %s12747_s20  ;;  %p12753_p7 = scmp.lt.s32.totalorder %s12747_s20, %s12747_s20 }
  0x2f   :  { %p12754_p8 = por %p12753_p7, %p12752_p6 }
  0x31   :  { %p12755_p9 = pnand %p12754_p8, %p12748_p5 }
  0x33   :  { %12758 = shalt.err (!%p12755_p9)
}
  0x34   :  { %58 = dma.hbm_to_vmem [thread:$0]  %s16660_s6, 256, %s53_s11, [#allocation8], %s12789_s18, %s12789_s18, %s12790_s19  }
  0x35   :  { %12781 = dma.done.wait [#allocation5], 2048  }
  0x36   :  { %12782 = vsyncadd [#allocation5], 4294965248 }
  0x37   :  { %12783 = dma.done.wait [#allocation8], 2304  }
  0x38   :  { %12784 = vsyncadd [#allocation8], 4294964992  ;;  %s70_s21 = sld [smem:[#allocation3]] }
  0x3e   :  { %p9653_p10 = scmp.ne.s32.totalorder %s70_s21, 0 }
  0x3f   :  { %v75_v0 = vld [vmem:[#allocation4] sm:$0xff] (!%p9653_p10)  ;;  %vm91_vm0 = vcmask (!%p9653_p10), 130048   ;;  %v76_v1 = vld [vmem:[#allocation4 + $0x8] sm:$0xff] (!%p9653_p10)  ;;  %v77_v2 = vld [vmem:[#allocation4 + $0x10] sm:$0xff] (!%p9653_p10) }
  0x40   :  { %74 = sbr.rel (%p9653_p10) target bundleno = 72 (0x48), region = 45  ;;  %92 = vst.msk [vmem:[#allocation10] sm:$0xff] (!%p9653_p10), %vm91_vm0, %v75_v0  ;;  %93 = vst.msk [vmem:[#allocation10 + $0x8] sm:$0xff] (!%p9653_p10), %vm91_vm0, %v76_v1  ;;  %v78_v3 = vld [vmem:[#allocation4 + $0x18] sm:$0xff] (!%p9653_p10)  ;;  %v79_v4 = vld [vmem:[#allocation4 + $0x20] sm:$0xff] (!%p9653_p10) }
  0x41   :  { %94 = vst.msk [vmem:[#allocation10 + $0x10] sm:$0xff] (!%p9653_p10), %vm91_vm0, %v77_v2  ;;  %v80_v5 = vld [vmem:[#allocation4 + $0x28] sm:$0xff] (!%p9653_p10)  ;;  %95 = vst.msk [vmem:[#allocation10 + $0x18] sm:$0xff] (!%p9653_p10), %vm91_vm0, %v78_v3  ;;  %v81_v6 = vld [vmem:[#allocation4 + $0x30] sm:$0xff] (!%p9653_p10) }
  0x42   :  { %96 = vst.msk [vmem:[#allocation10 + $0x20] sm:$0xff] (!%p9653_p10), %vm91_vm0, %v79_v4  ;;  %97 = vst.msk [vmem:[#allocation10 + $0x28] sm:$0xff] (!%p9653_p10), %vm91_vm0, %v80_v5  ;;  %v82_v7 = vld [vmem:[#allocation4 + $0x38] sm:$0xff] (!%p9653_p10)  ;;  %v83_v8 = vld [vmem:[#allocation4 + $0x40] sm:$0xff] (!%p9653_p10) }
  0x43   :  { %98 = vst.msk [vmem:[#allocation10 + $0x30] sm:$0xff] (!%p9653_p10), %vm91_vm0, %v81_v6  ;;  %99 = vst.msk [vmem:[#allocation10 + $0x38] sm:$0xff] (!%p9653_p10), %vm91_vm0, %v82_v7  ;;  %v84_v9 = vld [vmem:[#allocation4 + $0x48] sm:$0xff] (!%p9653_p10)  ;;  %v85_v10 = vld [vmem:[#allocation4 + $0x50] sm:$0xff] (!%p9653_p10) }
  0x44   :  { %100 = vst.msk [vmem:[#allocation10 + $0x40] sm:$0xff] (!%p9653_p10), %vm91_vm0, %v83_v8  ;;  %v86_v11 = vld [vmem:[#allocation4 + $0x58] sm:$0xff] (!%p9653_p10)  ;;  %101 = vst.msk [vmem:[#allocation10 + $0x48] sm:$0xff] (!%p9653_p10), %vm91_vm0, %v84_v9  ;;  %v87_v12 = vld [vmem:[#allocation4 + $0x60] sm:$0xff] (!%p9653_p10) }
  0x45   :  { %102 = vst.msk [vmem:[#allocation10 + $0x50] sm:$0xff] (!%p9653_p10), %vm91_vm0, %v85_v10  ;;  %103 = vst.msk [vmem:[#allocation10 + $0x58] sm:$0xff] (!%p9653_p10), %vm91_vm0, %v86_v11  ;;  %v88_v13 = vld [vmem:[#allocation4 + $0x68] sm:$0xff] (!%p9653_p10)  ;;  %v89_v14 = vld [vmem:[#allocation4 + $0x70] sm:$0xff] (!%p9653_p10) }
  0x46   :  { %104 = vst.msk [vmem:[#allocation10 + $0x60] sm:$0xff] (!%p9653_p10), %vm91_vm0, %v87_v12  ;;  %105 = vst.msk [vmem:[#allocation10 + $0x68] sm:$0xff] (!%p9653_p10), %vm91_vm0, %v88_v13  ;;  %v90_v15 = vld [vmem:[#allocation4 + $0x78] sm:$0xff] (!%p9653_p10) }
  0x47   :  { %106 = vst.msk [vmem:[#allocation10 + $0x70] sm:$0xff] %vm91_vm0, %v89_v14  ;;  %107 = vst.msk [vmem:[#allocation10 + $0x78] sm:$0xff] %vm91_vm0, %v90_v15 }
  0x48 PF:  { %s108_s6 = sld [smem:[#allocation3]] }
  0x4e   :  { %p9654_p11 = scmp.eq.s32.totalorder %s108_s6, 0 }
  0x50   :  { %112 = sbr.rel (%p9654_p11) target bundleno = 3113 (0xc29), region = 49 }
  0x57   :  { %v119_v16 = vld [vmem:[#allocation9] sm:$0xff]  ;;  %v120_v17 = vld [vmem:[#allocation9 + $0x8] sm:$0xff]  ;;  %vm17082_vm1 = vcmask 130048   ;;  %v135_v23 = vld [vmem:[#allocation4 + $0x10] sm:$0xff]  ;;  %s12793_s30 = smov 112   ;;  %s12794_s6 = smov 16  }
  0x58   :  { %v133_v18 = vld [vmem:[#allocation4] sm:$0xff]  ;;  %v263_v19 = vand.u32 4294901760, %v119_v16  ;;  %v266_v20 = vand.u32 4294901760, %v120_v17  ;;  %v134_v22 = vld [vmem:[#allocation4 + $0x8] sm:$0xff]  ;;  %v136_v24 = vld [vmem:[#allocation4 + $0x18] sm:$0xff]  ;;  %v173_v27 = vsel %vm17082_vm1, %v135_v23, 0 }
  0x59   :  { %v167_v21 = vsel %vm17082_vm1, %v133_v18, 0  ;;  %v170_v26 = vsel %vm17082_vm1, %v134_v22, 0  ;;  %v176_v28 = vsel %vm17082_vm1, %v136_v24, 0  ;;  %v137_v29 = vld [vmem:[#allocation4 + $0x20] sm:$0xff]  ;;  %v138_v34 = vld [vmem:[#allocation4 + $0x28] sm:$0xff]  ;;  %v12929_v36 = vand.u32 4294901760, %v173_v27 }
  0x5a   :  { %v12913_v25 = vand.u32 4294901760, %v167_v21  ;;  %v12918_v30 = vpack.c.bf16 %v266_v20, %v263_v19  ;;  %v12920_v31 = vand.u32 4294901760, %v170_v26  ;;  %v12922_v32 = vsub.f32 %v119_v16, %v263_v19  ;;  %v139_v55 = vld [vmem:[#allocation4 + $0x30] sm:$0xff]  ;;  %v140_v0 = vld [vmem:[#allocation4 + $0x38] sm:$0xff]  ;;  %v141_v1 = vld [vmem:[#allocation4 + $0x40] sm:$0xff] }
  0x5b   :  { %v12924_v33 = vsub.f32 %v120_v17, %v266_v20  ;;  %v12931_v37 = vand.u32 4294901760, %v176_v28  ;;  %v179_v38 = vsel %vm17082_vm1, %v137_v29, 0  ;;  %v12945_v44 = vsub.f32 %v173_v27, %v12929_v36  ;;  %v142_v2 = vld [vmem:[#allocation4 + $0x48] sm:$0xff]  ;;  %v143_v7 = vld [vmem:[#allocation4 + $0x50] sm:$0xff]  ;;  %v144_v12 = vld [vmem:[#allocation4 + $0x58] sm:$0xff] }
  0x5c   :  { %v12927_v35 = vsub.f32 %v167_v21, %v12913_v25  ;;  %11800 = vmatprep.subr.bf16.mxu0 %v12918_v30  ;;  %v12936_v39 = vsub.f32 %v170_v26, %v12920_v31  ;;  %v16680_v40 = vand.u32 4294901760, %v12922_v32  ;;  %v12940_v42 = vand.u32 4294901760, %v179_v38  ;;  %v145_v13 = vld [vmem:[#allocation4 + $0x60] sm:$0xff]  ;;  %v146_v27 = vld [vmem:[#allocation4 + $0x68] sm:$0xff] }
  0x5d   :  { %v16679_v41 = vand.u32 4294901760, %v12924_v33  ;;  %11802 = vmatpush3.bf16.msra.mxu0 %v12918_v30  ;;  %v12948_v45 = vsub.f32 %v176_v28, %v12931_v37  ;;  %v182_v46 = vsel %vm17082_vm1, %v138_v34, 0  ;;  %v16675_v52 = vand.u32 4294901760, %v12945_v44 }
  0x5e   :  { %v16677_v43 = vand.u32 4294901760, %v12927_v35  ;;  %v16676_v47 = vand.u32 4294901760, %v12936_v39  ;;  %v653_v48 = vsub.f32 %v12922_v32, %v16680_v40  ;;  %v12959_v50 = vsub.f32 %v179_v38, %v12940_v42 }
  0x5f   :  { %v660_v49 = vsub.f32 %v12924_v33, %v16679_v41  ;;  %v16673_v53 = vand.u32 4294901760, %v12948_v45  ;;  %v12966_v54 = vand.u32 4294901760, %v182_v46  ;;  %v352_v61 = vsub.f32 %v12945_v44, %v16675_v52 }
  0x60   :  { %v332_v51 = vsub.f32 %v12927_v35, %v16677_v43  ;;  %v342_v56 = vsub.f32 %v12936_v39, %v16676_v47  ;;  %v654_v57 = vand.u32 4294901760, %v653_v48  ;;  %v16672_v59 = vand.u32 4294901760, %v12959_v50  ;;  %v156_v47 = vld [vmem:[#allocation7 + $0x38] sm:$0xff]  ;;  %v157_v43 = vld [vmem:[#allocation7 + $0x40] sm:$0xff] }
  0x61   :  { %v661_v58 = vand.u32 4294901760, %v660_v49  ;;  %v362_v62 = vsub.f32 %v12948_v45, %v16673_v53  ;;  %v12979_v63 = vsub.f32 %v182_v46, %v12966_v54  ;;  %v185_v6 = vsel %vm17082_vm1, %v139_v55, 0  ;;  %v155_v53 = vld [vmem:[#allocation7 + $0x30] sm:$0xff] }
  0x62   :  { %v333_v60 = vand.u32 4294901760, %v332_v51  ;;  %v343_v3 = vand.u32 4294901760, %v342_v56  ;;  %v372_v5 = vsub.f32 %v12959_v50, %v16672_v59  ;;  %v353_v8 = vand.u32 4294901760, %v352_v61 }
  0x63   :  { %v11803_v4 = vpack.c.bf16 %v661_v58, %v654_v57  ;;  %v363_v9 = vand.u32 4294901760, %v362_v62  ;;  %v16671_v10 = vand.u32 4294901760, %v12979_v63  ;;  %v12986_v11 = vand.u32 4294901760, %v185_v6 }
  0x64   :  { %10507 = vmatprep.mubr.f32.mxu0 %v333_v60  ;;  %v373_v14 = vand.u32 4294901760, %v372_v5  ;;  %v188_v15 = vsel %vm17082_vm1, %v140_v0, 0  ;;  %v191_v16 = vsel %vm17082_vm1, %v141_v1, 0  ;;  %v194_v17 = vsel %vm17082_vm1, %v142_v2, 0  ;;  %v147_v1 = vld [vmem:[#allocation4 + $0x70] sm:$0xff] }
  0x65   :  { %10508 = vmatmul.mubr.f32.vlgmr.msra.gmra.mrb[0].mxu0 %v343_v3  ;;  %11804 = vmatprep.subr.bf16.mxu0 %v11803_v4  ;;  %v382_v18 = vsub.f32 %v12979_v63, %v16671_v10  ;;  %v12995_v19 = vsub.f32 %v185_v6, %v12986_v11  ;;  %v12997_v20 = vand.u32 4294901760, %v188_v15  ;;  %v12999_v21 = vand.u32 4294901760, %v191_v16 }
  0x66   :  { %11806 = vmatpush3.bf16.msra.mxu0 %v11803_v4  ;;  %10510 = vmatprep.mubr.f32.mxu0 %v353_v8  ;;  %v13001_v22 = vand.u32 4294901760, %v194_v17  ;;  %v197_v23 = vsel %vm17082_vm1, %v143_v7, 0  ;;  %v200_v24 = vsel %vm17082_vm1, %v144_v12, 0  ;;  %v203_v26 = vsel %vm17082_vm1, %v145_v13, 0  ;;  %v148_v12 = vld [vmem:[#allocation4 + $0x78] sm:$0xff]  ;;  %v149_v13 = vld [vmem:[#allocation7] sm:$0xff] }
  0x67   :  { %v383_v28 = vand.u32 4294901760, %v382_v18  ;;  %v16669_v29 = vand.u32 4294901760, %v12995_v19  ;;  %v13008_v34 = vsub.f32 %v188_v15, %v12997_v20  ;;  %v13011_v38 = vsub.f32 %v191_v16, %v12999_v21 }
  0x68   :  { %v13014_v46 = vsub.f32 %v194_v17, %v13001_v22  ;;  %v13016_v48 = vand.u32 4294901760, %v197_v23  ;;  %v13018_v49 = vand.u32 4294901760, %v200_v24  ;;  %v13020_v51 = vand.u32 4294901760, %v203_v26 }
  0x69   :  { %10511 = vmatmul.mubr.f32.gmra.mrb[2].mxu0 %v363_v9  ;;  %v392_v55 = vsub.f32 %v12995_v19, %v16669_v29  ;;  %v16668_v56 = vand.u32 4294901760, %v13008_v34  ;;  %v16667_v57 = vand.u32 4294901760, %v13011_v38  ;;  %v206_v58 = vsel %vm17082_vm1, %v146_v27, 0 }
  0x6a   :  { %17115 = vst [vmem:[#allocation14_spill] sm:$0xff] %v13014_v46  ;;  %10513 = vmatprep.mubr.f32.mxu0 %v373_v14  ;;  %v16665_v60 = vand.u32 4294901760, %v13014_v46  ;;  %v13030_v61 = vsub.f32 %v197_v23, %v13016_v48  ;;  %v13033_v62 = vsub.f32 %v200_v24, %v13018_v49  ;;  %v13036_v0 = vsub.f32 %v203_v26, %v13020_v51  ;;  %v150_v26 = vld [vmem:[#allocation7 + $0x8] sm:$0xff] }
  0x6b   :  { %v393_v2 = vand.u32 4294901760, %v392_v55  ;;  %v402_v3 = vsub.f32 %v13008_v34, %v16668_v56  ;;  %v412_v4 = vsub.f32 %v13011_v38, %v16667_v57  ;;  %v13044_v5 = vand.u32 4294901760, %v206_v58 }
  0x6c   :  { %17116 = vst [vmem:[#allocation15_spill] sm:$0xff] %v13030_v61  ;;  %17117 = vst [vmem:[#allocation16_spill] sm:$0xff] %v13033_v62  ;;  %v422_v6 = vsub.f32 %v13014_v46, %v16665_v60  ;;  %v16663_v7 = vand.u32 4294901760, %v13030_v61  ;;  %v16664_v8 = vand.u32 4294901760, %v13033_v62  ;;  %v16666_v9 = vand.u32 4294901760, %v13036_v0 }
  0x6d   :  { %17118 = vst [vmem:[#allocation17_spill] sm:$0xff] %v13036_v0  ;;  %10514 = vmatmul.mubr.f32.gmra.mrb[4].mxu0 %v383_v28  ;;  %v403_v14 = vand.u32 4294901760, %v402_v3  ;;  %v413_v15 = vand.u32 4294901760, %v412_v4  ;;  %v13053_v16 = vsub.f32 %v206_v58, %v13044_v5  ;;  %v209_v17 = vsel %vm17082_vm1, %v147_v1, 0  ;;  %v151_v1 = vld [vmem:[#allocation7 + $0x10] sm:$0xff] }
  0x6e   :  { %10516 = vmatprep.mubr.f32.mxu0 %v393_v2  ;;  %v432_v18 = vsub.f32 %v13030_v61, %v16663_v7  ;;  %v442_v23 = vsub.f32 %v13033_v62, %v16664_v8  ;;  %v452_v24 = vsub.f32 %v13036_v0, %v16666_v9  ;;  %v13066_v28 = vand.u32 4294901760, %v209_v17  ;;  %v152_v2 = vld [vmem:[#allocation7 + $0x18] sm:$0xff] }
  0x6f   :  { %17119 = vst [vmem:[#allocation18_spill] sm:$0xff] %v13053_v16  ;;  %v16670_v27 = vand.u32 4294901760, %v13053_v16  ;;  %v212_v55 = vsel %vm17082_vm1, %v148_v12, 0  ;;  %v215_v58 = vsel %vm17082_vm1, %v149_v13, 0  ;;  %v423_v3 = vand.u32 4294901760, %v422_v6  ;;  %v153_v12 = vld [vmem:[#allocation7 + $0x20] sm:$0xff] }
  0x70   :  { %v433_v4 = vand.u32 4294901760, %v432_v18  ;;  %v443_v7 = vand.u32 4294901760, %v442_v23  ;;  %v13070_v8 = vand.u32 4294901760, %v212_v55  ;;  %v453_v60 = vand.u32 4294901760, %v452_v24  ;;  %v154_v24 = vld [vmem:[#allocation7 + $0x28] sm:$0xff] }
  0x71   :  { %10517 = vmatmul.mubr.f32.gmra.mrb[6].mxu0 %v403_v14  ;;  %v13073_v9 = vsub.f32 %v209_v17, %v13066_v28  ;;  %v13075_v57 = vand.u32 4294901760, %v215_v58  ;;  %v218_v56 = vsel %vm17082_vm1, %v150_v26, 0  ;;  %v221_v6 = vsel %vm17082_vm1, %v151_v1, 0 }
  0x72   :  { %10519 = vmatprep.mubr.f32.mxu0 %v413_v15  ;;  %v13079_v13 = vsub.f32 %v212_v55, %v13070_v8  ;;  %v13081_v29 = vand.u32 4294901760, %v218_v56  ;;  %v224_v14 = vsel %vm17082_vm1, %v152_v2, 0  ;;  %v462_v15 = vsub.f32 %v13053_v16, %v16670_v27  ;;  %v161_v16 = vld [vmem:[#allocation7 + $0x60] sm:$0xff] }
  0x73   :  { %17120 = vst [vmem:[#allocation19_spill] sm:$0xff] %v13073_v9  ;;  %v16674_v17 = vand.u32 4294901760, %v13073_v9  ;;  %v13090_v18 = vsub.f32 %v215_v58, %v13075_v57  ;;  %v13092_v23 = vand.u32 4294901760, %v221_v6  ;;  %v13098_v1 = vand.u32 4294901760, %v224_v14 }
  0x74   :  { %17121 = vst [vmem:[#allocation20_spill] sm:$0xff] %v13079_v13  ;;  %v16678_v26 = vand.u32 4294901760, %v13079_v13  ;;  %v13096_v55 = vsub.f32 %v218_v56, %v13081_v29  ;;  %v227_v2 = vsel %vm17082_vm1, %v153_v12, 0  ;;  %v230_v59 = vsel %vm17082_vm1, %v154_v24, 0  ;;  %v159_v24 = vld [vmem:[#allocation7 + $0x50] sm:$0xff] }
  0x75   :  { %17122 = vst [vmem:[#allocation21_spill] sm:$0xff] %v13090_v18  ;;  %10520 = vmatmul.mubr.f32.gmra.mrb[8].mxu0 %v423_v3  ;;  %v472_v27 = vsub.f32 %v13073_v9, %v16674_v17  ;;  %v16681_v58 = vand.u32 4294901760, %v13090_v18  ;;  %v13106_v10 = vsub.f32 %v221_v6, %v13092_v23  ;;  %v13108_v3 = vand.u32 4294901760, %v227_v2 }
  0x76   :  { %17123 = vst [vmem:[#allocation22_spill] sm:$0xff] %v13096_v55  ;;  %10522 = vmatprep.mubr.f32.mxu0 %v433_v4  ;;  %v482_v56 = vsub.f32 %v13079_v13, %v16678_v26  ;;  %v16686_v4 = vand.u32 4294901760, %v13096_v55  ;;  %v463_v12 = vand.u32 4294901760, %v462_v15  ;;  %v13119_v6 = vsub.f32 %v224_v14, %v13098_v1 }
  0x77   :  { %17124 = vst [vmem:[#allocation23_spill] sm:$0xff] %v13106_v10  ;;  %v492_v17 = vsub.f32 %v13090_v18, %v16681_v58  ;;  %v13121_v52 = vand.u32 4294901760, %v230_v59  ;;  %v473_v26 = vand.u32 4294901760, %v472_v27  ;;  %v13125_v41 = vsub.f32 %v227_v2, %v13108_v3  ;;  %v158_v58 = vld [vmem:[#allocation7 + $0x48] sm:$0xff] }
  0x78   :  { %17125 = vst [vmem:[#allocation24_spill] sm:$0xff] %v13119_v6  ;;  %v483_v15 = vand.u32 4294901760, %v482_v56  ;;  %v502_v14 = vsub.f32 %v13096_v55, %v16686_v4  ;;  %v239_v27 = vsel %vm17082_vm1, %v157_v43, 0  ;;  %v17129_v4 = vand.u32 4294901760, %v13106_v10 }
  0x79   :  { %10523 = vmatmul.mubr.f32.gmra.mrb[10].mxu0 %v443_v7  ;;  %17126 = vst [vmem:[#allocation25_spill] sm:$0xff] %v13125_v41  ;;  %v233_v7 = vsel %vm17082_vm1, %v155_v53, 0  ;;  %v13134_v18 = vsub.f32 %v230_v59, %v13121_v52  ;;  %v493_v2 = vand.u32 4294901760, %v492_v17  ;;  %v242_v43 = vsel %vm17082_vm1, %v158_v58, 0 }
  0x7a   :  { %10525 = vmatprep.mubr.f32.mxu0 %v453_v60  ;;  %v13128_v40 = vand.u32 4294901760, %v233_v7  ;;  %v236_v60 = vsel %vm17082_vm1, %v156_v47, 0  ;;  %v512_v59 = vsub.f32 %v13106_v10, %v17129_v4  ;;  %v13148_v47 = vand.u32 4294901760, %v239_v27 }
  0x7b   :  { %17127 = vst [vmem:[#allocation26_spill] sm:$0xff] %v13134_v18  ;;  %v13142_v13 = vand.u32 4294901760, %v236_v60  ;;  %v245_v17 = vsel %vm17082_vm1, %v159_v24, 0  ;;  %v503_v4 = vand.u32 4294901760, %v502_v14  ;;  %v17133_v55 = vand.u32 4294901760, %v13119_v6  ;;  %v162_v14 = vld [vmem:[#allocation7 + $0x68] sm:$0xff] }
  0x7c   :  { %v13140_v56 = vsub.f32 %v233_v7, %v13128_v40  ;;  %17130 = vst [vmem:[#allocation28_spill] sm:$0xff] %v13148_v47  ;;  %v13163_v58 = vsub.f32 %v239_v27, %v13148_v47  ;;  %v513_v24 = vand.u32 4294901760, %v512_v59  ;;  %v17135_v53 = vand.u32 4294901760, %v13125_v41 }
  0x7d   :  { %10526 = vmatmul.mubr.f32.gmra.mrb[12].mxu0 %v463_v12  ;;  %v160_v12 = vld [vmem:[#allocation7 + $0x58] sm:$0xff]  ;;  %v13155_v9 = vsub.f32 %v236_v60, %v13142_v13  ;;  %v522_v10 = vsub.f32 %v13119_v6, %v17133_v55  ;;  %v13168_v60 = vand.u32 4294901760, %v245_v17  ;;  %v17137_v62 = vand.u32 4294901760, %v13134_v18 }
  0x7e   :  { %17128 = vst [vmem:[#allocation27_spill] sm:$0xff] %v13140_v56  ;;  %10528 = vmatprep.mubr.f32.mxu0 %v473_v26  ;;  %v13157_v26 = vand.u32 4294901760, %v242_v43  ;;  %17134 = vst [vmem:[#allocation31_spill] sm:$0xff] %v13163_v58  ;;  %v532_v7 = vsub.f32 %v13125_v41, %v17135_v53  ;;  %v248_v0 = vsel %vm17082_vm1, %v160_v12, 0  ;;  %v17138_v27 = vand.u32 4294901760, %v13140_v56  ;;  %v163_v53 = vld [vmem:[#allocation7 + $0x70] sm:$0xff] }
  0x7f   :  { %17131 = vst [vmem:[#allocation29_spill] sm:$0xff] %v13155_v9  ;;  %17136 = vst [vmem:[#allocation32_spill] sm:$0xff] %v13168_v60  ;;  %v542_v55 = vsub.f32 %v13134_v18, %v17137_v62  ;;  %v523_v41 = vand.u32 4294901760, %v522_v10  ;;  %v13186_v62 = vsub.f32 %v245_v17, %v13168_v60  ;;  %v257_v59 = vsel %vm17082_vm1, %v163_v53, 0 }
  0x80   :  { %17132 = vst [vmem:[#allocation30_spill] sm:$0xff] %v13157_v26  ;;  %v13180_v6 = vsub.f32 %v242_v43, %v13157_v26  ;;  %v533_v61 = vand.u32 4294901760, %v532_v7  ;;  %v164_v43 = vld [vmem:[#allocation7 + $0x78] sm:$0xff]  ;;  %v17142_v10 = vand.u32 4294901760, %v13155_v9  ;;  %v17143_v7 = vand.u32 4294901760, %v13163_v58 }
  0x81   :  { %10529 = vmatmul.mubr.f32.gmra.mrb[14].mxu0 %v483_v15  ;;  %v251_v15 = vsel %vm17082_vm1, %v161_v16, 0  ;;  %v13183_v16 = vand.u32 4294901760, %v248_v0 }
  0x82   :  { %10531 = vmatprep.mubr.f32.mxu0 %v493_v2  ;;  %v552_v2 = vsub.f32 %v13140_v56, %v17138_v27  ;;  %17139 = vst [vmem:[#allocation33_spill] sm:$0xff] %v13180_v6  ;;  %v13188_v18 = vand.u32 4294901760, %v251_v15  ;;  %v254_v27 = vsel %vm17082_vm1, %v162_v14, 0  ;;  %v543_v56 = vand.u32 4294901760, %v542_v55 }
  0x83   :  { %17140 = vst [vmem:[#allocation34_spill] sm:$0xff] %v13183_v16  ;;  %v16715_v12 = vand.u32 4294901760, %v13180_v6  ;;  %v572_v17 = vsub.f32 %v13163_v58, %v17143_v7  ;;  %v13202_v14 = vand.u32 4294901760, %v254_v27  ;;  %v11807_v55 = vpack.c.bf16 %v12924_v33, %v12922_v32 }
  0x84   :  { %17141 = vst [vmem:[#allocation35_spill] sm:$0xff] %v13188_v18  ;;  %v553_v46 = vand.u32 4294901760, %v552_v2  ;;  %v13208_v53 = vsub.f32 %v251_v15, %v13188_v18 }
  0x85   :  { %10532 = vmatmul.mubr.f32.gmra.mrb[16].mxu0 %v503_v4  ;;  %v562_v4 = vsub.f32 %v13155_v9, %v17142_v10  ;;  %17145 = vst [vmem:[#allocation37_spill] sm:$0xff] %v13202_v14  ;;  %v13210_v10 = vand.u32 4294901760, %v257_v59  ;;  %11808 = vmatprep.subr.bf16.mxu0 %v11807_v55  ;;  %v573_v15 = vand.u32 4294901760, %v572_v17  ;;  %v17148_v9 = vand.u32 4294901760, %v13186_v62 }
  0x86   :  { %10534 = vmatprep.mubr.f32.mxu0 %v513_v24  ;;  %v13200_v24 = vsub.f32 %v248_v0, %v13183_v16  ;;  %v582_v0 = vsub.f32 %v13180_v6, %v16715_v12 }
  0x87   :  { %17146 = vst [vmem:[#allocation38_spill] sm:$0xff] %v13210_v10  ;;  %v563_v7 = vand.u32 4294901760, %v562_v4  ;;  %v16724_v4 = vand.u32 4294901760, %v13208_v53 }
  0x88   :  { %17144 = vst [vmem:[#allocation36_spill] sm:$0xff] %v13200_v24  ;;  %v16718_v58 = vand.u32 4294901760, %v13200_v24  ;;  %v583_v12 = vand.u32 4294901760, %v582_v0 }
  0x89   :  { %10535 = vmatmul.mubr.f32.gmra.mrb[18].mxu0 %v523_v41  ;;  %v260_v41 = vsel %vm17082_vm1, %v164_v43, 0  ;;  %v592_v43 = vsub.f32 %v13186_v62, %v17148_v9  ;;  %v612_v9 = vsub.f32 %v13208_v53, %v16724_v4  ;;  %v17166_v4 = vld [vmem:[#allocation31_spill] sm:$0xff] }
  0x8a   :  { %10537 = vmatprep.mubr.f32.mxu0 %v533_v61  ;;  %v13218_v61 = vsub.f32 %v254_v27, %v13202_v14  ;;  %v13220_v2 = vand.u32 4294901760, %v260_v41  ;;  %v602_v27 = vsub.f32 %v13200_v24, %v16718_v58 }
  0x8b   :  { %v593_v17 = vand.u32 4294901760, %v592_v43  ;;  %v613_v24 = vand.u32 4294901760, %v612_v9  ;;  %v17153_v9 = vld [vmem:[#allocation16_spill] sm:$0xff] }
  0x8c   :  { %17147 = vst [vmem:[#allocation39_spill] sm:$0xff] %v13220_v2  ;;  %v16723_v6 = vand.u32 4294901760, %v13218_v61 }
  0x8d   :  { %10538 = vmatmul.mubr.f32.gmra.mrb[20].mxu0 %v543_v56  ;;  %v13227_v56 = vsub.f32 %v257_v59, %v13210_v10 }
  0x8e   :  { %10540 = vmatprep.mubr.f32.mxu0 %v553_v46  ;;  %v13234_v46 = vsub.f32 %v260_v41, %v13220_v2  ;;  %v622_v0 = vsub.f32 %v13218_v61, %v16723_v6  ;;  %v17165_v6 = vld [vmem:[#allocation29_spill] sm:$0xff] }
  0x8f   :  { %v16722_v59 = vand.u32 4294901760, %v13227_v56 }
  0x90   :  { %v16721_v58 = vand.u32 4294901760, %v13234_v46 }
  0x91   :  { %10541 = vmatmul.mubr.f32.gmra.mrb[22].mxu0 %v563_v7  ;;  %v603_v7 = vand.u32 4294901760, %v602_v27  ;;  %v632_v41 = vsub.f32 %v13227_v56, %v16722_v59  ;;  %v17164_v59 = vld [vmem:[#allocation27_spill] sm:$0xff] }
  0x92   :  { %10543 = vmatprep.mubr.f32.mxu0 %v573_v15  ;;  %v623_v15 = vand.u32 4294901760, %v622_v0  ;;  %v642_v43 = vsub.f32 %v13234_v46, %v16721_v58  ;;  %v17155_v0 = vld [vmem:[#allocation18_spill] sm:$0xff] }
  0x93   :  { %v17163_v58 = vld [vmem:[#allocation26_spill] sm:$0xff] }
  0x94   :  { %v643_v27 = vand.u32 4294901760, %v642_v43  ;;  %v17158_v43 = vld [vmem:[#allocation21_spill] sm:$0xff] }
  0x95   :  { %10544 = vmatmul.mubr.f32.gmra.mrb[24].mxu0 %v583_v12  ;;  %v633_v12 = vand.u32 4294901760, %v632_v41  ;;  %v17156_v41 = vld [vmem:[#allocation19_spill] sm:$0xff] }
  0x96   :  { %10546 = vmatprep.mubr.f32.mxu0 %v593_v17 }
  0x99   :  { %10547 = vmatmul.mubr.f32.gmra.mrb[26].mxu0 %v603_v7  ;;  %v17154_v7 = vld [vmem:[#allocation17_spill] sm:$0xff] }
  0x9a   :  { %10549 = vmatprep.mubr.f32.mxu0 %v613_v24  ;;  %v17149_v24 = vand.u32 4294901760, %v12922_v32  ;;  %v17151_v32 = vld [vmem:[#allocation14_spill] sm:$0xff] }
  0x9d   :  { %10550 = vmatmul.mubr.f32.gmra.mrb[28].mxu0 %v623_v15  ;;  %v17157_v15 = vld [vmem:[#allocation20_spill] sm:$0xff] }
  0x9e   :  { %10552 = vmatprep.mubr.f32.mxu0 %v633_v12  ;;  %v17159_v12 = vld [vmem:[#allocation22_spill] sm:$0xff] }
  0xa1   :  { %10553 = vmatmul.mubr.f32.gmra.mrb[30].mxu0 %v643_v27  ;;  %v17160_v27 = vld [vmem:[#allocation23_spill] sm:$0xff] }
  0xa2   :  { %10559 = vmatprep.mubr.f32.mxu0 %v12913_v25 }
  0xa5   :  { %10560 = vmatmul.mubr.f32.vlgmr.msra.gmra.mrb[0].mxu0 %v12920_v31 }
  0xa6   :  { %11810 = vmatpush3.bf16.msra.mxu0 %v11807_v55  ;;  %10562 = vmatprep.mubr.f32.mxu0 %v12929_v36  ;;  %v17150_v55 = vand.u32 4294901760, %v12924_v33  ;;  %v17152_v33 = vld [vmem:[#allocation15_spill] sm:$0xff] }
  0xa7   :  { %11812 = vmatprep.subr.bf16.mxu0 %v12918_v30 }
  0xa8   :  { %v11815_v17 = vpack.c.bf16 %v17150_v55, %v17149_v24  ;;  %v17161_v24 = vld [vmem:[#allocation24_spill] sm:$0xff]  ;;  %v17162_v55 = vld [vmem:[#allocation25_spill] sm:$0xff] }
  0xa9   :  { %10563 = vmatmul.mubr.f32.gmra.mrb[2].mxu0 %v12931_v37 }
  0xaa   :  { %10565 = vmatprep.mubr.f32.mxu0 %v12940_v42 }
  0xad   :  { %10566 = vmatmul.mubr.f32.gmra.mrb[4].mxu0 %v12966_v54 }
  0xae   :  { %10568 = vmatprep.mubr.f32.mxu0 %v12986_v11 }
  0xb1   :  { %10569 = vmatmul.mubr.f32.gmra.mrb[6].mxu0 %v12997_v20 }
  0xb2   :  { %10571 = vmatprep.mubr.f32.mxu0 %v12999_v21 }
  0xb5   :  { %10572 = vmatmul.mubr.f32.gmra.mrb[8].mxu0 %v13001_v22 }
  0xb6   :  { %10574 = vmatprep.mubr.f32.mxu0 %v13016_v48 }
  0xb9   :  { %10575 = vmatmul.mubr.f32.gmra.mrb[10].mxu0 %v13018_v49 }
  0xba   :  { %10577 = vmatprep.mubr.f32.mxu0 %v13020_v51 }
  0xbd   :  { %10578 = vmatmul.mubr.f32.gmra.mrb[12].mxu0 %v13044_v5 }
  0xbe   :  { %10580 = vmatprep.mubr.f32.mxu0 %v13066_v28 }
  0xc1   :  { %10581 = vmatmul.mubr.f32.gmra.mrb[14].mxu0 %v13070_v8 }
  0xc2   :  { %10583 = vmatprep.mubr.f32.mxu0 %v13075_v57 }
  0xc5   :  { %10584 = vmatmul.mubr.f32.gmra.mrb[16].mxu0 %v13081_v29 }
  0xc6   :  { %10586 = vmatprep.mubr.f32.mxu0 %v13092_v23 }
  0xc9   :  { %10587 = vmatmul.mubr.f32.gmra.mrb[18].mxu0 %v13098_v1 }
  0xca   :  { %10589 = vmatprep.mubr.f32.mxu0 %v13108_v3 }
  0xcd   :  { %10590 = vmatmul.mubr.f32.gmra.mrb[20].mxu0 %v13121_v52 }
  0xce   :  { %10592 = vmatprep.mubr.f32.mxu0 %v13128_v40 }
  0xd1   :  { %10593 = vmatmul.mubr.f32.gmra.mrb[22].mxu0 %v13142_v13 }
  0xd2   :  { %10595 = vmatprep.mubr.f32.mxu0 %v13148_v47  ;;  %v17174_v47 = vand.u32 4294901760, %v12979_v63 }
  0xd5   :  { %10596 = vmatmul.mubr.f32.gmra.mrb[24].mxu0 %v13157_v26  ;;  %v17173_v26 = vand.u32 4294901760, %v12959_v50 }
  0xd6   :  { %10598 = vmatprep.mubr.f32.mxu0 %v13168_v60  ;;  %v17172_v60 = vand.u32 4294901760, %v12948_v45 }
  0xd9   :  { %10599 = vmatmul.mubr.f32.gmra.mrb[26].mxu0 %v13183_v16  ;;  %v17171_v16 = vand.u32 4294901760, %v12945_v44 }
  0xda   :  { %10601 = vmatprep.mubr.f32.mxu0 %v13188_v18  ;;  %v17170_v18 = vand.u32 4294901760, %v12936_v39 }
  0xdd   :  { %10602 = vmatmul.mubr.f32.gmra.mrb[28].mxu0 %v13202_v14  ;;  %v17169_v14 = vand.u32 4294901760, %v12927_v35 }
  0xde   :  { %10604 = vmatprep.mubr.f32.mxu0 %v13210_v10  ;;  %v17168_v10 = vld [vmem:[#allocation36_spill] sm:$0xff] }
  0xe1   :  { %10605 = vmatmul.mubr.f32.gmra.mrb[30].mxu0 %v13220_v2  ;;  %v17167_v2 = vld [vmem:[#allocation33_spill] sm:$0xff] }
  0xe2   :  { %10611 = vmatprep.mubr.f32.mxu0 %v12927_v35  ;;  %v17175_v35 = vand.u32 4294901760, %v12995_v19 }
  0xe5   :  { %10612 = vmatmul.mubr.f32.vlgmr.msra.gmra.mrb[0].mxu0 %v12936_v39  ;;  %v17176_v39 = vand.u32 4294901760, %v13008_v34 }
  0xe6   :  { %11814 = vmatpush3.bf16.msra.mxu0 %v12918_v30  ;;  %10614 = vmatprep.mubr.f32.mxu0 %v12945_v44  ;;  %v17177_v44 = vand.u32 4294901760, %v13011_v38 }
  0xe7   :  { %11816 = vmatprep.subr.bf16.mxu0 %v11815_v17 }
  0xe9   :  { %10615 = vmatmul.mubr.f32.gmra.mrb[2].mxu0 %v12948_v45  ;;  %v17179_v45 = vand.u32 4294901760, %v17152_v33 }
  0xea   :  { %10617 = vmatprep.mubr.f32.mxu0 %v12959_v50  ;;  %v17180_v50 = vand.u32 4294901760, %v17153_v9 }
  0xed   :  { %10618 = vmatmul.mubr.f32.gmra.mrb[4].mxu0 %v12979_v63  ;;  %v17181_v63 = vand.u32 4294901760, %v17154_v7 }
  0xee   :  { %10620 = vmatprep.mubr.f32.mxu0 %v12995_v19  ;;  %v17182_v19 = vand.u32 4294901760, %v17155_v0 }
  0xf1   :  { %10621 = vmatmul.mubr.f32.gmra.mrb[6].mxu0 %v13008_v34  ;;  %v17183_v34 = vand.u32 4294901760, %v17156_v41 }
  0xf2   :  { %10623 = vmatprep.mubr.f32.mxu0 %v13011_v38  ;;  %v17184_v38 = vand.u32 4294901760, %v17157_v15 }
  0xf5   :  { %10624 = vmatmul.mubr.f32.gmra.mrb[8].mxu0 %v17151_v32 }
  0xf6   :  { %10626 = vmatprep.mubr.f32.mxu0 %v17152_v33  ;;  %v17192_v33 = vand.u32 4294901760, %v17165_v6 }
  0xf9   :  { %10627 = vmatmul.mubr.f32.gmra.mrb[10].mxu0 %v17153_v9  ;;  %v17193_v9 = vand.u32 4294901760, %v17166_v4 }
  0xfa   :  { %10629 = vmatprep.mubr.f32.mxu0 %v17154_v7  ;;  %v17194_v7 = vand.u32 4294901760, %v17167_v2 }
  0xfd   :  { %10630 = vmatmul.mubr.f32.gmra.mrb[12].mxu0 %v17155_v0  ;;  %v17195_v0 = vand.u32 4294901760, %v13186_v62 }
  0xfe   :  { %10632 = vmatprep.mubr.f32.mxu0 %v17156_v41  ;;  %v17196_v41 = vand.u32 4294901760, %v17168_v10 }
 0x101   :  { %10633 = vmatmul.mubr.f32.gmra.mrb[14].mxu0 %v17157_v15 }
 0x102   :  { %10635 = vmatprep.mubr.f32.mxu0 %v17158_v43 }
 0x105   :  { %10636 = vmatmul.mubr.f32.gmra.mrb[16].mxu0 %v17159_v12 }
 0x106   :  { %10638 = vmatprep.mubr.f32.mxu0 %v17160_v27 }
 0x109   :  { %10639 = vmatmul.mubr.f32.gmra.mrb[18].mxu0 %v17161_v24 }
 0x10a   :  { %10641 = vmatprep.mubr.f32.mxu0 %v17162_v55 }
 0x10d   :  { %10642 = vmatmul.mubr.f32.gmra.mrb[20].mxu0 %v17163_v58 }
 0x10e   :  { %10644 = vmatprep.mubr.f32.mxu0 %v17164_v59 }
 0x111   :  { %10645 = vmatmul.mubr.f32.gmra.mrb[22].mxu0 %v17165_v6  ;;  %v17199_v6 = vand.u32 4294901760, %v13227_v56 }
 0x112   :  { %10647 = vmatprep.mubr.f32.mxu0 %v17166_v4  ;;  %v17200_v4 = vand.u32 4294901760, %v13234_v46 }
 0x115   :  { %10648 = vmatmul.mubr.f32.gmra.mrb[24].mxu0 %v17167_v2  ;;  %v17203_v2 = vld [vmem:[#allocation32_spill] sm:$0xff] }
 0x116   :  { %10650 = vmatprep.mubr.f32.mxu0 %v13186_v62  ;;  %v17202_v62 = vld [vmem:[#allocation30_spill] sm:$0xff] }
 0x119   :  { %10651 = vmatmul.mubr.f32.gmra.mrb[26].mxu0 %v17168_v10  ;;  %v17205_v10 = vld [vmem:[#allocation35_spill] sm:$0xff] }
 0x11a   :  { %10653 = vmatprep.mubr.f32.mxu0 %v13208_v53 }
 0x11d   :  { %10654 = vmatmul.mubr.f32.gmra.mrb[28].mxu0 %v13218_v61 }
 0x11e   :  { %10656 = vmatprep.mubr.f32.mxu0 %v13227_v56  ;;  %v17207_v56 = vld [vmem:[#allocation38_spill] sm:$0xff] }
 0x121   :  { %10657 = vmatmul.mubr.f32.gmra.mrb[30].mxu0 %v13234_v46  ;;  %v17208_v46 = vld [vmem:[#allocation39_spill] sm:$0xff] }
 0x122   :  { %10663 = vmatprep.mubr.f32.mxu0 %v17169_v14  ;;  %v17189_v14 = vand.u32 4294901760, %v17162_v55 }
 0x125   :  { %10664 = vmatmul.mubr.f32.vlgmr.msra.gmra.mrb[0].mxu0 %v17170_v18  ;;  %v17178_v18 = vand.u32 4294901760, %v17151_v32  ;;  %v17191_v32 = vand.u32 4294901760, %v17164_v59  ;;  %v17198_v59 = vand.u32 4294901760, %v13218_v61  ;;  %v17206_v61 = vld [vmem:[#allocation37_spill] sm:$0xff] }
 0x126   :  { %11818 = vmatpush3.bf16.msra.mxu0 %v11815_v17  ;;  %10666 = vmatprep.mubr.f32.mxu0 %v17171_v16  ;;  %v17188_v16 = vand.u32 4294901760, %v17161_v24  ;;  %v17190_v17 = vand.u32 4294901760, %v17163_v58  ;;  %v17197_v58 = vand.u32 4294901760, %v13208_v53  ;;  %v17204_v53 = vld [vmem:[#allocation34_spill] sm:$0xff] }
 0x127   :  { %11820 = vmatprep.subr.bf16.mxu0 %v12918_v30 }
 0x129   :  { %10667 = vmatmul.mubr.f32.gmra.mrb[2].mxu0 %v17172_v60  ;;  %v17187_v60 = vand.u32 4294901760, %v17160_v27 }
 0x12a   :  { %10669 = vmatprep.mubr.f32.mxu0 %v17173_v26  ;;  %v17186_v26 = vand.u32 4294901760, %v17159_v12 }
 0x12d   :  { %10670 = vmatmul.mubr.f32.gmra.mrb[4].mxu0 %v17174_v47  ;;  %v17185_v47 = vand.u32 4294901760, %v17158_v43 }
 0x12e   :  { %10672 = vmatprep.mubr.f32.mxu0 %v17175_v35 }
 0x131   :  { %10673 = vmatmul.mubr.f32.gmra.mrb[6].mxu0 %v17176_v39 }
 0x132   :  { %10675 = vmatprep.mubr.f32.mxu0 %v17177_v44 }
 0x135   :  { %10676 = vmatmul.mubr.f32.gmra.mrb[8].mxu0 %v17178_v18 }
 0x136   :  { %10678 = vmatprep.mubr.f32.mxu0 %v17179_v45 }
 0x139   :  { %10679 = vmatmul.mubr.f32.gmra.mrb[10].mxu0 %v17180_v50 }
 0x13a   :  { %10681 = vmatprep.mubr.f32.mxu0 %v17181_v63 }
 0x13d   :  { %10682 = vmatmul.mubr.f32.gmra.mrb[12].mxu0 %v17182_v19 }
 0x13e   :  { %10684 = vmatprep.mubr.f32.mxu0 %v17183_v34 }
 0x141   :  { %10685 = vmatmul.mubr.f32.gmra.mrb[14].mxu0 %v17184_v38 }
 0x142   :  { %10687 = vmatprep.mubr.f32.mxu0 %v17185_v47 }
 0x145   :  { %10688 = vmatmul.mubr.f32.gmra.mrb[16].mxu0 %v17186_v26 }
 0x146   :  { %10690 = vmatprep.mubr.f32.mxu0 %v17187_v60 }
 0x149   :  { %10691 = vmatmul.mubr.f32.gmra.mrb[18].mxu0 %v17188_v16 }
 0x14a   :  { %10693 = vmatprep.mubr.f32.mxu0 %v17189_v14 }
 0x14d   :  { %10694 = vmatmul.mubr.f32.gmra.mrb[20].mxu0 %v17190_v17 }
 0x14e   :  { %10696 = vmatprep.mubr.f32.mxu0 %v17191_v32 }
 0x151   :  { %10697 = vmatmul.mubr.f32.gmra.mrb[22].mxu0 %v17192_v33 }
 0x152   :  { %10699 = vmatprep.mubr.f32.mxu0 %v17193_v9 }
 0x155   :  { %10700 = vmatmul.mubr.f32.gmra.mrb[24].mxu0 %v17194_v7 }
 0x156   :  { %10702 = vmatprep.mubr.f32.mxu0 %v17195_v0 }
 0x159   :  { %10703 = vmatmul.mubr.f32.gmra.mrb[26].mxu0 %v17196_v41 }
 0x15a   :  { %10705 = vmatprep.mubr.f32.mxu0 %v17197_v58 }
 0x15d   :  { %10706 = vmatmul.mubr.f32.gmra.mrb[28].mxu0 %v17198_v59 }
 0x15e   :  { %10708 = vmatprep.mubr.f32.mxu0 %v17199_v6 }
 0x161   :  { %10709 = vmatmul.mubr.f32.gmra.mrb[30].mxu0 %v17200_v4 }
 0x162   :  { %10715 = vmatprep.mubr.f32.mxu0 %v12913_v25 }
 0x165   :  { %10716 = vmatmul.mubr.f32.vlgmr.msra.gmra.mrb[0].mxu0 %v12920_v31 }
 0x166   :  { %11822 = vmatpush3.bf16.msra.mxu0 %v12918_v30  ;;  %10718 = vmatprep.mubr.f32.mxu0 %v12929_v36  ;;  %v17201_v30 = vld [vmem:[#allocation28_spill] sm:$0xff] }
 0x169   :  { %10719 = vmatmul.mubr.f32.gmra.mrb[2].mxu0 %v12931_v37 }
 0x16a   :  { %10721 = vmatprep.mubr.f32.mxu0 %v12940_v42 }
 0x16d   :  { %10722 = vmatmul.mubr.f32.gmra.mrb[4].mxu0 %v12966_v54 }
 0x16e   :  { %10724 = vmatprep.mubr.f32.mxu0 %v12986_v11 }
 0x171   :  { %10725 = vmatmul.mubr.f32.gmra.mrb[6].mxu0 %v12997_v20 }
 0x172   :  { %10727 = vmatprep.mubr.f32.mxu0 %v12999_v21 }
 0x175   :  { %10728 = vmatmul.mubr.f32.gmra.mrb[8].mxu0 %v13001_v22 }
 0x176   :  { %10730 = vmatprep.mubr.f32.mxu0 %v13016_v48 }
 0x179   :  { %10731 = vmatmul.mubr.f32.gmra.mrb[10].mxu0 %v13018_v49 }
 0x17a   :  { %10733 = vmatprep.mubr.f32.mxu0 %v13020_v51 }
 0x17d   :  { %10734 = vmatmul.mubr.f32.gmra.mrb[12].mxu0 %v13044_v5 }
 0x17e   :  { %10736 = vmatprep.mubr.f32.mxu0 %v13066_v28 }
 0x181   :  { %10737 = vmatmul.mubr.f32.gmra.mrb[14].mxu0 %v13070_v8 }
 0x182   :  { %10739 = vmatprep.mubr.f32.mxu0 %v13075_v57 }
 0x185   :  { %10740 = vmatmul.mubr.f32.gmra.mrb[16].mxu0 %v13081_v29 }
 0x186   :  { %10742 = vmatprep.mubr.f32.mxu0 %v13092_v23 }
 0x189   :  { %10743 = vmatmul.mubr.f32.gmra.mrb[18].mxu0 %v13098_v1 }
 0x18a   :  { %10745 = vmatprep.mubr.f32.mxu0 %v13108_v3 }
 0x18d   :  { %10746 = vmatmul.mubr.f32.gmra.mrb[20].mxu0 %v13121_v52 }
 0x18e   :  { %10748 = vmatprep.mubr.f32.mxu0 %v13128_v40 }
 0x191   :  { %10749 = vmatmul.mubr.f32.gmra.mrb[22].mxu0 %v13142_v13 }
 0x192   :  { %10751 = vmatprep.mubr.f32.mxu0 %v17201_v30 }
 0x195   :  { %10752 = vmatmul.mubr.f32.gmra.mrb[24].mxu0 %v17202_v62 }
 0x196   :  { %10754 = vmatprep.mubr.f32.mxu0 %v17203_v2 }
 0x199   :  { %10755 = vmatmul.mubr.f32.gmra.mrb[26].mxu0 %v17204_v53 }
 0x19a   :  { %10757 = vmatprep.mubr.f32.mxu0 %v17205_v10 }
 0x19d   :  { %10758 = vmatmul.mubr.f32.gmra.mrb[28].mxu0 %v17206_v61 }
 0x19e   :  { %10760 = vmatprep.mubr.f32.mxu0 %v17207_v56 }
 0x1a1   :  { %10761 = vmatmul.mubr.f32.gmra.mrb[30].mxu0 %v17208_v46 }
 0x1a2   :  { %10767 = vmatprep.mubr.f32.mxu0 %v12913_v25 }
 0x1a5   :  { %10768 = vmatmul.mubr.f32.vlgmr.msra.gmra.mrb[0].mxu0 %v12920_v31 }
 0x1a6   :  { %10770 = vmatprep.mubr.f32.mxu0 %v12929_v36 }
 0x1a9   :  { %10771 = vmatmul.mubr.f32.gmra.mrb[2].mxu0 %v12931_v37 }
 0x1aa   :  { %10773 = vmatprep.mubr.f32.mxu0 %v12940_v42 }
 0x1ad   :  { %10774 = vmatmul.mubr.f32.gmra.mrb[4].mxu0 %v12966_v54  ;;  %v114_v54 = vld [vmem:[%s16658_s4 + $0x8] sm:$0xff] }
 0x1ae   :  { %10776 = vmatprep.mubr.f32.mxu0 %v12986_v11 }
 0x1b1   :  { %10777 = vmatmul.mubr.f32.gmra.mrb[6].mxu0 %v12997_v20  ;;  %v2762_v20 = vand.u32 4294901760, %v114_v54 }
 0x1b2   :  { %10779 = vmatprep.mubr.f32.mxu0 %v12999_v21 }
 0x1b5   :  { %10780 = vmatmul.mubr.f32.gmra.mrb[8].mxu0 %v13001_v22 }
 0x1b6   :  { %10782 = vmatprep.mubr.f32.mxu0 %v13016_v48 }
 0x1b9   :  { %10783 = vmatmul.mubr.f32.gmra.mrb[10].mxu0 %v13018_v49 }
 0x1ba   :  { %10785 = vmatprep.mubr.f32.mxu0 %v13020_v51 }
 0x1bd   :  { %10786 = vmatmul.mubr.f32.gmra.mrb[12].mxu0 %v13044_v5 }
 0x1be   :  { %10788 = vmatprep.mubr.f32.mxu0 %v13066_v28 }
 0x1c1   :  { %10789 = vmatmul.mubr.f32.gmra.mrb[14].mxu0 %v13070_v8 }
 0x1c2   :  { %10791 = vmatprep.mubr.f32.mxu0 %v13075_v57 }
 0x1c5   :  { %10792 = vmatmul.mubr.f32.gmra.mrb[16].mxu0 %v13081_v29 }
 0x1c6   :  { %10794 = vmatprep.mubr.f32.mxu0 %v13092_v23 }
 0x1c9   :  { %10795 = vmatmul.mubr.f32.gmra.mrb[18].mxu0 %v13098_v1 }
 0x1ca   :  { %10797 = vmatprep.mubr.f32.mxu0 %v13108_v3 }
 0x1cd   :  { %10798 = vmatmul.mubr.f32.gmra.mrb[20].mxu0 %v13121_v52  ;;  %v113_v52 = vld [vmem:[%s16658_s4] sm:$0xff] }
 0x1ce   :  { %10800 = vmatprep.mubr.f32.mxu0 %v13128_v40  ;;  %v2759_v11 = vand.u32 4294901760, %v113_v52 }
 0x1d0   :  { %v13456_v22 = vpack.c.bf16 %v2762_v20, %v2759_v11  ;;  %v13460_v28 = vsub.f32 %v113_v52, %v2759_v11 }
 0x1d1   :  { %10801 = vmatmul.mubr.f32.gmra.mrb[22].mxu0 %v13142_v13  ;;  %v13462_v13 = vsub.f32 %v114_v54, %v2762_v20 }
 0x1d2   :  { %10803 = vmatprep.mubr.f32.mxu0 %v17201_v30  ;;  %11824 = vmatprep.subr.bf16.mxu1 %v13456_v22  ;;  %17209 = vst [vmem:[#allocation14_spill] sm:$0xff] %v13460_v28  ;;  %v16760_v1 = vand.u32 4294901760, %v13460_v28 }
 0x1d3   :  { %11826 = vmatpush3.bf16.msra.mxu1 %v13456_v22  ;;  %17210 = vst [vmem:[#allocation15_spill] sm:$0xff] %v13462_v13  ;;  %v16759_v3 = vand.u32 4294901760, %v13462_v13 }
 0x1d4   :  { %v3469_v43 = vsub.f32 %v13460_v28, %v16760_v1 }
 0x1d5   :  { %10804 = vmatmul.mubr.f32.gmra.mrb[24].mxu0 %v17202_v62  ;;  %v3476_v12 = vsub.f32 %v13462_v13, %v16759_v3 }
 0x1d6   :  { %10806 = vmatprep.mubr.f32.mxu0 %v17203_v2  ;;  %v3470_v24 = vand.u32 4294901760, %v3469_v43 }
 0x1d7   :  { %v3477_v55 = vand.u32 4294901760, %v3476_v12 }
 0x1d9   :  { %10807 = vmatmul.mubr.f32.gmra.mrb[26].mxu0 %v17204_v53  ;;  %v13472_v39 = vpack.c.bf16 %v3477_v55, %v3470_v24 }
 0x1da   :  { %10809 = vmatprep.mubr.f32.mxu0 %v17205_v10 }
 0x1db   :  { %11828 = vmatprep.subr.bf16.mxu1 %v13472_v39 }
 0x1dd   :  { %10810 = vmatmul.mubr.f32.gmra.mrb[28].mxu0 %v17206_v61 }
 0x1de   :  { %10812 = vmatprep.mubr.f32.mxu0 %v17207_v56 }
 0x1e1   :  { %10813 = vmatmul.mubr.f32.gmra.mrb[30].mxu0 %v17208_v46 }
 0x278   :  { %v10769_v25 = vpop.f32.mrb[0].mxu0 }
 0x279   :  { %v1864_v31 = vpop.f32.mrb[1].mxu0 }
 0x27a   :  { %2054 = vxpose.xlu0.b32.start [1/2] (short) (narrow) %v1864_v31, 32 }
 0x27c   :  { %v10772_v36 = vpop.f32.mrb[2].mxu0 }
 0x27d   :  { %v1876_v37 = vpop.f32.mrb[3].mxu0 }
 0x27e   :  { %2055 = vxpose.xlu0.b32.end [2/2] (short) (narrow) %v10769_v25, 32  ;;  %2086 = vxpose.xlu1.b32.start [1/2] (short) (narrow) %v1876_v37, 32 }
 0x280   :  { %v10775_v40 = vpop.f32.mrb[4].mxu0 }
 0x281   :  { %v1888_v42 = vpop.f32.mrb[5].mxu0 }
 0x282   :  { %2087 = vxpose.xlu1.b32.end [2/2] (short) (narrow) %v10772_v36, 32 }
 0x284   :  { %v10778_v21 = vpop.f32.mrb[6].mxu0 }
 0x285   :  { %v1900_v29 = vpop.f32.mrb[7].mxu0 }
 0x287   :  { %2118 = vxpose.xlu0.b32.start [1/2] (short) (narrow) %v1888_v42, 32 }
 0x288   :  { %v10781_v48 = vpop.f32.mrb[8].mxu0 }
 0x289   :  { %v1912_v49 = vpop.f32.mrb[9].mxu0 }
 0x28b   :  { %2119 = vxpose.xlu0.b32.end [2/2] (short) (narrow) %v10775_v40, 32  ;;  %2150 = vxpose.xlu1.b32.start [1/2] (short) (narrow) %v1900_v29, 32 }
 0x28c   :  { %v10784_v51 = vpop.f32.mrb[10].mxu0 }
 0x28d   :  { %v1924_v57 = vpop.f32.mrb[11].mxu0 }
 0x28f   :  { %2151 = vxpose.xlu1.b32.end [2/2] (short) (narrow) %v10778_v21, 32 }
 0x290   :  { %v10787_v5 = vpop.f32.mrb[12].mxu0 }
 0x291   :  { %v1936_v8 = vpop.f32.mrb[13].mxu0 }
 0x294   :  { %2182 = vxpose.xlu0.b32.start [1/2] (short) (narrow) %v1912_v49, 32  ;;  %v10790_v23 = vpop.f32.mrb[14].mxu0 }
 0x295   :  { %v1948_v15 = vpop.f32.mrb[15].mxu0 }
 0x298   :  { %2183 = vxpose.xlu0.b32.end [2/2] (short) (narrow) %v10781_v48, 32  ;;  %2214 = vxpose.xlu1.b32.start [1/2] (short) (narrow) %v1924_v57, 32  ;;  %v10793_v27 = vpop.f32.mrb[16].mxu0 }
 0x299   :  { %v1960_v35 = vpop.f32.mrb[17].mxu0 }
 0x29c   :  { %2215 = vxpose.xlu1.b32.end [2/2] (short) (narrow) %v10784_v51, 32  ;;  %v10796_v44 = vpop.f32.mrb[18].mxu0 }
 0x29d   :  { %v1972_v18 = vpop.f32.mrb[19].mxu0 }
 0x2a0   :  { %v10799_v45 = vpop.f32.mrb[20].mxu0 }
 0x2a1   :  { %2246 = vxpose.xlu0.b32.start [1/2] (short) (narrow) %v1936_v8, 32  ;;  %v1984_v50 = vpop.f32.mrb[21].mxu0 }
 0x2a4   :  { %v10802_v63 = vpop.f32.mrb[22].mxu0 }
 0x2a5   :  { %2247 = vxpose.xlu0.b32.end [2/2] (short) (narrow) %v10787_v5, 32  ;;  %2278 = vxpose.xlu1.b32.start [1/2] (short) (narrow) %v1948_v15, 32  ;;  %v1996_v19 = vpop.f32.mrb[23].mxu0 }
 0x2a8   :  { %v10805_v34 = vpop.f32.mrb[24].mxu0 }
 0x2a9   :  { %2279 = vxpose.xlu1.b32.end [2/2] (short) (narrow) %v10790_v23, 32  ;;  %v2008_v38 = vpop.f32.mrb[25].mxu0 }
 0x2ac   :  { %v10808_v47 = vpop.f32.mrb[26].mxu0 }
 0x2ad   :  { %v2020_v26 = vpop.f32.mrb[27].mxu0 }
 0x2ae   :  { %2310 = vxpose.xlu0.b32.start [1/2] (short) (narrow) %v1960_v35, 32 }
 0x2b0   :  { %v10811_v60 = vpop.f32.mrb[28].mxu0 }
 0x2b1   :  { %v2032_v16 = vpop.f32.mrb[29].mxu0 }
 0x2b2   :  { %2311 = vxpose.xlu0.b32.end [2/2] (short) (narrow) %v10793_v27, 32  ;;  %2342 = vxpose.xlu1.b32.start [1/2] (short) (narrow) %v1972_v18, 32 }
 0x2b4   :  { %v10814_v14 = vpop.f32.mrb[30].mxu0 }
 0x2b5   :  { %v2044_v17 = vpop.f32.mrb[31].mxu0 }
 0x2b6   :  { %2343 = vxpose.xlu1.b32.end [2/2] (short) (narrow) %v10796_v44, 32 }
 0x2bb   :  { %2374 = vxpose.xlu0.b32.start [1/2] (short) (narrow) %v1984_v50, 32 }
 0x2bf   :  { %2375 = vxpose.xlu0.b32.end [2/2] (short) (narrow) %v10799_v45, 32  ;;  %2406 = vxpose.xlu1.b32.start [1/2] (short) (narrow) %v1996_v19, 32 }
 0x2c3   :  { %2407 = vxpose.xlu1.b32.end [2/2] (short) (narrow) %v10802_v63, 32 }
 0x2c8   :  { %2438 = vxpose.xlu0.b32.start [1/2] (short) (narrow) %v2008_v38, 32 }
 0x2cc   :  { %2439 = vxpose.xlu0.b32.end [2/2] (short) (narrow) %v10805_v34, 32  ;;  %2470 = vxpose.xlu1.b32.start [1/2] (short) (narrow) %v2020_v26, 32 }
 0x2d0   :  { %2471 = vxpose.xlu1.b32.end [2/2] (short) (narrow) %v10808_v47, 32  ;;  %v13554_v47 = vpack.c.bf16 %v13462_v13, %v13460_v28 }
 0x2d5   :  { %2502 = vxpose.xlu0.b32.start [1/2] (short) (narrow) %v2032_v16, 32 }
 0x2d9   :  { %2503 = vxpose.xlu0.b32.end [2/2] (short) (narrow) %v10811_v60, 32  ;;  %2534 = vxpose.xlu1.b32.start [1/2] (short) (narrow) %v2044_v17, 32 }
 0x2dd   :  { %2535 = vxpose.xlu1.b32.end [2/2] (short) (narrow) %v10814_v14, 32 }
 0x2fa   :  { %v2070_v32 = vpop.trf.xlu0 }
 0x2fb   :  { %v2567_v33 = vsel %vm17082_vm1, %v2070_v32, 0 }
 0x2fc   :  { %v13476_v9 = vand.u32 4294901760, %v2567_v33 }
 0x2fe   :  { %17211 = vst [vmem:[#allocation16_spill] sm:$0xff] %v13476_v9  ;;  %v13479_v7 = vsub.f32 %v2567_v33, %v13476_v9  ;;  %v2071_v0 = vpop.trf.xlu0  ;;  %v2102_v41 = vpop.trf.xlu1 }
 0x2ff   :  { %v2570_v58 = vsel %vm17082_vm1, %v2071_v0, 0  ;;  %v2579_v59 = vsel %vm17082_vm1, %v2102_v41, 0 }
 0x300   :  { %17212 = vst [vmem:[#allocation17_spill] sm:$0xff] %v13479_v7  ;;  %v13483_v6 = vand.u32 4294901760, %v2570_v58  ;;  %v16757_v4 = vand.u32 4294901760, %v13479_v7  ;;  %v13486_v30 = vand.u32 4294901760, %v2579_v59 }
 0x302   :  { %17213 = vst [vmem:[#allocation18_spill] sm:$0xff] %v13483_v6  ;;  %17214 = vst [vmem:[#allocation19_spill] sm:$0xff] %v13486_v30  ;;  %v13489_v62 = vsub.f32 %v2570_v58, %v13483_v6  ;;  %v2072_v2 = vpop.trf.xlu0  ;;  %v2103_v53 = vpop.trf.xlu1  ;;  %v2828_v10 = vsub.f32 %v13479_v7, %v16757_v4  ;;  %v13502_v37 = vsub.f32 %v2579_v59, %v13486_v30 }
 0x303   :  { %v2573_v61 = vsel %vm17082_vm1, %v2072_v2, 0  ;;  %v2582_v56 = vsel %vm17082_vm1, %v2103_v53, 0 }
 0x304   :  { %17215 = vst [vmem:[#allocation20_spill] sm:$0xff] %v13489_v62  ;;  %v13496_v46 = vand.u32 4294901760, %v2573_v61  ;;  %v13498_v25 = vand.u32 4294901760, %v2582_v56  ;;  %v2829_v31 = vand.u32 4294901760, %v2828_v10  ;;  %v16756_v36 = vand.u32 4294901760, %v13489_v62  ;;  %17218 = vst [vmem:[#allocation23_spill] sm:$0xff] %v13502_v37 }
 0x305   :  { %v16751_v57 = vand.u32 4294901760, %v13502_v37 }
 0x306   :  { %17216 = vst [vmem:[#allocation21_spill] sm:$0xff] %v13496_v46  ;;  %17217 = vst [vmem:[#allocation22_spill] sm:$0xff] %v13498_v25  ;;  %v13505_v40 = vsub.f32 %v2573_v61, %v13496_v46  ;;  %10819 = vmatprep.mubr.f32.mxu1 %v2829_v31  ;;  %v2073_v42 = vpop.trf.xlu0  ;;  %v2104_v52 = vpop.trf.xlu1  ;;  %v2838_v54 = vsub.f32 %v13489_v62, %v16756_v36  ;;  %v13511_v11 = vsub.f32 %v2582_v56, %v13498_v25 }
 0x307   :  { %v2576_v20 = vsel %vm17082_vm1, %v2073_v42, 0  ;;  %v2585_v21 = vsel %vm17082_vm1, %v2104_v52, 0  ;;  %v2868_v45 = vsub.f32 %v13502_v37, %v16751_v57 }
 0x308   :  { %17219 = vst [vmem:[#allocation24_spill] sm:$0xff] %v13505_v40  ;;  %17220 = vst [vmem:[#allocation25_spill] sm:$0xff] %v13511_v11  ;;  %v13515_v29 = vand.u32 4294901760, %v2576_v20  ;;  %v13517_v48 = vand.u32 4294901760, %v2585_v21  ;;  %v2839_v49 = vand.u32 4294901760, %v2838_v54  ;;  %v16754_v51 = vand.u32 4294901760, %v13505_v40 }
 0x309   :  { %v16749_v24 = vand.u32 4294901760, %v13511_v11  ;;  %v2869_v0 = vand.u32 4294901760, %v2868_v45 }
 0x30a   :  { %17221 = vst [vmem:[#allocation26_spill] sm:$0xff] %v13515_v29  ;;  %17222 = vst [vmem:[#allocation27_spill] sm:$0xff] %v13517_v48  ;;  %v13522_v5 = vsub.f32 %v2576_v20, %v13515_v29  ;;  %v13525_v8 = vsub.f32 %v2585_v21, %v13517_v48  ;;  %v2134_v23 = vpop.trf.xlu0  ;;  %10820 = vmatmul.mubr.f32.vlgmr.msra.gmra.mrb[0].mxu1 %v2839_v49  ;;  %v2105_v15 = vpop.trf.xlu1  ;;  %v2848_v43 = vsub.f32 %v13505_v40, %v16754_v51 }
 0x30b   :  { %v2591_v12 = vsel %vm17082_vm1, %v2134_v23, 0  ;;  %v2588_v27 = vsel %vm17082_vm1, %v2105_v15, 0  ;;  %11830 = vmatpush3.bf16.msra.mxu1 %v13472_v39  ;;  %v2878_v16 = vsub.f32 %v13511_v11, %v16749_v24 }
 0x30c   :  { %17223 = vst [vmem:[#allocation29_spill] sm:$0xff] %v13522_v5  ;;  %17224 = vst [vmem:[#allocation31_spill] sm:$0xff] %v13525_v8  ;;  %v13534_v55 = vand.u32 4294901760, %v2591_v12  ;;  %v13536_v35 = vand.u32 4294901760, %v2588_v27  ;;  %v2849_v44 = vand.u32 4294901760, %v2848_v43  ;;  %v16752_v18 = vand.u32 4294901760, %v13522_v5  ;;  %11832 = vmatprep.subr.bf16.mxu1 %v13554_v47 }
 0x30d   :  { %v16748_v50 = vand.u32 4294901760, %v13525_v8  ;;  %v2879_v56 = vand.u32 4294901760, %v2878_v16 }
 0x30e   :  { %17225 = vst [vmem:[#allocation33_spill] sm:$0xff] %v13534_v55  ;;  %17226 = vst [vmem:[#allocation36_spill] sm:$0xff] %v13536_v35  ;;  %v13544_v63 = vsub.f32 %v2591_v12, %v13534_v55  ;;  %v13547_v39 = vsub.f32 %v2588_v27, %v13536_v35  ;;  %v2135_v19 = vpop.trf.xlu0  ;;  %10822 = vmatprep.mubr.f32.mxu1 %v2849_v44  ;;  %v2166_v34 = vpop.trf.xlu1  ;;  %v2858_v38 = vsub.f32 %v13522_v5, %v16752_v18 }
 0x30f   :  { %v2594_v26 = vsel %vm17082_vm1, %v2135_v19, 0  ;;  %v2603_v60 = vsel %vm17082_vm1, %v2166_v34, 0  ;;  %v2888_v41 = vsub.f32 %v13525_v8, %v16748_v50 }
 0x310   :  { %17227 = vst [vmem:[#allocation28_spill] sm:$0xff] %v13544_v63  ;;  %17228 = vst [vmem:[#allocation30_spill] sm:$0xff] %v13547_v39  ;;  %v13561_v14 = vand.u32 4294901760, %v2594_v26  ;;  %v2859_v17 = vand.u32 4294901760, %v2858_v38  ;;  %v16747_v32 = vand.u32 4294901760, %v13547_v39  ;;  %v13565_v33 = vand.u32 4294901760, %v2603_v60 }
 0x311   :  { %v16744_v58 = vand.u32 4294901760, %v13544_v63  ;;  %v2889_v21 = vand.u32 4294901760, %v2888_v41 }
 0x312   :  { %17229 = vst [vmem:[#allocation32_spill] sm:$0xff] %v13561_v14  ;;  %17230 = vst [vmem:[#allocation34_spill] sm:$0xff] %v13565_v33  ;;  %v13572_v59 = vsub.f32 %v2594_v26, %v13561_v14  ;;  %v2136_v2 = vpop.trf.xlu0  ;;  %10823 = vmatmul.mubr.f32.gmra.mrb[2].mxu1 %v2859_v17  ;;  %v2167_v53 = vpop.trf.xlu1  ;;  %v2898_v52 = vsub.f32 %v13547_v39, %v16747_v32  ;;  %v13585_v20 = vsub.f32 %v2603_v60, %v13565_v33 }
 0x313   :  { %v2597_v10 = vsel %vm17082_vm1, %v2136_v2, 0  ;;  %v2606_v61 = vsel %vm17082_vm1, %v2167_v53, 0  ;;  %10825 = vmatprep.mubr.f32.mxu1 %v2869_v0  ;;  %v2908_v49 = vsub.f32 %v13544_v63, %v16744_v58 }
 0x314   :  { %17231 = vst [vmem:[#allocation35_spill] sm:$0xff] %v13572_v59  ;;  %v13576_v31 = vand.u32 4294901760, %v2597_v10  ;;  %v13578_v42 = vand.u32 4294901760, %v2606_v61  ;;  %v16743_v54 = vand.u32 4294901760, %v13572_v59  ;;  %17234 = vst [vmem:[#allocation39_spill] sm:$0xff] %v13585_v20  ;;  %v2899_v38 = vand.u32 4294901760, %v2898_v52 }
 0x315   :  { %v2909_v60 = vand.u32 4294901760, %v2908_v49  ;;  %v16742_v16 = vand.u32 4294901760, %v13585_v20 }
 0x316   :  { %17232 = vst [vmem:[#allocation37_spill] sm:$0xff] %v13576_v31  ;;  %17233 = vst [vmem:[#allocation38_spill] sm:$0xff] %v13578_v42  ;;  %v13591_v23 = vsub.f32 %v2597_v10, %v13576_v31  ;;  %v2137_v15 = vpop.trf.xlu0  ;;  %10826 = vmatmul.mubr.f32.gmra.mrb[4].mxu1 %v2879_v56  ;;  %v2168_v43 = vpop.trf.xlu1  ;;  %v13594_v12 = vsub.f32 %v2606_v61, %v13578_v42  ;;  %v2918_v45 = vsub.f32 %v13572_v59, %v16743_v54 }
 0x317   :  { %v2600_v27 = vsel %vm17082_vm1, %v2137_v15, 0  ;;  %v2609_v44 = vsel %vm17082_vm1, %v2168_v43, 0  ;;  %10828 = vmatprep.mubr.f32.mxu1 %v2889_v21 }
 0x318   :  { %17235 = vst [vmem:[#allocation40_spill] sm:$0xff] %v13591_v23  ;;  %17236 = vst [vmem:[#allocation41_spill] sm:$0xff] %v13594_v12  ;;  %v13601_v19 = vand.u32 4294901760, %v2600_v27  ;;  %v13603_v34 = vand.u32 4294901760, %v2609_v44  ;;  %v16741_v26 = vand.u32 4294901760, %v13591_v23  ;;  %v2919_v56 = vand.u32 4294901760, %v2918_v45 }
 0x319   :  { %v16746_v52 = vand.u32 4294901760, %v13594_v12 }
 0x31a   :  { %17237 = vst [vmem:[#allocation42_spill] sm:$0xff] %v13601_v19  ;;  %17238 = vst [vmem:[#allocation43_spill] sm:$0xff] %v13603_v34  ;;  %v13608_v17 = vsub.f32 %v2600_v27, %v13601_v19  ;;  %v13611_v0 = vsub.f32 %v2609_v44, %v13603_v34  ;;  %v2198_v41 = vpop.trf.xlu0  ;;  %10829 = vmatmul.mubr.f32.gmra.mrb[6].mxu1 %v2899_v38  ;;  %v2169_v2 = vpop.trf.xlu1  ;;  %v2928_v53 = vsub.f32 %v13591_v23, %v16741_v26 }
 0x31b   :  { %v2615_v10 = vsel %vm17082_vm1, %v2198_v41, 0  ;;  %v2612_v61 = vsel %vm17082_vm1, %v2169_v2, 0  ;;  %10831 = vmatprep.mubr.f32.mxu1 %v2909_v60  ;;  %v2948_v27 = vsub.f32 %v13585_v20, %v16742_v16 }
 0x31c   :  { %17239 = vst [vmem:[#allocation44_spill] sm:$0xff] %v13608_v17  ;;  %17240 = vst [vmem:[#allocation45_spill] sm:$0xff] %v13611_v0  ;;  %v13619_v21 = vand.u32 4294901760, %v2615_v10  ;;  %v13621_v49 = vand.u32 4294901760, %v2612_v61  ;;  %v2929_v15 = vand.u32 4294901760, %v2928_v53  ;;  %v16745_v43 = vand.u32 4294901760, %v13608_v17 }
 0x31d   :  { %v16750_v44 = vand.u32 4294901760, %v13611_v0  ;;  %v2949_v58 = vand.u32 4294901760, %v2948_v27 }
 0x31e   :  { %17241 = vst [vmem:[#allocation46_spill] sm:$0xff] %v13619_v21  ;;  %17242 = vst [vmem:[#allocation47_spill] sm:$0xff] %v13621_v49  ;;  %v13629_v38 = vsub.f32 %v2615_v10, %v13619_v21  ;;  %v13632_v45 = vsub.f32 %v2612_v61, %v13621_v49  ;;  %v2199_v60 = vpop.trf.xlu0  ;;  %10832 = vmatmul.mubr.f32.gmra.mrb[8].mxu1 %v2919_v56  ;;  %v2230_v41 = vpop.trf.xlu1  ;;  %v2938_v2 = vsub.f32 %v13608_v17, %v16745_v43 }
 0x31f   :  { %v2618_v53 = vsel %vm17082_vm1, %v2199_v60, 0  ;;  %v2627_v26 = vsel %vm17082_vm1, %v2230_v41, 0  ;;  %10834 = vmatprep.mubr.f32.mxu1 %v2929_v15  ;;  %v2958_v10 = vsub.f32 %v13594_v12, %v16746_v52  ;;  %v2968_v43 = vsub.f32 %v13611_v0, %v16750_v44 }
 0x320   :  { %17243 = vst [vmem:[#allocation48_spill] sm:$0xff] %v13629_v38  ;;  %17244 = vst [vmem:[#allocation49_spill] sm:$0xff] %v13632_v45  ;;  %v13642_v16 = vand.u32 4294901760, %v2618_v53  ;;  %v2939_v61 = vand.u32 4294901760, %v2938_v2  ;;  %v16753_v54 = vand.u32 4294901760, %v13632_v45  ;;  %v13645_v56 = vand.u32 4294901760, %v2627_v26 }
 0x321   :  { %v16755_v60 = vand.u32 4294901760, %v13629_v38  ;;  %v2959_v50 = vand.u32 4294901760, %v2958_v10 }
 0x322   :  { %17245 = vst [vmem:[#allocation50_spill] sm:$0xff] %v13642_v16  ;;  %17246 = vst [vmem:[#allocation51_spill] sm:$0xff] %v13645_v56  ;;  %v13652_v15 = vsub.f32 %v2618_v53, %v13642_v16  ;;  %v2200_v41 = vpop.trf.xlu0  ;;  %10835 = vmatmul.mubr.f32.gmra.mrb[10].mxu1 %v2939_v61  ;;  %v2231_v52 = vpop.trf.xlu1  ;;  %v2978_v44 = vsub.f32 %v13632_v45, %v16753_v54  ;;  %v13665_v57 = vsub.f32 %v2627_v26, %v13645_v56 }
 0x323   :  { %v2621_v32 = vsel %vm17082_vm1, %v2200_v41, 0  ;;  %v2630_v2 = vsel %vm17082_vm1, %v2231_v52, 0  ;;  %10837 = vmatprep.mubr.f32.mxu1 %v2949_v58  ;;  %v2969_v61 = vand.u32 4294901760, %v2968_v43  ;;  %v2988_v52 = vsub.f32 %v13629_v38, %v16755_v60 }
 0x324   :  { %17247 = vst [vmem:[#allocation52_spill] sm:$0xff] %v13652_v15  ;;  %v13656_v24 = vand.u32 4294901760, %v2621_v32  ;;  %v13658_v27 = vand.u32 4294901760, %v2630_v2  ;;  %v16758_v53 = vand.u32 4294901760, %v13652_v15  ;;  %17250 = vst [vmem:[#allocation55_spill] sm:$0xff] %v13665_v57 }
 0x325   :  { %v2989_v36 = vand.u32 4294901760, %v2988_v52 }
 0x326   :  { %17248 = vst [vmem:[#allocation53_spill] sm:$0xff] %v13656_v24  ;;  %17249 = vst [vmem:[#allocation54_spill] sm:$0xff] %v13658_v27  ;;  %v13671_v58 = vsub.f32 %v2621_v32, %v13656_v24  ;;  %v2201_v10 = vpop.trf.xlu0  ;;  %10838 = vmatmul.mubr.f32.gmra.mrb[12].mxu1 %v2959_v50  ;;  %v2232_v41 = vpop.trf.xlu1  ;;  %v13674_v18 = vsub.f32 %v2630_v2, %v13658_v27  ;;  %v2998_v26 = vsub.f32 %v13652_v15, %v16758_v53 }
 0x327   :  { %v2624_v54 = vsel %vm17082_vm1, %v2201_v10, 0  ;;  %v2633_v51 = vsel %vm17082_vm1, %v2232_v41, 0  ;;  %10840 = vmatprep.mubr.f32.mxu1 %v2969_v61  ;;  %v2979_v32 = vand.u32 4294901760, %v2978_v44  ;;  %v17259_v15 = vand.u32 4294901760, %v13665_v57 }
 0x328   :  { %17251 = vst [vmem:[#allocation56_spill] sm:$0xff] %v13671_v58  ;;  %17252 = vst [vmem:[#allocation57_spill] sm:$0xff] %v13674_v18  ;;  %v13681_v43 = vand.u32 4294901760, %v2624_v54  ;;  %v13683_v60 = vand.u32 4294901760, %v2633_v51  ;;  %v16765_v50 = vand.u32 4294901760, %v13671_v58  ;;  %v2999_v52 = vand.u32 4294901760, %v2998_v26 }
 0x329   :  { %v3028_v38 = vsub.f32 %v13665_v57, %v17259_v15  ;;  %v17262_v15 = vand.u32 4294901760, %v13674_v18 }
 0x32a   :  { %17253 = vst [vmem:[#allocation58_spill] sm:$0xff] %v13681_v43  ;;  %17254 = vst [vmem:[#allocation59_spill] sm:$0xff] %v13683_v60  ;;  %v13688_v4 = vsub.f32 %v2624_v54, %v13681_v43  ;;  %v13691_v10 = vsub.f32 %v2633_v51, %v13683_v60  ;;  %v2262_v61 = vpop.trf.xlu0  ;;  %10841 = vmatmul.mubr.f32.gmra.mrb[14].mxu1 %v2979_v32  ;;  %v2233_v41 = vpop.trf.xlu1  ;;  %v3008_v53 = vsub.f32 %v13671_v58, %v16765_v50 }
 0x32b   :  { %v2639_v44 = vsel %vm17082_vm1, %v2262_v61, 0  ;;  %v2636_v3 = vsel %vm17082_vm1, %v2233_v41, 0  ;;  %10843 = vmatprep.mubr.f32.mxu1 %v2989_v36  ;;  %v3029_v45 = vand.u32 4294901760, %v3028_v38 }
 0x32c   :  { %17255 = vst [vmem:[#allocation60_spill] sm:$0xff] %v13688_v4  ;;  %17256 = vst [vmem:[#allocation61_spill] sm:$0xff] %v13691_v10  ;;  %v13699_v54 = vand.u32 4294901760, %v2639_v44  ;;  %v13701_v2 = vand.u32 4294901760, %v2636_v3  ;;  %v3009_v51 = vand.u32 4294901760, %v3008_v53  ;;  %v16774_v32 = vand.u32 4294901760, %v13688_v4 }
 0x32d   :  { %v17265_v0 = vand.u32 4294901760, %v13691_v10 }
 0x32e   :  { %17257 = vst [vmem:[#allocation62_spill] sm:$0xff] %v13699_v54  ;;  %17258 = vst [vmem:[#allocation63_spill] sm:$0xff] %v13701_v2  ;;  %v13709_v61 = vsub.f32 %v2639_v44, %v13699_v54  ;;  %v13712_v36 = vsub.f32 %v2636_v3, %v13701_v2  ;;  %v2263_v26 = vpop.trf.xlu0  ;;  %10844 = vmatmul.mubr.f32.gmra.mrb[16].mxu1 %v2999_v52  ;;  %v2294_v41 = vpop.trf.xlu1  ;;  %v3018_v53 = vsub.f32 %v13688_v4, %v16774_v32 }
 0x32f   :  { %v2642_v1 = vsel %vm17082_vm1, %v2263_v26, 0  ;;  %v2651_v58 = vsel %vm17082_vm1, %v2294_v41, 0  ;;  %10846 = vmatprep.mubr.f32.mxu1 %v3009_v51  ;;  %v3038_v44 = vsub.f32 %v13674_v18, %v17262_v15  ;;  %v3048_v32 = vsub.f32 %v13691_v10, %v17265_v0 }
 0x330   :  { %17260 = vst [vmem:[#allocation64_spill] sm:$0xff] %v13709_v61  ;;  %17261 = vst [vmem:[#allocation65_spill] sm:$0xff] %v13712_v36  ;;  %v13722_v50 = vand.u32 4294901760, %v2642_v1  ;;  %v3019_v3 = vand.u32 4294901760, %v3018_v53  ;;  %v13725_v52 = vand.u32 4294901760, %v2651_v58  ;;  %v17269_v0 = vand.u32 4294901760, %v13712_v36 }
 0x331   :  { %v3039_v57 = vand.u32 4294901760, %v3038_v44 }
 0x332   :  { %17263 = vst [vmem:[#allocation66_spill] sm:$0xff] %v13722_v50  ;;  %17264 = vst [vmem:[#allocation67_spill] sm:$0xff] %v13725_v52  ;;  %v13732_v51 = vsub.f32 %v2642_v1, %v13722_v50  ;;  %v2264_v41 = vpop.trf.xlu0  ;;  %10847 = vmatmul.mubr.f32.gmra.mrb[18].mxu1 %v3019_v3  ;;  %v2295_v15 = vpop.trf.xlu1  ;;  %v3058_v26 = vsub.f32 %v13712_v36, %v17269_v0  ;;  %v13745_v10 = vsub.f32 %v2651_v58, %v13725_v52 }
 0x333   :  { %v2645_v18 = vsel %vm17082_vm1, %v2264_v41, 0  ;;  %v2654_v53 = vsel %vm17082_vm1, %v2295_v15, 0  ;;  %10849 = vmatprep.mubr.f32.mxu1 %v3029_v45  ;;  %v3049_v3 = vand.u32 4294901760, %v3048_v32  ;;  %v17271_v41 = vand.u32 4294901760, %v13709_v61 }
 0x334   :  { %17266 = vst [vmem:[#allocation68_spill] sm:$0xff] %v13732_v51  ;;  %v13736_v4 = vand.u32 4294901760, %v2645_v18  ;;  %v13738_v38 = vand.u32 4294901760, %v2654_v53  ;;  %17270 = vst [vmem:[#allocation71_spill] sm:$0xff] %v13745_v10  ;;  %v17274_v58 = vand.u32 4294901760, %v13732_v51  ;;  %v17281_v59 = vand.u32 4294901760, %v13745_v10 }
 0x335   :  { %v3068_v15 = vsub.f32 %v13709_v61, %v17271_v41 }
 0x336   :  { %17267 = vst [vmem:[#allocation69_spill] sm:$0xff] %v13736_v4  ;;  %17268 = vst [vmem:[#allocation70_spill] sm:$0xff] %v13738_v38  ;;  %v13751_v45 = vsub.f32 %v2645_v18, %v13736_v4  ;;  %v2265_v44 = vpop.trf.xlu0  ;;  %10850 = vmatmul.mubr.f32.gmra.mrb[20].mxu1 %v3039_v57  ;;  %v2296_v12 = vpop.trf.xlu1  ;;  %v13754_v20 = vsub.f32 %v2654_v53, %v13738_v38  ;;  %v3078_v32 = vsub.f32 %v13732_v51, %v17274_v58 }
 0x337   :  { %v2648_v0 = vsel %vm17082_vm1, %v2265_v44, 0  ;;  %v2657_v1 = vsel %vm17082_vm1, %v2296_v12, 0  ;;  %10852 = vmatprep.mubr.f32.mxu1 %v3049_v3  ;;  %v3059_v18 = vand.u32 4294901760, %v3058_v26  ;;  %v3069_v61 = vand.u32 4294901760, %v3068_v15 }
 0x338   :  { %17272 = vst [vmem:[#allocation72_spill] sm:$0xff] %v13751_v45  ;;  %17273 = vst [vmem:[#allocation73_spill] sm:$0xff] %v13754_v20  ;;  %v13761_v36 = vand.u32 4294901760, %v2648_v0  ;;  %v13763_v41 = vand.u32 4294901760, %v2657_v1  ;;  %v16799_v57 = vand.u32 4294901760, %v13751_v45  ;;  %v3079_v15 = vand.u32 4294901760, %v3078_v32 }
 0x339   :  { %v3108_v63 = vsub.f32 %v13745_v10, %v17281_v59  ;;  %v17284_v59 = vand.u32 4294901760, %v13754_v20 }
 0x33a   :  { %17275 = vst [vmem:[#allocation74_spill] sm:$0xff] %v13761_v36  ;;  %17276 = vst [vmem:[#allocation75_spill] sm:$0xff] %v13763_v41  ;;  %v13768_v17 = vsub.f32 %v2648_v0, %v13761_v36  ;;  %v13771_v12 = vsub.f32 %v2657_v1, %v13763_v41  ;;  %v2326_v3 = vpop.trf.xlu0  ;;  %10853 = vmatmul.mubr.f32.gmra.mrb[22].mxu1 %v3059_v18  ;;  %v2297_v44 = vpop.trf.xlu1  ;;  %v3088_v58 = vsub.f32 %v13751_v45, %v16799_v57 }
 0x33b   :  { %v2663_v26 = vsel %vm17082_vm1, %v2326_v3, 0  ;;  %v2660_v51 = vsel %vm17082_vm1, %v2297_v44, 0  ;;  %10855 = vmatprep.mubr.f32.mxu1 %v3069_v61  ;;  %v3109_v39 = vand.u32 4294901760, %v3108_v63 }
 0x33c   :  { %17277 = vst [vmem:[#allocation76_spill] sm:$0xff] %v13768_v17  ;;  %17278 = vst [vmem:[#allocation77_spill] sm:$0xff] %v13771_v12  ;;  %v13779_v0 = vand.u32 4294901760, %v2663_v26  ;;  %v13781_v23 = vand.u32 4294901760, %v2660_v51  ;;  %v3089_v1 = vand.u32 4294901760, %v3088_v58  ;;  %v16808_v18 = vand.u32 4294901760, %v13768_v17 }
 0x33d   :  { %v17287_v8 = vand.u32 4294901760, %v13771_v12 }
 0x33e   :  { %17279 = vst [vmem:[#allocation78_spill] sm:$0xff] %v13779_v0  ;;  %17280 = vst [vmem:[#allocation79_spill] sm:$0xff] %v13781_v23  ;;  %v13789_v3 = vsub.f32 %v2663_v26, %v13779_v0  ;;  %v13792_v61 = vsub.f32 %v2660_v51, %v13781_v23  ;;  %v2327_v32 = vpop.trf.xlu0  ;;  %10856 = vmatmul.mubr.f32.gmra.mrb[24].mxu1 %v3079_v15  ;;  %v2358_v44 = vpop.trf.xlu1  ;;  %v3098_v58 = vsub.f32 %v13768_v17, %v16808_v18 }
 0x33f   :  { %v2666_v53 = vsel %vm17082_vm1, %v2327_v32, 0  ;;  %v2675_v45 = vsel %vm17082_vm1, %v2358_v44, 0  ;;  %10858 = vmatprep.mubr.f32.mxu1 %v3089_v1  ;;  %v3118_v26 = vsub.f32 %v13754_v20, %v17284_v59  ;;  %v3128_v18 = vsub.f32 %v13771_v12, %v17287_v8 }
 0x340   :  { %17282 = vst [vmem:[#allocation80_spill] sm:$0xff] %v13789_v3  ;;  %17283 = vst [vmem:[#allocation81_spill] sm:$0xff] %v13792_v61  ;;  %v13802_v57 = vand.u32 4294901760, %v2666_v53  ;;  %v3099_v51 = vand.u32 4294901760, %v3098_v58  ;;  %v13805_v15 = vand.u32 4294901760, %v2675_v45  ;;  %v17291_v8 = vand.u32 4294901760, %v13792_v61 }
 0x341   :  { %v3119_v10 = vand.u32 4294901760, %v3118_v26 }
 0x342   :  { %17285 = vst [vmem:[#allocation82_spill] sm:$0xff] %v13802_v57  ;;  %17286 = vst [vmem:[#allocation83_spill] sm:$0xff] %v13805_v15  ;;  %v13812_v1 = vsub.f32 %v2666_v53, %v13802_v57  ;;  %v2328_v44 = vpop.trf.xlu0  ;;  %10859 = vmatmul.mubr.f32.gmra.mrb[26].mxu1 %v3099_v51  ;;  %v2359_v59 = vpop.trf.xlu1  ;;  %v3138_v32 = vsub.f32 %v13792_v61, %v17291_v8  ;;  %v13825_v12 = vsub.f32 %v2675_v45, %v13805_v15 }
 0x343   :  { %v2669_v20 = vsel %vm17082_vm1, %v2328_v44, 0  ;;  %v2678_v58 = vsel %vm17082_vm1, %v2359_v59, 0  ;;  %10861 = vmatprep.mubr.f32.mxu1 %v3109_v39  ;;  %v3129_v51 = vand.u32 4294901760, %v3128_v18  ;;  %v17293_v44 = vand.u32 4294901760, %v13789_v3 }
 0x344   :  { %17288 = vst [vmem:[#allocation84_spill] sm:$0xff] %v13812_v1  ;;  %v13816_v17 = vand.u32 4294901760, %v2669_v20  ;;  %v13818_v63 = vand.u32 4294901760, %v2678_v58  ;;  %17292 = vst [vmem:[#allocation87_spill] sm:$0xff] %v13825_v12  ;;  %v17296_v45 = vand.u32 4294901760, %v13812_v1  ;;  %v17303_v13 = vand.u32 4294901760, %v13825_v12 }
 0x345   :  { %v3148_v59 = vsub.f32 %v13789_v3, %v17293_v44 }
 0x346   :  { %17289 = vst [vmem:[#allocation85_spill] sm:$0xff] %v13816_v17  ;;  %17290 = vst [vmem:[#allocation86_spill] sm:$0xff] %v13818_v63  ;;  %v13831_v39 = vsub.f32 %v2669_v20, %v13816_v17  ;;  %v2329_v26 = vpop.trf.xlu0  ;;  %10862 = vmatmul.mubr.f32.gmra.mrb[28].mxu1 %v3119_v10  ;;  %v2360_v11 = vpop.trf.xlu1  ;;  %v13834_v37 = vsub.f32 %v2678_v58, %v13818_v63  ;;  %v3158_v18 = vsub.f32 %v13812_v1, %v17296_v45 }
 0x347   :  { %v2672_v8 = vsel %vm17082_vm1, %v2329_v26, 0  ;;  %v2681_v53 = vsel %vm17082_vm1, %v2360_v11, 0  ;;  %10864 = vmatprep.mubr.f32.mxu1 %v3129_v51  ;;  %v3139_v20 = vand.u32 4294901760, %v3138_v32  ;;  %v3149_v3 = vand.u32 4294901760, %v3148_v59 }
 0x348   :  { %17294 = vst [vmem:[#allocation88_spill] sm:$0xff] %v13831_v39  ;;  %17295 = vst [vmem:[#allocation89_spill] sm:$0xff] %v13834_v37  ;;  %v13841_v61 = vand.u32 4294901760, %v2672_v8  ;;  %v13843_v44 = vand.u32 4294901760, %v2681_v53  ;;  %v16831_v10 = vand.u32 4294901760, %v13831_v39  ;;  %v3159_v59 = vand.u32 4294901760, %v3158_v18 }
 0x349   :  { %v3188_v28 = vsub.f32 %v13825_v12, %v17303_v13  ;;  %v17306_v13 = vand.u32 4294901760, %v13834_v37 }
 0x34a   :  { %17297 = vst [vmem:[#allocation90_spill] sm:$0xff] %v13841_v61  ;;  %17298 = vst [vmem:[#allocation91_spill] sm:$0xff] %v13843_v44  ;;  %v13848_v5 = vsub.f32 %v2672_v8, %v13841_v61  ;;  %v13851_v11 = vsub.f32 %v2681_v53, %v13843_v44  ;;  %v2390_v51 = vpop.trf.xlu0  ;;  %10865 = vmatmul.mubr.f32.gmra.mrb[30].mxu1 %v3139_v20  ;;  %v2361_v26 = vpop.trf.xlu1  ;;  %v3168_v45 = vsub.f32 %v13831_v39, %v16831_v10 }
 0x34b   :  { %v2687_v32 = vsel %vm17082_vm1, %v2390_v51, 0  ;;  %v2684_v1 = vsel %vm17082_vm1, %v2361_v26, 0  ;;  %10867 = vmatprep.mubr.f32.mxu1 %v3149_v3  ;;  %v3189_v62 = vand.u32 4294901760, %v3188_v28 }
 0x34c   :  { %17299 = vst [vmem:[#allocation92_spill] sm:$0xff] %v13848_v5  ;;  %17300 = vst [vmem:[#allocation93_spill] sm:$0xff] %v13851_v11  ;;  %v13859_v8 = vand.u32 4294901760, %v2687_v32  ;;  %v13861_v40 = vand.u32 4294901760, %v2684_v1  ;;  %v3169_v53 = vand.u32 4294901760, %v3168_v45  ;;  %v16840_v20 = vand.u32 4294901760, %v13848_v5 }
 0x34d   :  { %v17309_v7 = vand.u32 4294901760, %v13851_v11 }
 0x34e   :  { %17301 = vst [vmem:[#allocation94_spill] sm:$0xff] %v13859_v8  ;;  %17302 = vst [vmem:[#allocation95_spill] sm:$0xff] %v13861_v40  ;;  %v13869_v51 = vsub.f32 %v2687_v32, %v13859_v8  ;;  %v13872_v3 = vsub.f32 %v2684_v1, %v13861_v40  ;;  %v2391_v18 = vpop.trf.xlu0  ;;  %10868 = vmatmul.mubr.f32.gmra.mrb[32].mxu1 %v3159_v59  ;;  %v2422_v26 = vpop.trf.xlu1  ;;  %v3178_v45 = vsub.f32 %v13848_v5, %v16840_v20 }
 0x34f   :  { %v2690_v58 = vsel %vm17082_vm1, %v2391_v18, 0  ;;  %v2699_v39 = vsel %vm17082_vm1, %v2422_v26, 0  ;;  %10870 = vmatprep.mubr.f32.mxu1 %v3169_v53  ;;  %v3198_v32 = vsub.f32 %v13834_v37, %v17306_v13  ;;  %v3208_v20 = vsub.f32 %v13851_v11, %v17309_v7 }
 0x350   :  { %17304 = vst [vmem:[#allocation96_spill] sm:$0xff] %v13869_v51  ;;  %17305 = vst [vmem:[#allocation97_spill] sm:$0xff] %v13872_v3  ;;  %v13882_v10 = vand.u32 4294901760, %v2690_v58  ;;  %v3179_v1 = vand.u32 4294901760, %v3178_v45  ;;  %v13885_v59 = vand.u32 4294901760, %v2699_v39  ;;  %v17313_v7 = vand.u32 4294901760, %v13872_v3 }
 0x351   :  { %v3199_v12 = vand.u32 4294901760, %v3198_v32 }
 0x352   :  { %17307 = vst [vmem:[#allocation98_spill] sm:$0xff] %v13882_v10  ;;  %17308 = vst [vmem:[#allocation99_spill] sm:$0xff] %v13885_v59  ;;  %v13892_v53 = vsub.f32 %v2690_v58, %v13882_v10  ;;  %v2392_v26 = vpop.trf.xlu0  ;;  %10871 = vmatmul.mubr.f32.gmra.mrb[34].mxu1 %v3179_v1  ;;  %v2423_v13 = vpop.trf.xlu1  ;;  %v3218_v18 = vsub.f32 %v13872_v3, %v17313_v7  ;;  %v13905_v11 = vsub.f32 %v2699_v39, %v13885_v59 }
 0x353   :  { %v2693_v37 = vsel %vm17082_vm1, %v2392_v26, 0  ;;  %v2702_v45 = vsel %vm17082_vm1, %v2423_v13, 0  ;;  %10873 = vmatprep.mubr.f32.mxu1 %v3189_v62  ;;  %v3209_v1 = vand.u32 4294901760, %v3208_v20  ;;  %v17315_v26 = vand.u32 4294901760, %v13869_v51 }
 0x354   :  { %17310 = vst [vmem:[#allocation100_spill] sm:$0xff] %v13892_v53  ;;  %v13896_v5 = vand.u32 4294901760, %v2693_v37  ;;  %v13898_v28 = vand.u32 4294901760, %v2702_v45  ;;  %17314 = vst [vmem:[#allocation103_spill] sm:$0xff] %v13905_v11  ;;  %v17318_v39 = vand.u32 4294901760, %v13892_v53 }
 0x355   :  { %v3228_v13 = vsub.f32 %v13869_v51, %v17315_v26 }
 0x356   :  { %17311 = vst [vmem:[#allocation101_spill] sm:$0xff] %v13896_v5  ;;  %17312 = vst [vmem:[#allocation102_spill] sm:$0xff] %v13898_v28  ;;  %v13911_v62 = vsub.f32 %v2693_v37, %v13896_v5  ;;  %v2393_v32 = vpop.trf.xlu0  ;;  %10874 = vmatmul.mubr.f32.gmra.mrb[36].mxu1 %v3199_v12  ;;  %v2424_v10 = vpop.trf.xlu1  ;;  %v13914_v8 = vsub.f32 %v2702_v45, %v13898_v28  ;;  %v3238_v20 = vsub.f32 %v13892_v53, %v17318_v39 }
 0x357   :  { %v2696_v7 = vsel %vm17082_vm1, %v2393_v32, 0  ;;  %v2705_v58 = vsel %vm17082_vm1, %v2424_v10, 0  ;;  %10876 = vmatprep.mubr.f32.mxu1 %v3209_v1  ;;  %v3219_v37 = vand.u32 4294901760, %v3218_v18  ;;  %v3229_v51 = vand.u32 4294901760, %v3228_v13 }
 0x358   :  { %17316 = vst [vmem:[#allocation104_spill] sm:$0xff] %v13911_v62  ;;  %17317 = vst [vmem:[#allocation105_spill] sm:$0xff] %v13914_v8  ;;  %v13921_v3 = vand.u32 4294901760, %v2696_v7  ;;  %v13923_v26 = vand.u32 4294901760, %v2705_v58  ;;  %v16865_v12 = vand.u32 4294901760, %v13911_v62  ;;  %v3239_v13 = vand.u32 4294901760, %v3238_v20 }
 0x35a   :  { %17319 = vst [vmem:[#allocation106_spill] sm:$0xff] %v13921_v3  ;;  %17320 = vst [vmem:[#allocation107_spill] sm:$0xff] %v13923_v26  ;;  %v13928_v28 = vsub.f32 %v2696_v7, %v13921_v3  ;;  %v13931_v10 = vsub.f32 %v2705_v58, %v13923_v26  ;;  %v2454_v1 = vpop.trf.xlu0  ;;  %10877 = vmatmul.mubr.f32.gmra.mrb[38].mxu1 %v3219_v37  ;;  %v2425_v32 = vpop.trf.xlu1  ;;  %v3248_v39 = vsub.f32 %v13911_v62, %v16865_v12 }
 0x35b   :  { %v2711_v18 = vsel %vm17082_vm1, %v2454_v1, 0  ;;  %v2708_v53 = vsel %vm17082_vm1, %v2425_v32, 0  ;;  %10879 = vmatprep.mubr.f32.mxu1 %v3229_v51  ;;  %v17325_v26 = vand.u32 4294901760, %v13905_v11 }
 0x35c   :  { %17321 = vst [vmem:[#allocation108_spill] sm:$0xff] %v13928_v28  ;;  %17322 = vst [vmem:[#allocation109_spill] sm:$0xff] %v13931_v10  ;;  %v13939_v7 = vand.u32 4294901760, %v2711_v18  ;;  %v13941_v59 = vand.u32 4294901760, %v2708_v53  ;;  %v3249_v58 = vand.u32 4294901760, %v3248_v39  ;;  %v16874_v37 = vand.u32 4294901760, %v13928_v28 }
 0x35d   :  { %v3268_v3 = vsub.f32 %v13905_v11, %v17325_v26  ;;  %v17328_v26 = vand.u32 4294901760, %v13914_v8 }
 0x35e   :  { %17323 = vst [vmem:[#allocation110_spill] sm:$0xff] %v13939_v7  ;;  %17324 = vst [vmem:[#allocation111_spill] sm:$0xff] %v13941_v59  ;;  %v13949_v1 = vsub.f32 %v2711_v18, %v13939_v7  ;;  %v13952_v51 = vsub.f32 %v2708_v53, %v13941_v59  ;;  %v2455_v20 = vpop.trf.xlu0  ;;  %10880 = vmatmul.mubr.f32.gmra.mrb[40].mxu1 %v3239_v13  ;;  %v2486_v32 = vpop.trf.xlu1  ;;  %v3258_v39 = vsub.f32 %v13928_v28, %v16874_v37 }
 0x35f   :  { %v2714_v45 = vsel %vm17082_vm1, %v2455_v20, 0  ;;  %v2723_v62 = vsel %vm17082_vm1, %v2486_v32, 0  ;;  %10882 = vmatprep.mubr.f32.mxu1 %v3249_v58  ;;  %v3278_v18 = vsub.f32 %v13914_v8, %v17328_v26  ;;  %v3269_v7 = vand.u32 4294901760, %v3268_v3 }
 0x360   :  { %17326 = vst [vmem:[#allocation112_spill] sm:$0xff] %v13949_v1  ;;  %17327 = vst [vmem:[#allocation113_spill] sm:$0xff] %v13952_v51  ;;  %v13962_v12 = vand.u32 4294901760, %v2714_v45  ;;  %v3259_v53 = vand.u32 4294901760, %v3258_v39  ;;  %v13965_v13 = vand.u32 4294901760, %v2723_v62  ;;  %v17331_v59 = vand.u32 4294901760, %v13931_v10 }
 0x361   :  { %v3279_v11 = vand.u32 4294901760, %v3278_v18 }
 0x362   :  { %17329 = vst [vmem:[#allocation114_spill] sm:$0xff] %v13962_v12  ;;  %17330 = vst [vmem:[#allocation115_spill] sm:$0xff] %v13965_v13  ;;  %v3288_v37 = vsub.f32 %v13931_v10, %v17331_v59  ;;  %v13972_v58 = vsub.f32 %v2714_v45, %v13962_v12  ;;  %v2456_v32 = vpop.trf.xlu0  ;;  %10883 = vmatmul.mubr.f32.gmra.mrb[42].mxu1 %v3259_v53  ;;  %v2487_v26 = vpop.trf.xlu1  ;;  %v17335_v59 = vand.u32 4294901760, %v13952_v51 }
 0x363   :  { %v2717_v8 = vsel %vm17082_vm1, %v2456_v32, 0  ;;  %v2726_v39 = vsel %vm17082_vm1, %v2487_v26, 0  ;;  %10885 = vmatprep.mubr.f32.mxu1 %v3269_v7  ;;  %v13985_v20 = vsub.f32 %v2723_v62, %v13965_v13  ;;  %v17337_v32 = vand.u32 4294901760, %v13949_v1 }
 0x364   :  { %17332 = vst [vmem:[#allocation116_spill] sm:$0xff] %v13972_v58  ;;  %v13977_v28 = vand.u32 4294901760, %v2717_v8  ;;  %v13979_v5 = vand.u32 4294901760, %v2726_v39  ;;  %v3298_v45 = vsub.f32 %v13952_v51, %v17335_v59  ;;  %v3289_v53 = vand.u32 4294901760, %v3288_v37 }
 0x365   :  { %17336 = vst [vmem:[#allocation119_spill] sm:$0xff] %v13985_v20  ;;  %v3308_v26 = vsub.f32 %v13949_v1, %v17337_v32  ;;  %v17340_v62 = vand.u32 4294901760, %v13972_v58 }
 0x366   :  { %17333 = vst [vmem:[#allocation117_spill] sm:$0xff] %v13977_v28  ;;  %17334 = vst [vmem:[#allocation118_spill] sm:$0xff] %v13979_v5  ;;  %v13991_v7 = vsub.f32 %v2717_v8, %v13977_v28  ;;  %v2457_v18 = vpop.trf.xlu0  ;;  %10886 = vmatmul.mubr.f32.gmra.mrb[44].mxu1 %v3279_v11  ;;  %v2488_v3 = vpop.trf.xlu1  ;;  %v13994_v10 = vsub.f32 %v2726_v39, %v13979_v5  ;;  %v3299_v11 = vand.u32 4294901760, %v3298_v45 }
 0x367   :  { %v2720_v12 = vsel %vm17082_vm1, %v2457_v18, 0  ;;  %v2729_v59 = vsel %vm17082_vm1, %v2488_v3, 0  ;;  %10888 = vmatprep.mubr.f32.mxu1 %v3289_v53  ;;  %v3318_v37 = vsub.f32 %v13972_v58, %v17340_v62  ;;  %v3309_v51 = vand.u32 4294901760, %v3308_v26 }
 0x368   :  { %17338 = vst [vmem:[#allocation120_spill] sm:$0xff] %v13991_v7  ;;  %17339 = vst [vmem:[#allocation121_spill] sm:$0xff] %v13994_v10  ;;  %v16899_v32 = vand.u32 4294901760, %v13991_v7  ;;  %v14002_v1 = vand.u32 4294901760, %v2720_v12  ;;  %v14004_v8 = vand.u32 4294901760, %v2729_v59 }
 0x369   :  { %v3319_v26 = vand.u32 4294901760, %v3318_v37 }
 0x36a   :  { %17341 = vst [vmem:[#allocation122_spill] sm:$0xff] %v14002_v1  ;;  %17342 = vst [vmem:[#allocation123_spill] sm:$0xff] %v14004_v8  ;;  %v14008_v5 = vsub.f32 %v2720_v12, %v14002_v1  ;;  %v14011_v3 = vsub.f32 %v2729_v59, %v14004_v8  ;;  %v2518_v53 = vpop.trf.xlu0  ;;  %10889 = vmatmul.mubr.f32.gmra.mrb[46].mxu1 %v3299_v11  ;;  %v2489_v18 = vpop.trf.xlu1  ;;  %v3328_v62 = vsub.f32 %v13991_v7, %v16899_v32 }
 0x36b   :  { %v2735_v58 = vsel %vm17082_vm1, %v2518_v53, 0  ;;  %v2732_v45 = vsel %vm17082_vm1, %v2489_v18, 0  ;;  %10891 = vmatprep.mubr.f32.mxu1 %v3309_v51  ;;  %v17347_v8 = vand.u32 4294901760, %v13985_v20 }
 0x36c   :  { %17343 = vst [vmem:[#allocation124_spill] sm:$0xff] %v14008_v5  ;;  %17344 = vst [vmem:[#allocation125_spill] sm:$0xff] %v14011_v3  ;;  %v16908_v12 = vand.u32 4294901760, %v14008_v5  ;;  %v14020_v13 = vand.u32 4294901760, %v2735_v58  ;;  %v14022_v59 = vand.u32 4294901760, %v2732_v45  ;;  %v3329_v11 = vand.u32 4294901760, %v3328_v62 }
 0x36d   :  { %v3348_v1 = vsub.f32 %v13985_v20, %v17347_v8 }
 0x36e   :  { %17345 = vst [vmem:[#allocation126_spill] sm:$0xff] %v14020_v13  ;;  %17346 = vst [vmem:[#allocation127_spill] sm:$0xff] %v14022_v59  ;;  %v14029_v53 = vsub.f32 %v2735_v58, %v14020_v13  ;;  %v14032_v51 = vsub.f32 %v2732_v45, %v14022_v59  ;;  %v2519_v37 = vpop.trf.xlu0  ;;  %10892 = vmatmul.mubr.f32.gmra.mrb[48].mxu1 %v3319_v26  ;;  %v2550_v18 = vpop.trf.xlu1  ;;  %v3338_v39 = vsub.f32 %v14008_v5, %v16908_v12 }
 0x36f   :  { %v2738_v62 = vsel %vm17082_vm1, %v2519_v37, 0  ;;  %v2747_v7 = vsel %vm17082_vm1, %v2550_v18, 0  ;;  %10894 = vmatprep.mubr.f32.mxu1 %v3329_v11  ;;  %v17351_v58 = vand.u32 4294901760, %v13994_v10  ;;  %v3349_v13 = vand.u32 4294901760, %v3348_v1 }
 0x370   :  { %17348 = vst [vmem:[#allocation128_spill] sm:$0xff] %v14029_v53  ;;  %17349 = vst [vmem:[#allocation129_spill] sm:$0xff] %v14032_v51  ;;  %v14039_v8 = vand.u32 4294901760, %v2738_v62  ;;  %v3339_v32 = vand.u32 4294901760, %v3338_v39  ;;  %v16917_v20 = vand.u32 4294901760, %v14032_v51  ;;  %v14045_v26 = vand.u32 4294901760, %v2747_v7 }
 0x371   :  { %v3358_v45 = vsub.f32 %v13994_v10, %v17351_v58  ;;  %v17353_v59 = vand.u32 4294901760, %v14011_v3 }
 0x372   :  { %17350 = vst [vmem:[#allocation130_spill] sm:$0xff] %v14039_v8  ;;  %17352 = vst [vmem:[#allocation131_spill] sm:$0xff] %v14045_v26  ;;  %v14052_v11 = vsub.f32 %v2738_v62, %v14039_v8  ;;  %v2520_v18 = vpop.trf.xlu0  ;;  %10895 = vmatmul.mubr.f32.gmra.mrb[50].mxu1 %v3339_v32  ;;  %v2551_v39 = vpop.trf.xlu1  ;;  %v3378_v1 = vsub.f32 %v14032_v51, %v16917_v20 }
 0x373   :  { %v3368_v12 = vsub.f32 %v14011_v3, %v17353_v59  ;;  %v2741_v5 = vsel %vm17082_vm1, %v2520_v18, 0  ;;  %v2750_v58 = vsel %vm17082_vm1, %v2551_v39, 0  ;;  %10897 = vmatprep.mubr.f32.mxu1 %v3349_v13  ;;  %v3359_v62 = vand.u32 4294901760, %v3358_v45 }
 0x374   :  { %17354 = vst [vmem:[#allocation132_spill] sm:$0xff] %v14052_v11  ;;  %v14060_v59 = vand.u32 4294901760, %v2741_v5  ;;  %v14062_v37 = vand.u32 4294901760, %v2750_v58  ;;  %v14065_v3 = vsub.f32 %v2747_v7, %v14045_v26  ;;  %v17358_v18 = vand.u32 4294901760, %v14029_v53 }
 0x375   :  { %v3369_v32 = vand.u32 4294901760, %v3368_v12  ;;  %v3379_v7 = vand.u32 4294901760, %v3378_v1 }
 0x376   :  { %17355 = vst [vmem:[#allocation133_spill] sm:$0xff] %v14060_v59  ;;  %17356 = vst [vmem:[#allocation134_spill] sm:$0xff] %v14062_v37  ;;  %v3388_v39 = vsub.f32 %v14029_v53, %v17358_v18  ;;  %v14071_v13 = vsub.f32 %v2741_v5, %v14060_v59  ;;  %v2521_v8 = vpop.trf.xlu0  ;;  %10898 = vmatmul.mubr.f32.gmra.mrb[52].mxu1 %v3359_v62  ;;  %v2552_v20 = vpop.trf.xlu1  ;;  %v14074_v10 = vsub.f32 %v2750_v58, %v14062_v37 }
 0x377   :  { %17357 = vst [vmem:[#allocation135_spill] sm:$0xff] %v14065_v3  ;;  %v2744_v51 = vsel %vm17082_vm1, %v2521_v8, 0  ;;  %v2753_v45 = vsel %vm17082_vm1, %v2552_v20, 0  ;;  %10900 = vmatprep.mubr.f32.mxu1 %v3369_v32  ;;  %v17361_v5 = vand.u32 4294901760, %v14052_v11 }
 0x378   :  { %v16932_v12 = vand.u32 4294901760, %v14071_v13  ;;  %v14079_v26 = vand.u32 4294901760, %v2744_v51  ;;  %v14081_v18 = vand.u32 4294901760, %v2753_v45  ;;  %v3389_v53 = vand.u32 4294901760, %v3388_v39 }
 0x379   :  { %v3398_v62 = vsub.f32 %v14052_v11, %v17361_v5  ;;  %v16935_v32 = vand.u32 4294901760, %v14074_v10 }
 0x37a   :  { %17359 = vst [vmem:[#allocation136_spill] sm:$0xff] %v14079_v26  ;;  %17360 = vst [vmem:[#allocation137_spill] sm:$0xff] %v14081_v18  ;;  %v14088_v37 = vsub.f32 %v2744_v51, %v14079_v26  ;;  %v14091_v20 = vsub.f32 %v2753_v45, %v14081_v18  ;;  %10901 = vmatmul.mubr.f32.gmra.mrb[54].mxu1 %v3379_v7  ;;  %v2553_v8 = vpop.trf.xlu1  ;;  %v3408_v1 = vsub.f32 %v14071_v13, %v16932_v12 }
 0x37b   :  { %v2756_v59 = vsel %vm17082_vm1, %v2553_v8, 0  ;;  %10903 = vmatprep.mubr.f32.mxu1 %v3389_v53  ;;  %v3399_v51 = vand.u32 4294901760, %v3398_v62  ;;  %v17364_v7 = vand.u32 4294901760, %v14065_v3  ;;  %v3438_v62 = vsub.f32 %v14074_v10, %v16935_v32  ;;  %v17378_v32 = vld [vmem:[#allocation118_spill] sm:$0xff] }
 0x37c   :  { %17362 = vst [vmem:[#allocation138_spill] sm:$0xff] %v14091_v20  ;;  %v16936_v39 = vand.u32 4294901760, %v14088_v37  ;;  %v14099_v5 = vand.u32 4294901760, %v2756_v59  ;;  %v3409_v58 = vand.u32 4294901760, %v3408_v1  ;;  %v16934_v45 = vand.u32 4294901760, %v14091_v20 }
 0x37d   :  { %v3428_v11 = vsub.f32 %v14065_v3, %v17364_v7 }
 0x37e   :  { %17363 = vst [vmem:[#allocation139_spill] sm:$0xff] %v14099_v5  ;;  %v14106_v18 = vsub.f32 %v2756_v59, %v14099_v5  ;;  %10904 = vmatmul.mubr.f32.gmra.mrb[56].mxu1 %v3399_v51  ;;  %v3418_v53 = vsub.f32 %v14088_v37, %v16936_v39  ;;  %v3448_v7 = vsub.f32 %v14091_v20, %v16934_v45  ;;  %v3439_v59 = vand.u32 4294901760, %v3438_v62  ;;  %v17369_v62 = vld [vmem:[#allocation106_spill] sm:$0xff]  ;;  %v17377_v45 = vld [vmem:[#allocation115_spill] sm:$0xff] }
 0x37f   :  { %10906 = vmatprep.mubr.f32.mxu1 %v3409_v58  ;;  %v3429_v1 = vand.u32 4294901760, %v3428_v11  ;;  %v17367_v11 = vld [vmem:[#allocation98_spill] sm:$0xff]  ;;  %v17379_v39 = vld [vmem:[#allocation123_spill] sm:$0xff] }
 0x380   :  { %17365 = vst [vmem:[#allocation140_spill] sm:$0xff] %v14106_v18  ;;  %v16933_v8 = vand.u32 4294901760, %v14106_v18  ;;  %v3419_v12 = vand.u32 4294901760, %v3418_v53  ;;  %v3449_v58 = vand.u32 4294901760, %v3448_v7  ;;  %v17371_v7 = vld [vmem:[#allocation102_spill] sm:$0xff] }
 0x382   :  { %10907 = vmatmul.mubr.f32.gmra.mrb[58].mxu1 %v3419_v12  ;;  %v3458_v51 = vsub.f32 %v14106_v18, %v16933_v8  ;;  %v17368_v12 = vld [vmem:[#allocation101_spill] sm:$0xff]  ;;  %v17376_v8 = vld [vmem:[#allocation122_spill] sm:$0xff] }
 0x383   :  { %10909 = vmatprep.mubr.f32.mxu1 %v3429_v1  ;;  %v17370_v1 = vld [vmem:[#allocation99_spill] sm:$0xff] }
 0x384   :  { %v3459_v53 = vand.u32 4294901760, %v3458_v51  ;;  %v17373_v51 = vld [vmem:[#allocation111_spill] sm:$0xff] }
 0x386   :  { %10910 = vmatmul.mubr.f32.gmra.mrb[60].mxu1 %v3439_v59  ;;  %v17372_v59 = vld [vmem:[#allocation107_spill] sm:$0xff] }
 0x387   :  { %10912 = vmatprep.mubr.f32.mxu1 %v3449_v58  ;;  %v17374_v58 = vld [vmem:[#allocation110_spill] sm:$0xff] }
 0x38a   :  { %10913 = vmatmul.mubr.f32.gmra.mrb[62].mxu1 %v3459_v53  ;;  %v17375_v53 = vld [vmem:[#allocation114_spill] sm:$0xff] }
 0x38b   :  { %10919 = vmatprep.mubr.f32.mxu1 %v13476_v9  ;;  %v17446_v9 = vld [vmem:[#allocation129_spill] sm:$0xff] }
 0x38e   :  { %10920 = vmatmul.mubr.f32.vlgmr.msra.gmra.mrb[0].mxu1 %v13483_v6  ;;  %v17445_v6 = vld [vmem:[#allocation125_spill] sm:$0xff] }
 0x38f   :  { %10922 = vmatprep.mubr.f32.mxu1 %v13496_v46  ;;  %11834 = vmatpush3.bf16.msra.mxu1 %v13554_v47  ;;  %v17366_v47 = vld [vmem:[#allocation94_spill] sm:$0xff]  ;;  %v17444_v46 = vld [vmem:[#allocation121_spill] sm:$0xff] }
 0x390   :  { %11836 = vmatprep.subr.bf16.mxu1 %v13456_v22 }
 0x392   :  { %10923 = vmatmul.mubr.f32.gmra.mrb[2].mxu1 %v13515_v29  ;;  %v17443_v29 = vld [vmem:[#allocation119_spill] sm:$0xff] }
 0x393   :  { %10925 = vmatprep.mubr.f32.mxu1 %v13486_v30  ;;  %v17442_v30 = vld [vmem:[#allocation124_spill] sm:$0xff] }
 0x396   :  { %10926 = vmatmul.mubr.f32.gmra.mrb[4].mxu1 %v13498_v25  ;;  %v17441_v25 = vld [vmem:[#allocation120_spill] sm:$0xff] }
 0x397   :  { %10928 = vmatprep.mubr.f32.mxu1 %v13517_v48  ;;  %v17440_v48 = vld [vmem:[#allocation116_spill] sm:$0xff] }
 0x39a   :  { %10929 = vmatmul.mubr.f32.gmra.mrb[6].mxu1 %v13536_v35  ;;  %v17439_v35 = vld [vmem:[#allocation112_spill] sm:$0xff] }
 0x39b   :  { %10931 = vmatprep.mubr.f32.mxu1 %v13534_v55  ;;  %v17438_v55 = vld [vmem:[#allocation113_spill] sm:$0xff] }
 0x39e   :  { %10932 = vmatmul.mubr.f32.gmra.mrb[8].mxu1 %v13561_v14  ;;  %v17437_v14 = vld [vmem:[#allocation109_spill] sm:$0xff] }
 0x39f   :  { %10934 = vmatprep.mubr.f32.mxu1 %v13576_v31  ;;  %v17436_v31 = vld [vmem:[#allocation105_spill] sm:$0xff] }
 0x3a2   :  { %10935 = vmatmul.mubr.f32.gmra.mrb[10].mxu1 %v13601_v19  ;;  %v17435_v19 = vld [vmem:[#allocation103_spill] sm:$0xff] }
 0x3a3   :  { %10937 = vmatprep.mubr.f32.mxu1 %v13565_v33  ;;  %v17434_v33 = vld [vmem:[#allocation108_spill] sm:$0xff] }
 0x3a6   :  { %10938 = vmatmul.mubr.f32.gmra.mrb[12].mxu1 %v13578_v42  ;;  %v17433_v42 = vld [vmem:[#allocation104_spill] sm:$0xff] }
 0x3a7   :  { %10940 = vmatprep.mubr.f32.mxu1 %v13603_v34  ;;  %v17432_v34 = vld [vmem:[#allocation100_spill] sm:$0xff] }
 0x3aa   :  { %10941 = vmatmul.mubr.f32.gmra.mrb[14].mxu1 %v13621_v49  ;;  %v17431_v49 = vld [vmem:[#allocation96_spill] sm:$0xff] }
 0x3ab   :  { %10943 = vmatprep.mubr.f32.mxu1 %v13619_v21  ;;  %v17430_v21 = vld [vmem:[#allocation97_spill] sm:$0xff] }
 0x3ae   :  { %10944 = vmatmul.mubr.f32.gmra.mrb[16].mxu1 %v13642_v16  ;;  %v17429_v16 = vld [vmem:[#allocation93_spill] sm:$0xff] }
 0x3af   :  { %10946 = vmatprep.mubr.f32.mxu1 %v13656_v24  ;;  %v17428_v24 = vld [vmem:[#allocation89_spill] sm:$0xff] }
 0x3b2   :  { %10947 = vmatmul.mubr.f32.gmra.mrb[18].mxu1 %v13681_v43  ;;  %v17427_v43 = vld [vmem:[#allocation87_spill] sm:$0xff] }
 0x3b3   :  { %10949 = vmatprep.mubr.f32.mxu1 %v13645_v56  ;;  %v17426_v56 = vld [vmem:[#allocation92_spill] sm:$0xff] }
 0x3b6   :  { %10950 = vmatmul.mubr.f32.gmra.mrb[20].mxu1 %v13658_v27  ;;  %v17425_v27 = vld [vmem:[#allocation88_spill] sm:$0xff] }
 0x3b7   :  { %10952 = vmatprep.mubr.f32.mxu1 %v13683_v60  ;;  %v17424_v60 = vld [vmem:[#allocation84_spill] sm:$0xff] }
 0x3ba   :  { %10953 = vmatmul.mubr.f32.gmra.mrb[22].mxu1 %v13701_v2  ;;  %v17423_v2 = vld [vmem:[#allocation80_spill] sm:$0xff] }
 0x3bb   :  { %10955 = vmatprep.mubr.f32.mxu1 %v13699_v54  ;;  %v17422_v54 = vld [vmem:[#allocation81_spill] sm:$0xff] }
 0x3be   :  { %10956 = vmatmul.mubr.f32.gmra.mrb[24].mxu1 %v13722_v50  ;;  %v17421_v50 = vld [vmem:[#allocation77_spill] sm:$0xff] }
 0x3bf   :  { %10958 = vmatprep.mubr.f32.mxu1 %v13736_v4  ;;  %v17420_v4 = vld [vmem:[#allocation73_spill] sm:$0xff] }
 0x3c2   :  { %10959 = vmatmul.mubr.f32.gmra.mrb[26].mxu1 %v13761_v36  ;;  %v17419_v36 = vld [vmem:[#allocation71_spill] sm:$0xff] }
 0x3c3   :  { %10961 = vmatprep.mubr.f32.mxu1 %v13725_v52  ;;  %v17418_v52 = vld [vmem:[#allocation76_spill] sm:$0xff] }
 0x3c6   :  { %10962 = vmatmul.mubr.f32.gmra.mrb[28].mxu1 %v13738_v38  ;;  %v17417_v38 = vld [vmem:[#allocation72_spill] sm:$0xff] }
 0x3c7   :  { %10964 = vmatprep.mubr.f32.mxu1 %v13763_v41  ;;  %v17416_v41 = vld [vmem:[#allocation68_spill] sm:$0xff] }
 0x3ca   :  { %10965 = vmatmul.mubr.f32.gmra.mrb[30].mxu1 %v13781_v23  ;;  %v17415_v23 = vld [vmem:[#allocation64_spill] sm:$0xff] }
 0x3cb   :  { %10967 = vmatprep.mubr.f32.mxu1 %v13779_v0  ;;  %v17414_v0 = vld [vmem:[#allocation65_spill] sm:$0xff] }
 0x3ce   :  { %10968 = vmatmul.mubr.f32.gmra.mrb[32].mxu1 %v13802_v57  ;;  %v17413_v57 = vld [vmem:[#allocation61_spill] sm:$0xff] }
 0x3cf   :  { %10970 = vmatprep.mubr.f32.mxu1 %v13816_v17  ;;  %v17412_v17 = vld [vmem:[#allocation57_spill] sm:$0xff] }
 0x3d2   :  { %10971 = vmatmul.mubr.f32.gmra.mrb[34].mxu1 %v13841_v61  ;;  %v17411_v61 = vld [vmem:[#allocation55_spill] sm:$0xff] }
 0x3d3   :  { %10973 = vmatprep.mubr.f32.mxu1 %v13805_v15  ;;  %v17410_v15 = vld [vmem:[#allocation60_spill] sm:$0xff] }
 0x3d6   :  { %10974 = vmatmul.mubr.f32.gmra.mrb[36].mxu1 %v13818_v63  ;;  %v17409_v63 = vld [vmem:[#allocation56_spill] sm:$0xff] }
 0x3d7   :  { %10976 = vmatprep.mubr.f32.mxu1 %v13843_v44  ;;  %v17408_v44 = vld [vmem:[#allocation52_spill] sm:$0xff] }
 0x3da   :  { %10977 = vmatmul.mubr.f32.gmra.mrb[38].mxu1 %v13861_v40  ;;  %v17407_v40 = vld [vmem:[#allocation48_spill] sm:$0xff] }
 0x3db   :  { %10979 = vmatprep.mubr.f32.mxu1 %v17366_v47  ;;  %v17406_v47 = vld [vmem:[#allocation49_spill] sm:$0xff] }
 0x3de   :  { %10980 = vmatmul.mubr.f32.gmra.mrb[40].mxu1 %v17367_v11  ;;  %v17405_v11 = vld [vmem:[#allocation45_spill] sm:$0xff] }
 0x3df   :  { %10982 = vmatprep.mubr.f32.mxu1 %v17368_v12  ;;  %v17404_v12 = vld [vmem:[#allocation41_spill] sm:$0xff] }
 0x3e2   :  { %10983 = vmatmul.mubr.f32.gmra.mrb[42].mxu1 %v17369_v62  ;;  %v17403_v62 = vld [vmem:[#allocation39_spill] sm:$0xff] }
 0x3e3   :  { %10985 = vmatprep.mubr.f32.mxu1 %v17370_v1  ;;  %v17380_v1 = vld [vmem:[#allocation127_spill] sm:$0xff] }
 0x3e6   :  { %10986 = vmatmul.mubr.f32.gmra.mrb[44].mxu1 %v17371_v7  ;;  %v17381_v7 = vld [vmem:[#allocation126_spill] sm:$0xff] }
 0x3e7   :  { %10988 = vmatprep.mubr.f32.mxu1 %v17372_v59  ;;  %v17382_v59 = vld [vmem:[#allocation130_spill] sm:$0xff] }
 0x3ea   :  { %10989 = vmatmul.mubr.f32.gmra.mrb[46].mxu1 %v17373_v51  ;;  %v17383_v51 = vld [vmem:[#allocation133_spill] sm:$0xff] }
 0x3eb   :  { %10991 = vmatprep.mubr.f32.mxu1 %v17374_v58 }
 0x3ee   :  { %10992 = vmatmul.mubr.f32.gmra.mrb[48].mxu1 %v17375_v53  ;;  %v17384_v53 = vld [vmem:[#allocation131_spill] sm:$0xff] }
 0x3ef   :  { %10994 = vmatprep.mubr.f32.mxu1 %v13977_v28  ;;  %v17385_v28 = vld [vmem:[#allocation134_spill] sm:$0xff] }
 0x3f2   :  { %10995 = vmatmul.mubr.f32.gmra.mrb[50].mxu1 %v17376_v8  ;;  %v17386_v8 = vld [vmem:[#allocation137_spill] sm:$0xff] }
 0x3f3   :  { %10997 = vmatprep.mubr.f32.mxu1 %v17377_v45  ;;  %v17391_v45 = vld [vmem:[#allocation15_spill] sm:$0xff] }
 0x3f6   :  { %10998 = vmatmul.mubr.f32.gmra.mrb[52].mxu1 %v17378_v32  ;;  %v17387_v32 = vld [vmem:[#allocation17_spill] sm:$0xff] }
 0x3f7   :  { %11000 = vmatprep.mubr.f32.mxu1 %v17379_v39  ;;  %v17388_v39 = vld [vmem:[#allocation20_spill] sm:$0xff] }
 0x3fa   :  { %11001 = vmatmul.mubr.f32.gmra.mrb[54].mxu1 %v17380_v1  ;;  %v17389_v1 = vld [vmem:[#allocation14_spill] sm:$0xff] }
 0x3fb   :  { %11003 = vmatprep.mubr.f32.mxu1 %v17381_v7  ;;  %v17390_v7 = vand.u32 4294901760, %v17389_v1  ;;  %v17399_v1 = vld [vmem:[#allocation28_spill] sm:$0xff] }
 0x3fe   :  { %11004 = vmatmul.mubr.f32.gmra.mrb[56].mxu1 %v17382_v59  ;;  %v17392_v59 = vand.u32 4294901760, %v17391_v45  ;;  %v17400_v45 = vld [vmem:[#allocation35_spill] sm:$0xff] }
 0x3ff   :  { %11006 = vmatprep.mubr.f32.mxu1 %v17383_v51  ;;  %v17393_v51 = vld [vmem:[#allocation24_spill] sm:$0xff] }
 0x400   :  { %v14193_v58 = vpack.c.bf16 %v17392_v59, %v17390_v7  ;;  %v17401_v7 = vld [vmem:[#allocation40_spill] sm:$0xff] }
 0x401   :  { %v17402_v59 = vld [vmem:[#allocation44_spill] sm:$0xff] }
 0x402   :  { %11007 = vmatmul.mubr.f32.gmra.mrb[58].mxu1 %v14079_v26  ;;  %v17398_v26 = vld [vmem:[#allocation30_spill] sm:$0xff] }
 0x403   :  { %11009 = vmatprep.mubr.f32.mxu1 %v17384_v53  ;;  %v17397_v53 = vld [vmem:[#allocation31_spill] sm:$0xff] }
 0x406   :  { %11010 = vmatmul.mubr.f32.gmra.mrb[60].mxu1 %v17385_v28  ;;  %v17394_v28 = vld [vmem:[#allocation29_spill] sm:$0xff] }
 0x407   :  { %11012 = vmatprep.mubr.f32.mxu1 %v17386_v8  ;;  %v17395_v8 = vld [vmem:[#allocation23_spill] sm:$0xff] }
 0x40a   :  { %11013 = vmatmul.mubr.f32.gmra.mrb[62].mxu1 %v14099_v5  ;;  %v17396_v5 = vld [vmem:[#allocation25_spill] sm:$0xff] }
 0x40b   :  { %11019 = vmatprep.mubr.f32.mxu1 %v17387_v32 }
 0x40e   :  { %11020 = vmatmul.mubr.f32.vlgmr.msra.gmra.mrb[0].mxu1 %v17388_v39 }
 0x40f   :  { %11022 = vmatprep.mubr.f32.mxu1 %v17393_v51  ;;  %11838 = vmatpush3.bf16.msra.mxu1 %v13456_v22 }
 0x410   :  { %11840 = vmatprep.subr.bf16.mxu1 %v14193_v58 }
 0x412   :  { %11023 = vmatmul.mubr.f32.gmra.mrb[2].mxu1 %v17394_v28 }
 0x413   :  { %11025 = vmatprep.mubr.f32.mxu1 %v17395_v8 }
 0x416   :  { %11026 = vmatmul.mubr.f32.gmra.mrb[4].mxu1 %v17396_v5 }
 0x417   :  { %11028 = vmatprep.mubr.f32.mxu1 %v17397_v53 }
 0x41a   :  { %11029 = vmatmul.mubr.f32.gmra.mrb[6].mxu1 %v17398_v26 }
 0x41b   :  { %11031 = vmatprep.mubr.f32.mxu1 %v17399_v1 }
 0x41e   :  { %11032 = vmatmul.mubr.f32.gmra.mrb[8].mxu1 %v17400_v45 }
 0x41f   :  { %11034 = vmatprep.mubr.f32.mxu1 %v17401_v7 }
 0x422   :  { %11035 = vmatmul.mubr.f32.gmra.mrb[10].mxu1 %v17402_v59 }
 0x423   :  { %11037 = vmatprep.mubr.f32.mxu1 %v17403_v62 }
 0x426   :  { %11038 = vmatmul.mubr.f32.gmra.mrb[12].mxu1 %v17404_v12 }
 0x427   :  { %11040 = vmatprep.mubr.f32.mxu1 %v17405_v11 }
 0x42a   :  { %11041 = vmatmul.mubr.f32.gmra.mrb[14].mxu1 %v17406_v47 }
 0x42b   :  { %11043 = vmatprep.mubr.f32.mxu1 %v17407_v40 }
 0x42e   :  { %11044 = vmatmul.mubr.f32.gmra.mrb[16].mxu1 %v17408_v44 }
 0x42f   :  { %11046 = vmatprep.mubr.f32.mxu1 %v17409_v63 }
 0x432   :  { %11047 = vmatmul.mubr.f32.gmra.mrb[18].mxu1 %v17410_v15 }
 0x433   :  { %11049 = vmatprep.mubr.f32.mxu1 %v17411_v61 }
 0x436   :  { %11050 = vmatmul.mubr.f32.gmra.mrb[20].mxu1 %v17412_v17 }
 0x437   :  { %11052 = vmatprep.mubr.f32.mxu1 %v17413_v57 }
 0x43a   :  { %11053 = vmatmul.mubr.f32.gmra.mrb[22].mxu1 %v17414_v0 }
 0x43b   :  { %11055 = vmatprep.mubr.f32.mxu1 %v17415_v23 }
 0x43e   :  { %11056 = vmatmul.mubr.f32.gmra.mrb[24].mxu1 %v17416_v41 }
 0x43f   :  { %11058 = vmatprep.mubr.f32.mxu1 %v17417_v38 }
 0x442   :  { %11059 = vmatmul.mubr.f32.gmra.mrb[26].mxu1 %v17418_v52 }
 0x443   :  { %11061 = vmatprep.mubr.f32.mxu1 %v17419_v36 }
 0x446   :  { %11062 = vmatmul.mubr.f32.gmra.mrb[28].mxu1 %v17420_v4 }
 0x447   :  { %11064 = vmatprep.mubr.f32.mxu1 %v17421_v50 }
 0x44a   :  { %11065 = vmatmul.mubr.f32.gmra.mrb[30].mxu1 %v17422_v54 }
 0x44b   :  { %11067 = vmatprep.mubr.f32.mxu1 %v17423_v2 }
 0x44e   :  { %11068 = vmatmul.mubr.f32.gmra.mrb[32].mxu1 %v17424_v60 }
 0x44f   :  { %11070 = vmatprep.mubr.f32.mxu1 %v17425_v27 }
 0x452   :  { %11071 = vmatmul.mubr.f32.gmra.mrb[34].mxu1 %v17426_v56 }
 0x453   :  { %11073 = vmatprep.mubr.f32.mxu1 %v17427_v43 }
 0x456   :  { %11074 = vmatmul.mubr.f32.gmra.mrb[36].mxu1 %v17428_v24 }
 0x457   :  { %11076 = vmatprep.mubr.f32.mxu1 %v17429_v16 }
 0x45a   :  { %11077 = vmatmul.mubr.f32.gmra.mrb[38].mxu1 %v17430_v21 }
 0x45b   :  { %11079 = vmatprep.mubr.f32.mxu1 %v17431_v49 }
 0x45e   :  { %11080 = vmatmul.mubr.f32.gmra.mrb[40].mxu1 %v17432_v34 }
 0x45f   :  { %11082 = vmatprep.mubr.f32.mxu1 %v17433_v42 }
 0x462   :  { %11083 = vmatmul.mubr.f32.gmra.mrb[42].mxu1 %v17434_v33 }
 0x463   :  { %11085 = vmatprep.mubr.f32.mxu1 %v17435_v19 }
 0x466   :  { %11086 = vmatmul.mubr.f32.gmra.mrb[44].mxu1 %v17436_v31  ;;  %v17447_v31 = vld [vmem:[#allocation128_spill] sm:$0xff] }
 0x467   :  { %11088 = vmatprep.mubr.f32.mxu1 %v17437_v14  ;;  %v17448_v14 = vld [vmem:[#allocation132_spill] sm:$0xff] }
 0x46a   :  { %11089 = vmatmul.mubr.f32.gmra.mrb[46].mxu1 %v17438_v55 }
 0x46b   :  { %11091 = vmatprep.mubr.f32.mxu1 %v17439_v35 }
 0x46e   :  { %11092 = vmatmul.mubr.f32.gmra.mrb[48].mxu1 %v17440_v48 }
 0x46f   :  { %11094 = vmatprep.mubr.f32.mxu1 %v17441_v25 }
 0x472   :  { %11095 = vmatmul.mubr.f32.gmra.mrb[50].mxu1 %v17442_v30 }
 0x473   :  { %11097 = vmatprep.mubr.f32.mxu1 %v17443_v29 }
 0x476   :  { %11098 = vmatmul.mubr.f32.gmra.mrb[52].mxu1 %v17444_v46 }
 0x477   :  { %11100 = vmatprep.mubr.f32.mxu1 %v17445_v6  ;;  %v17449_v6 = vand.u32 4294901760, %v17387_v32  ;;  %v17458_v32 = vand.u32 4294901760, %v17400_v45  ;;  %v17504_v45 = vand.u32 4294901760, %v17444_v46  ;;  %v17514_v46 = vld [vmem:[#allocation135_spill] sm:$0xff] }
 0x47a   :  { %11101 = vmatmul.mubr.f32.gmra.mrb[54].mxu1 %v17446_v9  ;;  %v17450_v9 = vand.u32 4294901760, %v17388_v39  ;;  %v17464_v39 = vand.u32 4294901760, %v17406_v47  ;;  %v17471_v47 = vand.u32 4294901760, %v17413_v57  ;;  %v17478_v57 = vand.u32 4294901760, %v17420_v4 }
 0x47b   :  { %11103 = vmatprep.mubr.f32.mxu1 %v17447_v31  ;;  %v17485_v4 = vand.u32 4294901760, %v17427_v43  ;;  %v17492_v43 = vand.u32 4294901760, %v17434_v33  ;;  %v17501_v33 = vand.u32 4294901760, %v17441_v25  ;;  %v17510_v25 = vld [vmem:[#allocation132_spill] sm:$0xff] }
 0x47e   :  { %11104 = vmatmul.mubr.f32.gmra.mrb[56].mxu1 %v17448_v14  ;;  %v17451_v14 = vand.u32 4294901760, %v17393_v51  ;;  %v17467_v51 = vand.u32 4294901760, %v17409_v63  ;;  %v17474_v63 = vand.u32 4294901760, %v17416_v41  ;;  %v17481_v41 = vand.u32 4294901760, %v17423_v2 }
 0x47f   :  { %11106 = vmatprep.mubr.f32.mxu1 %v14071_v13  ;;  %v17488_v2 = vand.u32 4294901760, %v17430_v21  ;;  %v17496_v21 = vld [vmem:[#allocation109_spill] sm:$0xff] }
 0x482   :  { %11107 = vmatmul.mubr.f32.gmra.mrb[58].mxu1 %v14088_v37 }
 0x483   :  { %11109 = vmatprep.mubr.f32.mxu1 %v14065_v3  ;;  %v17452_v3 = vand.u32 4294901760, %v17394_v28  ;;  %v17459_v28 = vand.u32 4294901760, %v17401_v7 }
 0x486   :  { %11110 = vmatmul.mubr.f32.gmra.mrb[60].mxu1 %v14074_v10 }
 0x487   :  { %11112 = vmatprep.mubr.f32.mxu1 %v14091_v20  ;;  %v17453_v20 = vand.u32 4294901760, %v17395_v8  ;;  %v17466_v8 = vand.u32 4294901760, %v17408_v44  ;;  %v17473_v44 = vand.u32 4294901760, %v17415_v23  ;;  %v17480_v23 = vand.u32 4294901760, %v17422_v54 }
 0x488   :  { %v17487_v54 = vand.u32 4294901760, %v17429_v16  ;;  %v17494_v16 = vld [vmem:[#allocation105_spill] sm:$0xff] }
 0x48a   :  { %11113 = vmatmul.mubr.f32.gmra.mrb[62].mxu1 %v14106_v18  ;;  %v17454_v18 = vand.u32 4294901760, %v17396_v5  ;;  %v17465_v5 = vand.u32 4294901760, %v17407_v40  ;;  %v17472_v40 = vand.u32 4294901760, %v17414_v0  ;;  %v17479_v0 = vand.u32 4294901760, %v17421_v50 }
 0x48b   :  { %11119 = vmatprep.mubr.f32.mxu1 %v17449_v6  ;;  %v17455_v6 = vand.u32 4294901760, %v17397_v53  ;;  %v17486_v50 = vand.u32 4294901760, %v17428_v24  ;;  %v17493_v24 = vand.u32 4294901760, %v17435_v19  ;;  %v17497_v53 = vand.u32 4294901760, %v17496_v21  ;;  %v17560_v21 = vld [vmem:[#allocation95_spill] sm:$0xff] }
 0x48c   :  { %v17502_v19 = vand.u32 4294901760, %v17442_v30  ;;  %v17512_v30 = vand.u32 4294901760, %v14071_v13  ;;  %v17523_v13 = vld [vmem:[#allocation21_spill] sm:$0xff] }
 0x48e   :  { %11120 = vmatmul.mubr.f32.vlgmr.msra.gmra.mrb[0].mxu1 %v17450_v9  ;;  %v17456_v9 = vand.u32 4294901760, %v17398_v26  ;;  %v17463_v26 = vand.u32 4294901760, %v17405_v11  ;;  %v17470_v11 = vand.u32 4294901760, %v17412_v17  ;;  %v17477_v17 = vand.u32 4294901760, %v17419_v36 }
 0x48f   :  { %11122 = vmatprep.mubr.f32.mxu1 %v17451_v14  ;;  %11842 = vmatpush3.bf16.msra.mxu1 %v14193_v58  ;;  %v17457_v14 = vand.u32 4294901760, %v17399_v1  ;;  %v17484_v36 = vand.u32 4294901760, %v17426_v56  ;;  %v17491_v56 = vand.u32 4294901760, %v17433_v42  ;;  %v17495_v58 = vand.u32 4294901760, %v17494_v16  ;;  %v17558_v16 = vld [vmem:[#allocation86_spill] sm:$0xff] }
 0x490   :  { %11844 = vmatprep.subr.bf16.mxu1 %v13456_v22  ;;  %v17500_v42 = vand.u32 4294901760, %v17440_v48  ;;  %v17503_v1 = vand.u32 4294901760, %v17443_v29  ;;  %v17509_v48 = vand.u32 4294901760, %v17447_v31  ;;  %v17513_v29 = vand.u32 4294901760, %v14088_v37  ;;  %v17519_v31 = vld [vmem:[#allocation140_spill] sm:$0xff]  ;;  %v17524_v37 = vld [vmem:[#allocation26_spill] sm:$0xff] }
 0x492   :  { %11123 = vmatmul.mubr.f32.gmra.mrb[2].mxu1 %v17452_v3  ;;  %v17460_v3 = vand.u32 4294901760, %v17402_v59 }
 0x493   :  { %11125 = vmatprep.mubr.f32.mxu1 %v17453_v20  ;;  %v17462_v20 = vand.u32 4294901760, %v17404_v12  ;;  %v17469_v12 = vand.u32 4294901760, %v17411_v61  ;;  %v17476_v61 = vand.u32 4294901760, %v17418_v52  ;;  %v17483_v52 = vand.u32 4294901760, %v17425_v27 }
 0x494   :  { %v17490_v27 = vand.u32 4294901760, %v17432_v34  ;;  %v17499_v34 = vand.u32 4294901760, %v17439_v35  ;;  %v17507_v35 = vld [vmem:[#allocation129_spill] sm:$0xff] }
 0x495   :  { %v17508_v59 = vand.u32 4294901760, %v17507_v35  ;;  %v17571_v35 = vld [vmem:[#allocation117_spill] sm:$0xff] }
 0x496   :  { %11126 = vmatmul.mubr.f32.gmra.mrb[4].mxu1 %v17454_v18  ;;  %v17461_v18 = vand.u32 4294901760, %v17403_v62  ;;  %v17468_v62 = vand.u32 4294901760, %v17410_v15  ;;  %v17475_v15 = vand.u32 4294901760, %v17417_v38  ;;  %v17482_v38 = vand.u32 4294901760, %v17424_v60 }
 0x497   :  { %11128 = vmatprep.mubr.f32.mxu1 %v17455_v6  ;;  %v17489_v60 = vand.u32 4294901760, %v17431_v49  ;;  %v17498_v49 = vand.u32 4294901760, %v17438_v55  ;;  %v17505_v55 = vld [vmem:[#allocation125_spill] sm:$0xff]  ;;  %v17511_v6 = vand.u32 4294901760, %v17510_v25  ;;  %v17574_v25 = vld [vmem:[#allocation118_spill] sm:$0xff] }
 0x498   :  { %v17506_v7 = vand.u32 4294901760, %v17505_v55  ;;  %v17569_v55 = vld [vmem:[#allocation110_spill] sm:$0xff] }
 0x49a   :  { %11129 = vmatmul.mubr.f32.gmra.mrb[6].mxu1 %v17456_v9  ;;  %v17515_v9 = vand.u32 4294901760, %v17514_v46  ;;  %v17578_v46 = vld [vmem:[#allocation130_spill] sm:$0xff] }
 0x49b   :  { %11131 = vmatprep.mubr.f32.mxu1 %v17457_v14  ;;  %v17516_v14 = vand.u32 4294901760, %v14074_v10  ;;  %v17526_v10 = vld [vmem:[#allocation22_spill] sm:$0xff] }
 0x49e   :  { %11132 = vmatmul.mubr.f32.gmra.mrb[8].mxu1 %v17458_v32  ;;  %v17517_v32 = vld [vmem:[#allocation138_spill] sm:$0xff] }
 0x49f   :  { %11134 = vmatprep.mubr.f32.mxu1 %v17459_v28  ;;  %v17518_v28 = vand.u32 4294901760, %v17517_v32  ;;  %v17581_v32 = vld [vmem:[#allocation131_spill] sm:$0xff] }
 0x4a2   :  { %11135 = vmatmul.mubr.f32.gmra.mrb[10].mxu1 %v17460_v3  ;;  %v17520_v3 = vand.u32 4294901760, %v17519_v31  ;;  %v17583_v31 = vld [vmem:[#allocation137_spill] sm:$0xff] }
 0x4a3   :  { %11137 = vmatprep.mubr.f32.mxu1 %v17461_v18  ;;  %v17521_v18 = vld [vmem:[#allocation16_spill] sm:$0xff] }
 0x4a6   :  { %11138 = vmatmul.mubr.f32.gmra.mrb[12].mxu1 %v17462_v20  ;;  %v17522_v20 = vld [vmem:[#allocation18_spill] sm:$0xff] }
 0x4a7   :  { %11140 = vmatprep.mubr.f32.mxu1 %v17463_v26  ;;  %v17525_v26 = vld [vmem:[#allocation19_spill] sm:$0xff] }
 0x4aa   :  { %11141 = vmatmul.mubr.f32.gmra.mrb[14].mxu1 %v17464_v39  ;;  %v17527_v39 = vld [vmem:[#allocation27_spill] sm:$0xff] }
 0x4ab   :  { %11143 = vmatprep.mubr.f32.mxu1 %v17465_v5  ;;  %v17528_v5 = vld [vmem:[#allocation36_spill] sm:$0xff] }
 0x4ae   :  { %11144 = vmatmul.mubr.f32.gmra.mrb[16].mxu1 %v17466_v8  ;;  %v17529_v8 = vld [vmem:[#allocation33_spill] sm:$0xff] }
 0x4af   :  { %11146 = vmatprep.mubr.f32.mxu1 %v17467_v51  ;;  %v17530_v51 = vld [vmem:[#allocation32_spill] sm:$0xff] }
 0x4b2   :  { %11147 = vmatmul.mubr.f32.gmra.mrb[18].mxu1 %v17468_v62  ;;  %v17531_v62 = vld [vmem:[#allocation37_spill] sm:$0xff] }
 0x4b3   :  { %11149 = vmatprep.mubr.f32.mxu1 %v17469_v12  ;;  %v17532_v12 = vld [vmem:[#allocation42_spill] sm:$0xff] }
 0x4b6   :  { %11150 = vmatmul.mubr.f32.gmra.mrb[20].mxu1 %v17470_v11  ;;  %v17533_v11 = vld [vmem:[#allocation34_spill] sm:$0xff] }
 0x4b7   :  { %11152 = vmatprep.mubr.f32.mxu1 %v17471_v47  ;;  %v17535_v47 = vld [vmem:[#allocation43_spill] sm:$0xff] }
 0x4ba   :  { %11153 = vmatmul.mubr.f32.gmra.mrb[22].mxu1 %v17472_v40  ;;  %v17536_v40 = vld [vmem:[#allocation47_spill] sm:$0xff] }
 0x4bb   :  { %11155 = vmatprep.mubr.f32.mxu1 %v17473_v44  ;;  %v17537_v44 = vld [vmem:[#allocation46_spill] sm:$0xff] }
 0x4be   :  { %11156 = vmatmul.mubr.f32.gmra.mrb[24].mxu1 %v17474_v63  ;;  %v17538_v63 = vld [vmem:[#allocation50_spill] sm:$0xff] }
 0x4bf   :  { %11158 = vmatprep.mubr.f32.mxu1 %v17475_v15  ;;  %v17539_v15 = vld [vmem:[#allocation53_spill] sm:$0xff] }
 0x4c2   :  { %11159 = vmatmul.mubr.f32.gmra.mrb[26].mxu1 %v17476_v61  ;;  %v17540_v61 = vld [vmem:[#allocation58_spill] sm:$0xff] }
 0x4c3   :  { %11161 = vmatprep.mubr.f32.mxu1 %v17477_v17  ;;  %v17541_v17 = vld [vmem:[#allocation51_spill] sm:$0xff] }
 0x4c6   :  { %11162 = vmatmul.mubr.f32.gmra.mrb[28].mxu1 %v17478_v57  ;;  %v17542_v57 = vld [vmem:[#allocation54_spill] sm:$0xff] }
 0x4c7   :  { %11164 = vmatprep.mubr.f32.mxu1 %v17479_v0  ;;  %v17543_v0 = vld [vmem:[#allocation59_spill] sm:$0xff] }
 0x4ca   :  { %11165 = vmatmul.mubr.f32.gmra.mrb[30].mxu1 %v17480_v23  ;;  %v17544_v23 = vld [vmem:[#allocation63_spill] sm:$0xff] }
 0x4cb   :  { %11167 = vmatprep.mubr.f32.mxu1 %v17481_v41  ;;  %v17545_v41 = vld [vmem:[#allocation62_spill] sm:$0xff] }
 0x4ce   :  { %11168 = vmatmul.mubr.f32.gmra.mrb[32].mxu1 %v17482_v38  ;;  %v17546_v38 = vld [vmem:[#allocation66_spill] sm:$0xff] }
 0x4cf   :  { %11170 = vmatprep.mubr.f32.mxu1 %v17483_v52  ;;  %v17547_v52 = vld [vmem:[#allocation69_spill] sm:$0xff] }
 0x4d2   :  { %11171 = vmatmul.mubr.f32.gmra.mrb[34].mxu1 %v17484_v36  ;;  %v17548_v36 = vld [vmem:[#allocation74_spill] sm:$0xff] }
 0x4d3   :  { %11173 = vmatprep.mubr.f32.mxu1 %v17485_v4  ;;  %v17549_v4 = vld [vmem:[#allocation67_spill] sm:$0xff] }
 0x4d6   :  { %11174 = vmatmul.mubr.f32.gmra.mrb[36].mxu1 %v17486_v50  ;;  %v17550_v50 = vld [vmem:[#allocation70_spill] sm:$0xff] }
 0x4d7   :  { %11176 = vmatprep.mubr.f32.mxu1 %v17487_v54  ;;  %v17551_v54 = vld [vmem:[#allocation75_spill] sm:$0xff] }
 0x4da   :  { %11177 = vmatmul.mubr.f32.gmra.mrb[38].mxu1 %v17488_v2  ;;  %v17552_v2 = vld [vmem:[#allocation79_spill] sm:$0xff] }
 0x4db   :  { %11179 = vmatprep.mubr.f32.mxu1 %v17489_v60  ;;  %v17553_v60 = vld [vmem:[#allocation78_spill] sm:$0xff] }
 0x4de   :  { %11180 = vmatmul.mubr.f32.gmra.mrb[40].mxu1 %v17490_v27  ;;  %v17554_v27 = vld [vmem:[#allocation82_spill] sm:$0xff] }
 0x4df   :  { %11182 = vmatprep.mubr.f32.mxu1 %v17491_v56  ;;  %v17555_v56 = vld [vmem:[#allocation85_spill] sm:$0xff] }
 0x4e2   :  { %11183 = vmatmul.mubr.f32.gmra.mrb[42].mxu1 %v17492_v43  ;;  %v17556_v43 = vld [vmem:[#allocation90_spill] sm:$0xff] }
 0x4e3   :  { %11185 = vmatprep.mubr.f32.mxu1 %v17493_v24  ;;  %v17557_v24 = vld [vmem:[#allocation83_spill] sm:$0xff] }
 0x4e6   :  { %11186 = vmatmul.mubr.f32.gmra.mrb[44].mxu1 %v17495_v58  ;;  %v17559_v58 = vld [vmem:[#allocation91_spill] sm:$0xff] }
 0x4e7   :  { %11188 = vmatprep.mubr.f32.mxu1 %v17497_v53  ;;  %v17561_v53 = vld [vmem:[#allocation94_spill] sm:$0xff] }
 0x4ea   :  { %11189 = vmatmul.mubr.f32.gmra.mrb[46].mxu1 %v17498_v49  ;;  %v17562_v49 = vld [vmem:[#allocation98_spill] sm:$0xff] }
 0x4eb   :  { %11191 = vmatprep.mubr.f32.mxu1 %v17499_v34  ;;  %v17563_v34 = vld [vmem:[#allocation101_spill] sm:$0xff] }
 0x4ee   :  { %11192 = vmatmul.mubr.f32.gmra.mrb[48].mxu1 %v17500_v42  ;;  %v17564_v42 = vld [vmem:[#allocation106_spill] sm:$0xff] }
 0x4ef   :  { %11194 = vmatprep.mubr.f32.mxu1 %v17501_v33  ;;  %v17565_v33 = vld [vmem:[#allocation99_spill] sm:$0xff] }
 0x4f2   :  { %11195 = vmatmul.mubr.f32.gmra.mrb[50].mxu1 %v17502_v19  ;;  %v17566_v19 = vld [vmem:[#allocation102_spill] sm:$0xff] }
 0x4f3   :  { %11197 = vmatprep.mubr.f32.mxu1 %v17503_v1  ;;  %v17567_v1 = vld [vmem:[#allocation107_spill] sm:$0xff] }
 0x4f6   :  { %11198 = vmatmul.mubr.f32.gmra.mrb[52].mxu1 %v17504_v45  ;;  %v17568_v45 = vld [vmem:[#allocation111_spill] sm:$0xff] }
 0x4f7   :  { %11200 = vmatprep.mubr.f32.mxu1 %v17506_v7  ;;  %v17570_v7 = vld [vmem:[#allocation114_spill] sm:$0xff] }
 0x4fa   :  { %11201 = vmatmul.mubr.f32.gmra.mrb[54].mxu1 %v17508_v59  ;;  %v17572_v59 = vld [vmem:[#allocation122_spill] sm:$0xff] }
 0x4fb   :  { %11203 = vmatprep.mubr.f32.mxu1 %v17509_v48  ;;  %v17573_v48 = vld [vmem:[#allocation115_spill] sm:$0xff] }
 0x4fe   :  { %11204 = vmatmul.mubr.f32.gmra.mrb[56].mxu1 %v17511_v6  ;;  %v17575_v6 = vld [vmem:[#allocation123_spill] sm:$0xff] }
 0x4ff   :  { %11206 = vmatprep.mubr.f32.mxu1 %v17512_v30  ;;  %v17576_v30 = vld [vmem:[#allocation127_spill] sm:$0xff] }
 0x502   :  { %11207 = vmatmul.mubr.f32.gmra.mrb[58].mxu1 %v17513_v29  ;;  %v17577_v29 = vld [vmem:[#allocation126_spill] sm:$0xff] }
 0x503   :  { %11209 = vmatprep.mubr.f32.mxu1 %v17515_v9  ;;  %v17579_v9 = vld [vmem:[#allocation133_spill] sm:$0xff] }
 0x506   :  { %11210 = vmatmul.mubr.f32.gmra.mrb[60].mxu1 %v17516_v14  ;;  %v17580_v14 = vld [vmem:[#allocation136_spill] sm:$0xff] }
 0x507   :  { %11212 = vmatprep.mubr.f32.mxu1 %v17518_v28  ;;  %v17582_v28 = vld [vmem:[#allocation134_spill] sm:$0xff] }
 0x50a   :  { %11213 = vmatmul.mubr.f32.gmra.mrb[62].mxu1 %v17520_v3  ;;  %v17584_v3 = vld [vmem:[#allocation139_spill] sm:$0xff] }
 0x50b   :  { %11219 = vmatprep.mubr.f32.mxu1 %v17521_v18 }
 0x50e   :  { %11220 = vmatmul.mubr.f32.vlgmr.msra.gmra.mrb[0].mxu1 %v17522_v20 }
 0x50f   :  { %11222 = vmatprep.mubr.f32.mxu1 %v17523_v13  ;;  %11846 = vmatpush3.bf16.msra.mxu1 %v13456_v22  ;;  %v17534_v22 = vld [vmem:[#allocation38_spill] sm:$0xff] }
 0x512   :  { %11223 = vmatmul.mubr.f32.gmra.mrb[2].mxu1 %v17524_v37 }
 0x513   :  { %11225 = vmatprep.mubr.f32.mxu1 %v17525_v26 }
 0x516   :  { %11226 = vmatmul.mubr.f32.gmra.mrb[4].mxu1 %v17526_v10 }
 0x517   :  { %11228 = vmatprep.mubr.f32.mxu1 %v17527_v39 }
 0x51a   :  { %11229 = vmatmul.mubr.f32.gmra.mrb[6].mxu1 %v17528_v5 }
 0x51b   :  { %11231 = vmatprep.mubr.f32.mxu1 %v17529_v8 }
 0x51e   :  { %11232 = vmatmul.mubr.f32.gmra.mrb[8].mxu1 %v17530_v51 }
 0x51f   :  { %11234 = vmatprep.mubr.f32.mxu1 %v17531_v62 }
 0x522   :  { %11235 = vmatmul.mubr.f32.gmra.mrb[10].mxu1 %v17532_v12 }
 0x523   :  { %11237 = vmatprep.mubr.f32.mxu1 %v17533_v11 }
 0x526   :  { %11238 = vmatmul.mubr.f32.gmra.mrb[12].mxu1 %v17534_v22 }
 0x527   :  { %11240 = vmatprep.mubr.f32.mxu1 %v17535_v47 }
 0x52a   :  { %11241 = vmatmul.mubr.f32.gmra.mrb[14].mxu1 %v17536_v40 }
 0x52b   :  { %11243 = vmatprep.mubr.f32.mxu1 %v17537_v44 }
 0x52e   :  { %11244 = vmatmul.mubr.f32.gmra.mrb[16].mxu1 %v17538_v63 }
 0x52f   :  { %11246 = vmatprep.mubr.f32.mxu1 %v17539_v15 }
 0x532   :  { %11247 = vmatmul.mubr.f32.gmra.mrb[18].mxu1 %v17540_v61 }
 0x533   :  { %11249 = vmatprep.mubr.f32.mxu1 %v17541_v17 }
 0x536   :  { %11250 = vmatmul.mubr.f32.gmra.mrb[20].mxu1 %v17542_v57 }
 0x537   :  { %11252 = vmatprep.mubr.f32.mxu1 %v17543_v0 }
 0x53a   :  { %11253 = vmatmul.mubr.f32.gmra.mrb[22].mxu1 %v17544_v23 }
 0x53b   :  { %11255 = vmatprep.mubr.f32.mxu1 %v17545_v41 }
 0x53e   :  { %11256 = vmatmul.mubr.f32.gmra.mrb[24].mxu1 %v17546_v38 }
 0x53f   :  { %11258 = vmatprep.mubr.f32.mxu1 %v17547_v52 }
 0x542   :  { %11259 = vmatmul.mubr.f32.gmra.mrb[26].mxu1 %v17548_v36 }
 0x543   :  { %11261 = vmatprep.mubr.f32.mxu1 %v17549_v4 }
 0x546   :  { %11262 = vmatmul.mubr.f32.gmra.mrb[28].mxu1 %v17550_v50 }
 0x547   :  { %11264 = vmatprep.mubr.f32.mxu1 %v17551_v54 }
 0x54a   :  { %11265 = vmatmul.mubr.f32.gmra.mrb[30].mxu1 %v17552_v2 }
 0x54b   :  { %11267 = vmatprep.mubr.f32.mxu1 %v17553_v60 }
 0x54e   :  { %11268 = vmatmul.mubr.f32.gmra.mrb[32].mxu1 %v17554_v27 }
 0x54f   :  { %11270 = vmatprep.mubr.f32.mxu1 %v17555_v56 }
 0x552   :  { %11271 = vmatmul.mubr.f32.gmra.mrb[34].mxu1 %v17556_v43 }
 0x553   :  { %11273 = vmatprep.mubr.f32.mxu1 %v17557_v24 }
 0x556   :  { %11274 = vmatmul.mubr.f32.gmra.mrb[36].mxu1 %v17558_v16 }
 0x557   :  { %11276 = vmatprep.mubr.f32.mxu1 %v17559_v58 }
 0x55a   :  { %11277 = vmatmul.mubr.f32.gmra.mrb[38].mxu1 %v17560_v21 }
 0x55b   :  { %11279 = vmatprep.mubr.f32.mxu1 %v17561_v53 }
 0x55e   :  { %11280 = vmatmul.mubr.f32.gmra.mrb[40].mxu1 %v17562_v49 }
 0x55f   :  { %11282 = vmatprep.mubr.f32.mxu1 %v17563_v34 }
 0x562   :  { %11283 = vmatmul.mubr.f32.gmra.mrb[42].mxu1 %v17564_v42 }
 0x563   :  { %11285 = vmatprep.mubr.f32.mxu1 %v17565_v33 }
 0x566   :  { %11286 = vmatmul.mubr.f32.gmra.mrb[44].mxu1 %v17566_v19 }
 0x567   :  { %11288 = vmatprep.mubr.f32.mxu1 %v17567_v1 }
 0x56a   :  { %11289 = vmatmul.mubr.f32.gmra.mrb[46].mxu1 %v17568_v45 }
 0x56b   :  { %11291 = vmatprep.mubr.f32.mxu1 %v17569_v55 }
 0x56e   :  { %11292 = vmatmul.mubr.f32.gmra.mrb[48].mxu1 %v17570_v7 }
 0x56f   :  { %11294 = vmatprep.mubr.f32.mxu1 %v17571_v35 }
 0x572   :  { %11295 = vmatmul.mubr.f32.gmra.mrb[50].mxu1 %v17572_v59 }
 0x573   :  { %11297 = vmatprep.mubr.f32.mxu1 %v17573_v48 }
 0x576   :  { %11298 = vmatmul.mubr.f32.gmra.mrb[52].mxu1 %v17574_v25 }
 0x577   :  { %11300 = vmatprep.mubr.f32.mxu1 %v17575_v6 }
 0x57a   :  { %11301 = vmatmul.mubr.f32.gmra.mrb[54].mxu1 %v17576_v30  ;;  %v9656_v30 = vld [vmem:[%s16655_s1 + $0x1] ss:$0 sm:$0xff] }
 0x57b   :  { %11303 = vmatprep.mubr.f32.mxu1 %v17577_v29 }
 0x57e   :  { %11304 = vmatmul.mubr.f32.gmra.mrb[56].mxu1 %v17578_v46  ;;  %v9655_v46 = vld [vmem:[%s16655_s1] ss:$0 sm:$0xff] }
 0x57f   :  { %11306 = vmatprep.mubr.f32.mxu1 %v17579_v9  ;;  %v12792_v9 = vmov 0  }
 0x580   :  { %12594 = vset.pattern.permute.xlu0 %v12792_v9  ;;  %12593 = vset.pattern.permute.xlu1 %v12792_v9 }
 0x581   :  { %6659 = vperm.xlu0 %12594, %v9656_v30   ;;  %6655 = vperm.xlu1 %12593, %v9655_v46  }
 0x582   :  { %11307 = vmatmul.mubr.f32.gmra.mrb[58].mxu1 %v17580_v14 }
 0x583   :  { %11309 = vmatprep.mubr.f32.mxu1 %v17581_v32 }
 0x586   :  { %11310 = vmatmul.mubr.f32.gmra.mrb[60].mxu1 %v17582_v28 }
 0x587   :  { %11312 = vmatprep.mubr.f32.mxu1 %v17583_v31  ;;  %v9657_v31 = vld [vmem:[%s16655_s1 + $0x2] ss:$0 sm:$0xff] }
 0x588   :  { %6663 = vperm.xlu0 %12594, %v9657_v31  }
 0x58a   :  { %11313 = vmatmul.mubr.f32.gmra.mrb[62].mxu1 %v17584_v3 }
 0x58b   :  { %11319 = vmatprep.mubr.f32.mxu1 %v17521_v18  ;;  %v17585_v18 = vld [vmem:[#allocation127_spill] sm:$0xff] }
 0x58e   :  { %11320 = vmatmul.mubr.f32.vlgmr.msra.gmra.mrb[0].mxu1 %v17522_v20  ;;  %v17586_v20 = vld [vmem:[#allocation130_spill] sm:$0xff] }
 0x58f   :  { %11322 = vmatprep.mubr.f32.mxu1 %v17523_v13  ;;  %v17587_v13 = vld [vmem:[#allocation133_spill] sm:$0xff] }
 0x592   :  { %11323 = vmatmul.mubr.f32.gmra.mrb[2].mxu1 %v17524_v37  ;;  %v17588_v37 = vld [vmem:[#allocation137_spill] sm:$0xff] }
 0x593   :  { %11325 = vmatprep.mubr.f32.mxu1 %v17525_v26 }
 0x596   :  { %11326 = vmatmul.mubr.f32.gmra.mrb[4].mxu1 %v17526_v10 }
 0x597   :  { %11328 = vmatprep.mubr.f32.mxu1 %v17527_v39 }
 0x59a   :  { %11329 = vmatmul.mubr.f32.gmra.mrb[6].mxu1 %v17528_v5 }
 0x59b   :  { %11331 = vmatprep.mubr.f32.mxu1 %v17529_v8 }
 0x59e   :  { %11332 = vmatmul.mubr.f32.gmra.mrb[8].mxu1 %v17530_v51 }
 0x59f   :  { %11334 = vmatprep.mubr.f32.mxu1 %v17531_v62 }
 0x5a2   :  { %11335 = vmatmul.mubr.f32.gmra.mrb[10].mxu1 %v17532_v12 }
 0x5a3   :  { %11337 = vmatprep.mubr.f32.mxu1 %v17533_v11 }
 0x5a6   :  { %11338 = vmatmul.mubr.f32.gmra.mrb[12].mxu1 %v17534_v22 }
 0x5a7   :  { %11340 = vmatprep.mubr.f32.mxu1 %v17535_v47 }
 0x5aa   :  { %11341 = vmatmul.mubr.f32.gmra.mrb[14].mxu1 %v17536_v40 }
 0x5ab   :  { %11343 = vmatprep.mubr.f32.mxu1 %v17537_v44 }
 0x5ae   :  { %11344 = vmatmul.mubr.f32.gmra.mrb[16].mxu1 %v17538_v63 }
 0x5af   :  { %11346 = vmatprep.mubr.f32.mxu1 %v17539_v15 }
 0x5b2   :  { %11347 = vmatmul.mubr.f32.gmra.mrb[18].mxu1 %v17540_v61 }
 0x5b3   :  { %11349 = vmatprep.mubr.f32.mxu1 %v17541_v17 }
 0x5b6   :  { %11350 = vmatmul.mubr.f32.gmra.mrb[20].mxu1 %v17542_v57 }
 0x5b7   :  { %11352 = vmatprep.mubr.f32.mxu1 %v17543_v0 }
 0x5ba   :  { %11353 = vmatmul.mubr.f32.gmra.mrb[22].mxu1 %v17544_v23 }
 0x5bb   :  { %11355 = vmatprep.mubr.f32.mxu1 %v17545_v41 }
 0x5be   :  { %11356 = vmatmul.mubr.f32.gmra.mrb[24].mxu1 %v17546_v38 }
 0x5bf   :  { %11358 = vmatprep.mubr.f32.mxu1 %v17547_v52 }
 0x5c2   :  { %11359 = vmatmul.mubr.f32.gmra.mrb[26].mxu1 %v17548_v36 }
 0x5c3   :  { %11361 = vmatprep.mubr.f32.mxu1 %v17549_v4 }
 0x5c6   :  { %11362 = vmatmul.mubr.f32.gmra.mrb[28].mxu1 %v17550_v50 }
 0x5c7   :  { %11364 = vmatprep.mubr.f32.mxu1 %v17551_v54 }
 0x5ca   :  { %11365 = vmatmul.mubr.f32.gmra.mrb[30].mxu1 %v17552_v2 }
 0x5cb   :  { %11367 = vmatprep.mubr.f32.mxu1 %v17553_v60 }
 0x5ce   :  { %11368 = vmatmul.mubr.f32.gmra.mrb[32].mxu1 %v17554_v27 }
 0x5cf   :  { %11370 = vmatprep.mubr.f32.mxu1 %v17555_v56 }
 0x5d2   :  { %11371 = vmatmul.mubr.f32.gmra.mrb[34].mxu1 %v17556_v43 }
 0x5d3   :  { %11373 = vmatprep.mubr.f32.mxu1 %v17557_v24 }
 0x5d6   :  { %11374 = vmatmul.mubr.f32.gmra.mrb[36].mxu1 %v17558_v16 }
 0x5d7   :  { %11376 = vmatprep.mubr.f32.mxu1 %v17559_v58 }
 0x5da   :  { %11377 = vmatmul.mubr.f32.gmra.mrb[38].mxu1 %v17560_v21 }
 0x5db   :  { %11379 = vmatprep.mubr.f32.mxu1 %v17561_v53 }
 0x5de   :  { %11380 = vmatmul.mubr.f32.gmra.mrb[40].mxu1 %v17562_v49 }
 0x5df   :  { %11382 = vmatprep.mubr.f32.mxu1 %v17563_v34 }
 0x5e2   :  { %11383 = vmatmul.mubr.f32.gmra.mrb[42].mxu1 %v17564_v42 }
 0x5e3   :  { %11385 = vmatprep.mubr.f32.mxu1 %v17565_v33 }
 0x5e6   :  { %11386 = vmatmul.mubr.f32.gmra.mrb[44].mxu1 %v17566_v19 }
 0x5e7   :  { %11388 = vmatprep.mubr.f32.mxu1 %v17567_v1 }
 0x5ea   :  { %11389 = vmatmul.mubr.f32.gmra.mrb[46].mxu1 %v17568_v45 }
 0x5eb   :  { %11391 = vmatprep.mubr.f32.mxu1 %v17569_v55 }
 0x5ee   :  { %11392 = vmatmul.mubr.f32.gmra.mrb[48].mxu1 %v17570_v7 }
 0x5ef   :  { %11394 = vmatprep.mubr.f32.mxu1 %v17571_v35 }
 0x5f2   :  { %11395 = vmatmul.mubr.f32.gmra.mrb[50].mxu1 %v17572_v59 }
 0x5f3   :  { %11397 = vmatprep.mubr.f32.mxu1 %v17573_v48 }
 0x5f6   :  { %11398 = vmatmul.mubr.f32.gmra.mrb[52].mxu1 %v17574_v25 }
 0x5f7   :  { %11400 = vmatprep.mubr.f32.mxu1 %v17575_v6 }
 0x5fa   :  { %11401 = vmatmul.mubr.f32.gmra.mrb[54].mxu1 %v17585_v18 }
 0x5fb   :  { %11403 = vmatprep.mubr.f32.mxu1 %v17577_v29 }
 0x5fe   :  { %11404 = vmatmul.mubr.f32.gmra.mrb[56].mxu1 %v17586_v20 }
 0x5ff   :  { %11406 = vmatprep.mubr.f32.mxu1 %v17587_v13 }
 0x602   :  { %11407 = vmatmul.mubr.f32.gmra.mrb[58].mxu1 %v17580_v14 }
 0x603   :  { %11409 = vmatprep.mubr.f32.mxu1 %v17581_v32  ;;  %v14733_v32 = vpop.permute.xlu1 %6655 }
 0x604   :  { %17597 = vst [vmem:[#allocation31_spill] sm:$0xff] %v14733_v32 }
 0x606   :  { %11410 = vmatmul.mubr.f32.gmra.mrb[60].mxu1 %v17582_v28 }
 0x607   :  { %11412 = vmatprep.mubr.f32.mxu1 %v17588_v37 }
 0x60a   :  { %11413 = vmatmul.mubr.f32.gmra.mrb[62].mxu1 %v17584_v3 }
 0x661   :  { %v14527_v26 = vpop.f32.mrb[0].mxu1 }
 0x662   :  { %6120 = vrot.lane.b32.xlu1 %v14527_v26, %s12793_s30  ;;  %v14531_v10 = vpop.f32.mrb[1].mxu1 }
 0x663   :  { %6118 = vrot.lane.b32.xlu0 %v14531_v10, %s12793_s30 }
 0x665   :  { %v14535_v39 = vpop.f32.mrb[2].mxu1 }
 0x666   :  { %5960 = vrot.lane.b32.xlu1 %v14535_v39, %s12793_s30  ;;  %v14539_v5 = vpop.f32.mrb[3].mxu1 }
 0x669   :  { %v14541_v8 = vpop.f32.mrb[4].mxu1 }
 0x66a   :  { %5958 = vrot.lane.b32.xlu1 %v14539_v5, %s12793_s30  ;;  %v14545_v51 = vpop.f32.mrb[5].mxu1 }
 0x66d   :  { %v14547_v62 = vpop.f32.mrb[6].mxu1 }
 0x66e   :  { %6124 = vrot.lane.b32.xlu1 %v14541_v8, %s12793_s30  ;;  %v14551_v12 = vpop.f32.mrb[7].mxu1 }
 0x671   :  { %v14553_v11 = vpop.f32.mrb[8].mxu1 }
 0x672   :  { %6122 = vrot.lane.b32.xlu1 %v14545_v51, %s12793_s30  ;;  %v14557_v22 = vpop.f32.mrb[9].mxu1 }
 0x675   :  { %v14559_v47 = vpop.f32.mrb[10].mxu1 }
 0x676   :  { %5964 = vrot.lane.b32.xlu1 %v14547_v62, %s12793_s30  ;;  %v14563_v40 = vpop.f32.mrb[11].mxu1 }
 0x679   :  { %v14565_v44 = vpop.f32.mrb[12].mxu1 }
 0x67a   :  { %5962 = vrot.lane.b32.xlu1 %v14551_v12, %s12793_s30  ;;  %v14569_v63 = vpop.f32.mrb[13].mxu1 }
 0x67d   :  { %v14571_v15 = vpop.f32.mrb[14].mxu1 }
 0x67e   :  { %6128 = vrot.lane.b32.xlu1 %v14553_v11, %s12793_s30  ;;  %v14575_v61 = vpop.f32.mrb[15].mxu1 }
 0x681   :  { %v14577_v17 = vpop.f32.mrb[16].mxu1 }
 0x682   :  { %6126 = vrot.lane.b32.xlu1 %v14557_v22, %s12793_s30  ;;  %v14581_v57 = vpop.f32.mrb[17].mxu1 }
 0x685   :  { %v14583_v0 = vpop.f32.mrb[18].mxu1 }
 0x686   :  { %5968 = vrot.lane.b32.xlu1 %v14559_v47, %s12793_s30  ;;  %5976 = vrot.lane.b32.xlu0 %v14583_v0, %s12793_s30  ;;  %v14589_v23 = vpop.f32.mrb[19].mxu1 }
 0x689   :  { %v14591_v41 = vpop.f32.mrb[20].mxu1 }
 0x68a   :  { %5966 = vrot.lane.b32.xlu1 %v14563_v40, %s12793_s30  ;;  %6140 = vrot.lane.b32.xlu0 %v14591_v41, %s12793_s30  ;;  %v14597_v38 = vpop.f32.mrb[21].mxu1 }
 0x68d   :  { %v14599_v52 = vpop.f32.mrb[22].mxu1 }
 0x68e   :  { %6132 = vrot.lane.b32.xlu1 %v14565_v44, %s12793_s30  ;;  %6138 = vrot.lane.b32.xlu0 %v14597_v38, %s12793_s30  ;;  %v14605_v36 = vpop.f32.mrb[23].mxu1 }
 0x691   :  { %v14607_v4 = vpop.f32.mrb[24].mxu1 }
 0x692   :  { %6130 = vrot.lane.b32.xlu1 %v14569_v63, %s12793_s30  ;;  %5978 = vrot.lane.b32.xlu0 %v14605_v36, %s12793_s30  ;;  %v14613_v50 = vpop.f32.mrb[25].mxu1 }
 0x695   :  { %v14615_v54 = vpop.f32.mrb[26].mxu1 }
 0x696   :  { %5972 = vrot.lane.b32.xlu1 %v14571_v15, %s12793_s30  ;;  %6144 = vrot.lane.b32.xlu0 %v14607_v4, %s12793_s30  ;;  %v14621_v2 = vpop.f32.mrb[27].mxu1 }
 0x699   :  { %v14623_v60 = vpop.f32.mrb[28].mxu1 }
 0x69a   :  { %17589 = vst [vmem:[#allocation17_spill] sm:$0xff] %v14623_v60  ;;  %5970 = vrot.lane.b32.xlu1 %v14575_v61, %s12793_s30  ;;  %6142 = vrot.lane.b32.xlu0 %v14613_v50, %s12793_s30  ;;  %v14629_v27 = vpop.f32.mrb[29].mxu1 }
 0x69d   :  { %v14631_v56 = vpop.f32.mrb[30].mxu1 }
 0x69e   :  { %6136 = vrot.lane.b32.xlu1 %v14577_v17, %s12793_s30  ;;  %5982 = vrot.lane.b32.xlu0 %v14621_v2, %s12793_s30  ;;  %v14637_v43 = vpop.f32.mrb[31].mxu1 }
 0x6a1   :  { %v14639_v24 = vpop.f32.mrb[32].mxu1 }
 0x6a2   :  { %6134 = vrot.lane.b32.xlu1 %v14581_v57, %s12793_s30  ;;  %v14643_v16 = vpop.f32.mrb[33].mxu1 }
 0x6a5   :  { %v14645_v58 = vpop.f32.mrb[34].mxu1 }
 0x6a6   :  { %5974 = vrot.lane.b32.xlu1 %v14589_v23, %s12793_s30  ;;  %5992 = vrot.lane.b32.xlu0 %v14645_v58, %s12793_s30  ;;  %v14651_v21 = vpop.f32.mrb[35].mxu1 }
 0x6a9   :  { %v14653_v53 = vpop.f32.mrb[36].mxu1 }
 0x6aa   :  { %5980 = vrot.lane.b32.xlu1 %v14599_v52, %s12793_s30  ;;  %5990 = vrot.lane.b32.xlu0 %v14651_v21, %s12793_s30  ;;  %v14659_v49 = vpop.f32.mrb[37].mxu1 }
 0x6ad   :  { %v14661_v34 = vpop.f32.mrb[38].mxu1 }
 0x6ae   :  { %5984 = vrot.lane.b32.xlu1 %v14615_v54, %s12793_s30  ;;  %6156 = vrot.lane.b32.xlu0 %v14653_v53, %s12793_s30  ;;  %v14667_v42 = vpop.f32.mrb[39].mxu1 }
 0x6b1   :  { %v14669_v33 = vpop.f32.mrb[40].mxu1 }
 0x6b2   :  { %6148 = vrot.lane.b32.xlu1 %v14623_v60, %s12793_s30  ;;  %6154 = vrot.lane.b32.xlu0 %v14659_v49, %s12793_s30  ;;  %v14675_v19 = vpop.f32.mrb[41].mxu1 }
 0x6b5   :  { %v14677_v1 = vpop.f32.mrb[42].mxu1 }
 0x6b6   :  { %6146 = vrot.lane.b32.xlu1 %v14629_v27, %s12793_s30  ;;  %5996 = vrot.lane.b32.xlu0 %v14661_v34, %s12793_s30  ;;  %v14683_v45 = vpop.f32.mrb[43].mxu1 }
 0x6b9   :  { %v14685_v55 = vpop.f32.mrb[44].mxu1 }
 0x6ba   :  { %17590 = vst [vmem:[#allocation20_spill] sm:$0xff] %v14685_v55  ;;  %5986 = vrot.lane.b32.xlu1 %v14637_v43, %s12793_s30  ;;  %5994 = vrot.lane.b32.xlu0 %v14667_v42, %s12793_s30  ;;  %v14691_v7 = vpop.f32.mrb[45].mxu1 }
 0x6bb   :  { %17591 = vst [vmem:[#allocation14_spill] sm:$0xff] %v14691_v7 }
 0x6bd   :  { %v14693_v35 = vpop.f32.mrb[46].mxu1 }
 0x6be   :  { %6152 = vrot.lane.b32.xlu1 %v14639_v24, %s12793_s30  ;;  %6160 = vrot.lane.b32.xlu0 %v14669_v33, %s12793_s30  ;;  %v14699_v59 = vpop.f32.mrb[47].mxu1 }
 0x6c1   :  { %v14701_v48 = vpop.f32.mrb[48].mxu1 }
 0x6c2   :  { %6150 = vrot.lane.b32.xlu1 %v14643_v16, %s12793_s30  ;;  %6158 = vrot.lane.b32.xlu0 %v14675_v19, %s12793_s30  ;;  %v14707_v25 = vpop.f32.mrb[49].mxu1 }
 0x6c3   :  { %17592 = vst [vmem:[#allocation15_spill] sm:$0xff] %v14707_v25 }
 0x6c5   :  { %v14709_v6 = vpop.f32.mrb[50].mxu1 }
 0x6c6   :  { %17593 = vst [vmem:[#allocation24_spill] sm:$0xff] %v14709_v6  ;;  %6000 = vrot.lane.b32.xlu0 %v14677_v1, %s12793_s30  ;;  %6008 = vrot.lane.b32.xlu1 %v14709_v6, %s12793_s30  ;;  %v14715_v30 = vpop.f32.mrb[51].mxu1 }
 0x6c7   :  { %17594 = vst [vmem:[#allocation29_spill] sm:$0xff] %v14715_v30 }
 0x6c9   :  { %v14717_v29 = vpop.f32.mrb[52].mxu1 }
 0x6ca   :  { %17595 = vst [vmem:[#allocation23_spill] sm:$0xff] %v14717_v29  ;;  %5998 = vrot.lane.b32.xlu0 %v14683_v45, %s12793_s30  ;;  %6172 = vrot.lane.b32.xlu1 %v14717_v29, %s12793_s30  ;;  %v14723_v46 = vpop.f32.mrb[53].mxu1 }
 0x6cb   :  { %17596 = vst [vmem:[#allocation25_spill] sm:$0xff] %v14723_v46 }
 0x6cd   :  { %v14725_v9 = vpop.f32.mrb[54].mxu1 }
 0x6ce   :  { %6164 = vrot.lane.b32.xlu0 %v14685_v55, %s12793_s30  ;;  %6170 = vrot.lane.b32.xlu1 %v14723_v46, %s12793_s30  ;;  %v14731_v14 = vpop.f32.mrb[55].mxu1 }
 0x6d1   :  { %v14735_v28 = vpop.f32.mrb[56].mxu1 }
 0x6d2   :  { %17598 = vst [vmem:[#allocation30_spill] sm:$0xff] %v14735_v28  ;;  %6162 = vrot.lane.b32.xlu0 %v14691_v7, %s12793_s30  ;;  %6012 = vrot.lane.b32.xlu1 %v14725_v9, %s12793_s30  ;;  %v14741_v31 = vpop.f32.mrb[57].mxu1 }
 0x6d3   :  { %17599 = vst [vmem:[#allocation28_spill] sm:$0xff] %v14741_v31 }
 0x6d4   :  { %v6121_v3 = vpop.permute.xlu1 %6120 }
 0x6d5   :  { %v6215_v18 = vadd.f32 %v14535_v39, %v6121_v3  ;;  %v14744_v20 = vpop.f32.mrb[58].mxu1  ;;  %v14763_v3 = vpop.permute.xlu0 %6659 }
 0x6d6   :  { %6004 = vrot.lane.b32.xlu0 %v14693_v35, %s12793_s30  ;;  %6010 = vrot.lane.b32.xlu1 %v14731_v14, %s12793_s30  ;;  %v14750_v13 = vpop.f32.mrb[59].mxu1 }
 0x6d7   :  { %17600 = vst [vmem:[#allocation35_spill] sm:$0xff] %v14750_v13 }
 0x6d8   :  { %v5961_v37 = vpop.permute.xlu1 %5960 }
 0x6d9   :  { %v14753_v60 = vsub.f32 %v14527_v26, %v5961_v37  ;;  %v14755_v6 = vpop.f32.mrb[60].mxu1 }
 0x6da   :  { %17602 = vst [vmem:[#allocation44_spill] sm:$0xff] %v14755_v6  ;;  %6002 = vrot.lane.b32.xlu0 %v14699_v59, %s12793_s30  ;;  %6176 = vrot.lane.b32.xlu1 %v14735_v28, %s12793_s30  ;;  %v14761_v39 = vpop.f32.mrb[61].mxu1  ;;  %v14776_v28 = vpop.permute.xlu0 %6663 }
 0x6db   :  { %17601 = vst [vmem:[#allocation40_spill] sm:$0xff] %v14753_v60  ;;  %17603 = vst [vmem:[#allocation39_spill] sm:$0xff] %v14761_v39 }
 0x6dc   :  { %v5959_v7 = vpop.permute.xlu1 %5958  ;;  %17607 = vst [vmem:[#allocation48_spill] sm:$0xff] %v14776_v28 }
 0x6dd   :  { %v14766_v32 = vsub.f32 %v14531_v10, %v5959_v7  ;;  %v14768_v46 = vpop.f32.mrb[62].mxu1  ;;  %v9658_v10 = vld [vmem:[%s16655_s1 + $0x3] ss:$0 sm:$0xff] }
 0x6de   :  { %17605 = vst [vmem:[#allocation45_spill] sm:$0xff] %v14768_v46  ;;  %6168 = vrot.lane.b32.xlu0 %v14701_v48, %s12793_s30  ;;  %6174 = vrot.lane.b32.xlu1 %v14741_v31, %s12793_s30  ;;  %v14774_v26 = vpop.f32.mrb[63].mxu1  ;;  %v6119_v31 = vpop.permute.xlu0 %6118 }
 0x6df   :  { %17604 = vst [vmem:[#allocation41_spill] sm:$0xff] %v14766_v32  ;;  %17606 = vst [vmem:[#allocation49_spill] sm:$0xff] %v14774_v26 }
 0x6e0   :  { %v6125_v37 = vpop.permute.xlu1 %6124 }
 0x6e2   :  { %6166 = vrot.lane.b32.xlu0 %v14707_v25, %s12793_s30  ;;  %6014 = vrot.lane.b32.xlu1 %v14750_v13, %s12793_s30  ;;  %v6214_v25 = vadd.f32 %v6119_v31, %v14539_v5  ;;  %v6439_v5 = vmul.f32 %v14753_v60, %v14753_v60  ;;  %v6438_v31 = vmul.f32 %v14766_v32, %v14766_v32 }
 0x6e4   :  { %v6123_v7 = vpop.permute.xlu1 %6122 }
 0x6e5   :  { %v6216_v55 = vadd.f32 %v6123_v7, %v14551_v12  ;;  %v9660_v12 = vld [vmem:[%s16655_s1 + $0x5] ss:$0 sm:$0xff] }
 0x6e6   :  { %6006 = vrot.lane.b32.xlu0 %v14715_v30, %s12793_s30  ;;  %6667 = vperm.xlu1 %12593, %v9658_v10   ;;  %v14799_v30 = vsub.f32 0.0, %v6215_v18 }
 0x6e8   :  { %v5965_v29 = vpop.permute.xlu1 %5964 }
 0x6e9   :  { %v14789_v28 = vsub.f32 %v14541_v8, %v5965_v29  ;;  %v14804_v8 = vsub.f32 0.0, %v6214_v25  ;;  %v9662_v29 = vld [vmem:[%s16655_s1 + $0x7] ss:$0 sm:$0xff]  ;;  %v6217_v25 = vadd.f32 %v14547_v62, %v6125_v37 }
 0x6ea   :  { %6016 = vrot.lane.b32.xlu0 %v14744_v20, %s12793_s30  ;;  %6020 = vrot.lane.b32.xlu1 %v14768_v46, %s12793_s30 }
 0x6eb   :  { %17608 = vst [vmem:[#allocation52_spill] sm:$0xff] %v14789_v28  ;;  %17610 = vst [vmem:[#allocation60_spill] sm:$0xff] %v14804_v8  ;;  %v14826_v13 = vsub.f32 0.0, %v6217_v25  ;;  %v6441_v62 = vmul.f32 %v14789_v28, %v14789_v28  ;;  %v9659_v25 = vld [vmem:[%s16655_s1 + $0x4] ss:$0 sm:$0xff] }
 0x6ec   :  { %v5963_v7 = vpop.permute.xlu1 %5962 }
 0x6ed   :  { %v14802_v10 = vsub.f32 %v14545_v51, %v5963_v7  ;;  %v6455_v51 = vmul.f32 %v14799_v30, %v14799_v30  ;;  %v6454_v7 = vmul.f32 %v14804_v8, %v14804_v8 }
 0x6ee   :  { %5988 = vrot.lane.b32.xlu0 %v14631_v56, %s12793_s30  ;;  %6675 = vperm.xlu1 %12593, %v9660_v12  }
 0x6ef   :  { %17609 = vst [vmem:[#allocation56_spill] sm:$0xff] %v14802_v10  ;;  %v14822_v12 = vadd.f32 %v6455_v51, %v6439_v5  ;;  %v14824_v60 = vadd.f32 %v6454_v7, %v6438_v31  ;;  %v6457_v5 = vmul.f32 %v14826_v13, %v14826_v13  ;;  %v6440_v51 = vmul.f32 %v14802_v10, %v14802_v10 }
 0x6f0   :  { %v6129_v18 = vpop.permute.xlu1 %6128 }
 0x6f1   :  { %17611 = vst [vmem:[#allocation55_spill] sm:$0xff] %v14822_v12  ;;  %17612 = vst [vmem:[#allocation57_spill] sm:$0xff] %v14824_v60  ;;  %12595 = vrsqrt.f32 %v14822_v12  ;;  %vm6719_vm2 = vcmp.gt.f32.partialorder %v14822_v12, 0.0  ;;  %vm6718_vm3 = vcmp.gt.f32.partialorder %v14824_v60, 0.0  ;;  %vm6495_vm4 = vcmp.eq.f32.partialorder %v14822_v12, inf }
 0x6f2   :  { %6180 = vrot.lane.b32.xlu0 %v14755_v6, %s12793_s30  ;;  %6683 = vperm.xlu1 %12593, %v9662_v29   ;;  %12597 = vrsqrt.f32 %v14824_v60  ;;  %v14837_v29 = vsub.f32 0.0, %v6216_v55  ;;  %vm6497_vm5 = vcmp.eq.f32.partialorder %v14822_v12, 0.0  ;;  %vm6488_vm7 = vcmp.eq.f32.partialorder %v14824_v60, inf }
 0x6f3   :  { %vm6490_vm8 = vcmp.eq.f32.partialorder %v14824_v60, 0.0 }
 0x6f4   :  { %v6127_v46 = vpop.permute.xlu1 %6126  ;;  %17613 = vst [vmem:[#allocation61_spill] sm:$0xff] %v14837_v29 }
 0x6f5   :  { %v6218_v32 = vadd.f32 %v6127_v46, %v14563_v40  ;;  %v14847_v46 = vadd.f32 %v6457_v5, %v6441_v62 }
 0x6f6   :  { %6178 = vrot.lane.b32.xlu0 %v14761_v39, %s12793_s30 }
 0x6f7   :  { %17616 = vst [vmem:[#allocation68_spill] sm:$0xff] %v14847_v46  ;;  %12599 = vrsqrt.f32 %v14847_v46  ;;  %vm6721_vm6 = vcmp.gt.f32.partialorder %v14847_v46, 0.0  ;;  %vm6509_vm10 = vcmp.eq.f32.partialorder %v14847_v46, inf  ;;  %vm6511_vm11 = vcmp.eq.f32.partialorder %v14847_v46, 0.0 }
 0x6f8   :  { %v5969_v37 = vpop.permute.xlu1 %5968  ;;  %v5977_v6 = vpop.permute.xlu0 %5976 }
 0x6f9   :  { %v14840_v31 = vsub.f32 %v14553_v11, %v5969_v37  ;;  %v14843_v40 = vsub.f32 %v14577_v17, %v5977_v6  ;;  %v6456_v11 = vmul.f32 %v14837_v29, %v14837_v29  ;;  %v6219_v17 = vadd.f32 %v14559_v47, %v6129_v18  ;;  %v9661_v37 = vld [vmem:[%s16655_s1 + $0x6] ss:$0 sm:$0xff] }
 0x6fa   :  { %6018 = vrot.lane.b32.xlu0 %v14774_v26, %s12793_s30 }
 0x6fb   :  { %17614 = vst [vmem:[#allocation65_spill] sm:$0xff] %v14840_v31  ;;  %17615 = vst [vmem:[#allocation64_spill] sm:$0xff] %v14843_v40  ;;  %v14862_v62 = vadd.f32 %v6456_v11, %v6440_v51  ;;  %v12596_v28 = vpop.eup %12595  ;;  %v14869_v39 = vsub.f32 0.0, %v6219_v17  ;;  %v6443_v18 = vmul.f32 %v14840_v31, %v14840_v31  ;;  %v6735_v51 = vsel %vm6719_vm2, %v14822_v12, 1.0 }
 0x6fc   :  { %v5967_v55 = vpop.permute.xlu1 %5966  ;;  %v14854_v7 = vpop.permute.xlu0 %6140  ;;  %v14885_v11 = vsub.f32 0.0, %v6218_v32  ;;  %v6498_v31 = vand.u32 2147483648, %v14822_v12 }
 0x6fd   :  { %v14860_v6 = vsub.f32 %v14557_v22, %v5967_v55  ;;  %17618 = vst [vmem:[#allocation76_spill] sm:$0xff] %v14862_v62  ;;  %17619 = vst [vmem:[#allocation71_spill] sm:$0xff] %v14869_v39  ;;  %v12598_v22 = vpop.eup %12597  ;;  %12601 = vrsqrt.f32 %v14862_v62  ;;  %vm6720_vm9 = vcmp.gt.f32.partialorder %v14862_v62, 0.0  ;;  %vm6502_vm12 = vcmp.eq.f32.partialorder %v14862_v62, inf }
 0x6fe   :  { %6671 = vperm.xlu0 %12594, %v9659_v25   ;;  %17620 = vst [vmem:[#allocation73_spill] sm:$0xff] %v14885_v11  ;;  %12603 = vrsqrt.f32 %v6735_v51  ;;  %v6487_v26 = vmul.f32 %v12598_v22, %v14824_v60  ;;  %v6458_v22 = vmul.f32 %v14885_v11, %v14885_v11  ;;  %vm6504_vm14 = vcmp.eq.f32.partialorder %v14862_v62, 0.0 }
 0x6ff   :  { %17617 = vst [vmem:[#allocation72_spill] sm:$0xff] %v14860_v6  ;;  %v6442_v29 = vmul.f32 %v14860_v6, %v14860_v6 }
 0x700   :  { %v6133_v5 = vpop.permute.xlu1 %6132  ;;  %v6139_v10 = vpop.permute.xlu0 %6138  ;;  %v6489_v6 = vsel %vm6488_vm7, %v14824_v60, %v6487_v26 }
 0x701   :  { %v6224_v47 = vadd.f32 %v6139_v10, %v14605_v36  ;;  %v6734_v36 = vsel %vm6718_vm3, %v14824_v60, 1.0  ;;  %v6459_v10 = vmul.f32 %v14869_v39, %v14869_v39  ;;  %v6221_v32 = vadd.f32 %v14571_v15, %v6133_v5  ;;  %v12600_v51 = vpop.eup %12599 }
 0x702   :  { %6679 = vperm.xlu0 %12594, %v9661_v37   ;;  %v6494_v37 = vmul.f32 %v12596_v28, %v14822_v12  ;;  %v6491_v28 = vand.u32 2147483648, %v14824_v60  ;;  %12605 = vrsqrt.f32 %v6734_v36  ;;  %v6737_v36 = vsel %vm6721_vm6, %v14847_v46, 1.0 }
 0x703   :  { %v14894_v8 = vadd.f32 %v6459_v10, %v6443_v18  ;;  %v14914_v10 = vsub.f32 0.0, %v6224_v47  ;;  %v14921_v11 = vadd.f32 %v6458_v22, %v6442_v29  ;;  %v6508_v26 = vmul.f32 %v12600_v51, %v14847_v46 }
 0x704   :  { %v6131_v25 = vpop.permute.xlu1 %6130  ;;  %v5979_v55 = vpop.permute.xlu0 %5978  ;;  %v6496_v5 = vsel %vm6495_vm4, %v14822_v12, %v6494_v37  ;;  %v6736_v51 = vsel %vm6720_vm9, %v14862_v62, 1.0 }
 0x705   :  { %v14888_v17 = vsub.f32 %v14597_v38, %v5979_v55  ;;  %17622 = vst [vmem:[#allocation81_spill] sm:$0xff] %v14894_v8  ;;  %17624 = vst [vmem:[#allocation84_spill] sm:$0xff] %v14914_v10  ;;  %12607 = vrsqrt.f32 %v14894_v8  ;;  %v6464_v22 = vmul.f32 %v14914_v10, %v14914_v10  ;;  %vm6723_vm13 = vcmp.gt.f32.partialorder %v14894_v8, 0.0 }
 0x706   :  { %12609 = vrsqrt.f32 %v6737_v36  ;;  %vm6722_vm15 = vcmp.gt.f32.partialorder %v14921_v11, 0.0  ;;  %vm6523_vm0 = vcmp.eq.f32.partialorder %v14894_v8, inf  ;;  %vm6525_vm4 = vcmp.eq.f32.partialorder %v14894_v8, 0.0 }
 0x707   :  { %17621 = vst [vmem:[#allocation77_spill] sm:$0xff] %v14888_v17  ;;  %v6448_v47 = vmul.f32 %v14888_v17, %v14888_v17  ;;  %v12602_v29 = vpop.eup %12601  ;;  %12611 = vrsqrt.f32 %v14921_v11 }
 0x708   :  { %v5973_v38 = vpop.permute.xlu1 %5972  ;;  %v6145_v55 = vpop.permute.xlu0 %6144  ;;  %v6501_v17 = vmul.f32 %v12602_v29, %v14862_v62  ;;  %v6505_v29 = vand.u32 2147483648, %v14862_v62  ;;  %12613 = vrsqrt.f32 %v6736_v51 }
 0x709   :  { %v14906_v18 = vsub.f32 %v14565_v44, %v5973_v38  ;;  %v14909_v15 = vadd.f32 %v14615_v54, %v6145_v55  ;;  %v14923_v44 = vsub.f32 0.0, %v6221_v32  ;;  %v6220_v54 = vadd.f32 %v6131_v25, %v14575_v61  ;;  %v14958_v10 = vpop.eup %12603 }
 0x70a   :  { %v14931_v55 = vsel %vm6497_vm5, %v6498_v31, %v6496_v5  ;;  %v6512_v25 = vand.u32 2147483648, %v14847_v46  ;;  %v14946_v31 = vsel %vm6490_vm8, %v6491_v28, %v6489_v6  ;;  %v14960_v36 = vadd.f32 %v6464_v22, %v6448_v47 }
 0x70b   :  { %17623 = vst [vmem:[#allocation80_spill] sm:$0xff] %v14906_v18  ;;  %17625 = vst [vmem:[#allocation88_spill] sm:$0xff] %v14923_v44  ;;  %v6445_v32 = vmul.f32 %v14906_v18, %v14906_v18  ;;  %v6461_v5 = vmul.f32 %v14923_v44, %v14923_v44  ;;  %v6510_v28 = vsel %vm6509_vm10, %v14847_v46, %v6508_v26  ;;  %vm6516_vm5 = vcmp.eq.f32.partialorder %v14921_v11, inf }
 0x70c   :  { %v5971_v37 = vpop.permute.xlu1 %5970  ;;  %v6143_v38 = vpop.permute.xlu0 %6142  ;;  %17628 = vst [vmem:[#allocation89_spill] sm:$0xff] %v14960_v36  ;;  %v6447_v47 = vmul.f32 %v14843_v40, %v14843_v40  ;;  %v6503_v51 = vsel %vm6502_vm12, %v14862_v62, %v6501_v17  ;;  %12615 = vrsqrt.f32 %v14960_v36  ;;  %v15011_v17 = vld [vmem:[%s16659_s5 + $0x8] sm:$0xff]  ;;  %vm17085_vm7 = vcmp.gt.f32.partialorder %v14960_v36, 0.0 }
 0x70d   :  { %v14938_v61 = vsub.f32 %v14569_v63, %v5971_v37  ;;  %v6225_v63 = vadd.f32 %v14599_v52, %v14854_v7  ;;  %v14955_v37 = vsub.f32 0.0, %v6220_v54  ;;  %v14967_v52 = vadd.f32 %v6461_v5, %v6445_v32  ;;  %v14973_v54 = vpop.eup %12605  ;;  %17633 = vst [vmem:[#allocation104_spill] sm:$0xff] %v15011_v17 }
 0x70e   :  { %17629 = vst [vmem:[#allocation93_spill] sm:$0xff] %v14973_v54  ;;  %v6226_v18 = vadd.f32 %v6143_v38, %v14621_v2  ;;  %vm6518_vm8 = vcmp.eq.f32.partialorder %v14921_v11, 0.0  ;;  %vm6558_vm10 = vcmp.eq.f32.partialorder %v14960_v36, inf }
 0x70f   :  { %17626 = vst [vmem:[#allocation92_spill] sm:$0xff] %v14938_v61  ;;  %17627 = vst [vmem:[#allocation87_spill] sm:$0xff] %v14955_v37  ;;  %v6444_v7 = vmul.f32 %v14938_v61, %v14938_v61  ;;  %v14979_v32 = vsub.f32 0.0, %v6225_v63  ;;  %v6460_v5 = vmul.f32 %v14955_v37, %v14955_v37  ;;  %v14986_v61 = vsel %vm6511_vm11, %v6512_v25, %v6510_v28  ;;  %v12608_v63 = vpop.eup %12607  ;;  %v15006_v25 = vld [vmem:[%s16659_s5] sm:$0xff] }
 0x710   :  { %v6137_v6 = vpop.permute.xlu1 %6136  ;;  %v5983_v22 = vpop.permute.xlu0 %5982  ;;  %12617 = vrsqrt.f32 %v14967_v52  ;;  %17632 = vst [vmem:[#allocation100_spill] sm:$0xff] %v15006_v25  ;;  %v6522_v40 = vmul.f32 %v12608_v63, %v14894_v8  ;;  %v6738_v37 = vsel %vm6722_vm15, %v14921_v11, 1.0  ;;  %v15045_v63 = vsub.f32 0.0, %v14909_v15 }
 0x711   :  { %v6223_v26 = vadd.f32 %v14583_v0, %v6137_v6  ;;  %17630 = vst [vmem:[#allocation97_spill] sm:$0xff] %v14979_v32  ;;  %v6739_v0 = vsel %vm6723_vm13, %v14894_v8, 1.0  ;;  %v14996_v6 = vadd.f32 %v6460_v5, %v6444_v7  ;;  %v14999_v2 = vsub.f32 %v14613_v50, %v5983_v22  ;;  %v15028_v22 = vpop.eup %12609 }
 0x712   :  { %v15020_v50 = vmul.f32 %v14979_v32, %v14979_v32  ;;  %12619 = vrsqrt.f32 %v6739_v0  ;;  %v15026_v7 = vsel %vm6504_vm14, %v6505_v29, %v6503_v51  ;;  %v12612_v39 = vpop.eup %12611  ;;  %17638 = vst [vmem:[#allocation116_spill] sm:$0xff] %v15045_v63  ;;  %vm6725_vm12 = vcmp.gt.f32.partialorder %v14967_v52, 0.0 }
 0x713   :  { %17631 = vst [vmem:[#allocation96_spill] sm:$0xff] %v14999_v2  ;;  %v15013_v28 = vsub.f32 0.0, %v6223_v26  ;;  %v6450_v0 = vmul.f32 %v14999_v2, %v14999_v2  ;;  %12621 = vrsqrt.f32 %v14996_v6  ;;  %v6524_v2 = vsel %vm6523_vm0, %v14894_v8, %v6522_v40 }
 0x714   :  { %v6135_v44 = vpop.permute.xlu1 %6134  ;;  %12623 = vrsqrt.f32 %v6738_v37  ;;  %v6744_v40 = vsel %vm17085_vm7, %v14960_v36, 1.0  ;;  %v15083_v37 = vmul.f32 %v15045_v63, %v15045_v63  ;;  %vm17086_vm11 = vcmp.gt.f32.partialorder %v14996_v6, 0.0 }
 0x715   :  { %v6222_v38 = vadd.f32 %v6135_v44, %v14589_v23  ;;  %17634 = vst [vmem:[#allocation108_spill] sm:$0xff] %v15013_v28  ;;  %v6526_v23 = vand.u32 2147483648, %v14894_v8  ;;  %v15022_v44 = vsub.f32 0.0, %v6226_v18  ;;  %v6463_v60 = vmul.f32 %v15013_v28, %v15013_v28 }
 0x716   :  { %v6515_v28 = vmul.f32 %v12612_v39, %v14921_v11  ;;  %vm6560_vm14 = vcmp.eq.f32.partialorder %v14960_v36, 0.0  ;;  %vm6537_vm0 = vcmp.eq.f32.partialorder %v14967_v52, inf  ;;  %12625 = vrsqrt.f32 %v6744_v40 }
 0x717   :  { %17635 = vst [vmem:[#allocation103_spill] sm:$0xff] %v15022_v44  ;;  %v15038_v29 = vsub.f32 0.0, %v6222_v38  ;;  %v6466_v18 = vmul.f32 %v15022_v44, %v15022_v44  ;;  %v17639_v44 = vand.u32 4294901760, %v15006_v25  ;;  %v6533_v8 = vand.u32 2147483648, %v14996_v6 }
 0x718   :  { %v5975_v26 = vpop.permute.xlu1 %5974  ;;  %v5993_v5 = vpop.permute.xlu0 %5992 }
 0x719   :  { %17636 = vst [vmem:[#allocation113_spill] sm:$0xff] %v15038_v29  ;;  %v15041_v51 = vsub.f32 %v14581_v57, %v5975_v26  ;;  %v6519_v57 = vand.u32 2147483648, %v14921_v11  ;;  %v15057_v26 = vpop.eup %12613  ;;  %v15071_v46 = vadd.f32 %v6466_v18, %v6450_v0  ;;  %v6462_v54 = vmul.f32 %v15038_v29, %v15038_v29 }
 0x71a   :  { %v12616_v39 = vpop.eup %12615  ;;  %v15094_v0 = vsel %vm6525_vm4, %v6526_v23, %v6524_v2  ;;  %vm6539_vm4 = vcmp.eq.f32.partialorder %v14967_v52, 0.0  ;;  %v6540_v23 = vand.u32 2147483648, %v14967_v52 }
 0x71b   :  { %17637 = vst [vmem:[#allocation112_spill] sm:$0xff] %v15041_v51  ;;  %v6446_v38 = vmul.f32 %v15041_v51, %v15041_v51  ;;  %v17640_v51 = vand.u32 4294901760, %v15011_v17  ;;  %17642 = vst [vmem:[#allocation124_spill] sm:$0xff] %v15071_v46  ;;  %v15085_v17 = vadd.f32 %v6463_v60, %v6447_v47  ;;  %v12618_v18 = vpop.eup %12617  ;;  %12627 = vrsqrt.f32 %v15071_v46 }
 0x71c   :  { %v5981_v15 = vpop.permute.xlu1 %5980  ;;  %v15059_v32 = vpop.permute.xlu0 %5990  ;;  %vm6574_vm7 = vcmp.eq.f32.partialorder %v15071_v46, 0.0 }
 0x71d   :  { %v15069_v62 = vpack.c.bf16 %v17640_v51, %v17639_v44  ;;  %v15076_v12 = vsub.f32 %v14591_v41, %v5981_v15  ;;  %17644 = vst [vmem:[#allocation121_spill] sm:$0xff] %v15085_v17  ;;  %v6561_v44 = vand.u32 2147483648, %v14960_v36  ;;  %v15090_v41 = vadd.f32 %v6462_v54, %v6446_v38  ;;  %v15106_v2 = vpop.eup %12619 }
 0x71e   :  { %v6517_v54 = vsel %vm6516_vm5, %v14921_v11, %v6515_v28  ;;  %v6557_v38 = vmul.f32 %v12616_v39, %v14960_v36  ;;  %v6536_v15 = vmul.f32 %v12618_v18, %v14967_v52  ;;  %v6741_v28 = vsel %vm6725_vm12, %v14967_v52, 1.0  ;;  %v12622_v40 = vpop.eup %12621 }
 0x71f   :  { %17641 = vst [vmem:[#allocation120_spill] sm:$0xff] %v15069_v62  ;;  %17643 = vst [vmem:[#allocation119_spill] sm:$0xff] %v15076_v12  ;;  %11848 = vmatprep.subr.bf16.mxu0 %v15069_v62  ;;  %v6449_v60 = vmul.f32 %v15076_v12, %v15076_v12  ;;  %12629 = vrsqrt.f32 %v15085_v17  ;;  %v15123_v39 = vsel %vm6518_vm8, %v6519_v57, %v6517_v54  ;;  %vm6530_vm5 = vcmp.eq.f32.partialorder %v14996_v6, inf }
 0x720   :  { %17645 = vst [vmem:[#allocation128_spill] sm:$0xff] %v15090_v41  ;;  %11850 = vmatpush3.bf16.msra.mxu0 %v15069_v62  ;;  %v5985_v47 = vpop.permute.xlu1 %5984  ;;  %v6157_v51 = vpop.permute.xlu0 %6156  ;;  %v6740_v62 = vsel %vm17086_vm11, %v14996_v6, 1.0  ;;  %12631 = vrsqrt.f32 %v15090_v41  ;;  %v6071_v18 = vsub.f32 %v14639_v24, %v5993_v5  ;;  %vm17083_vm1 = vcmp.gt.f32.partialorder %v15085_v17, 0.0 }
 0x721   :  { %v6233_v63 = vadd.f32 %v14661_v34, %v6157_v51  ;;  %v15129_v29 = vadd.f32 %v15020_v50, %v6449_v60  ;;  %v15134_v34 = vsub.f32 %v14607_v4, %v5985_v47  ;;  %vm6532_vm8 = vcmp.eq.f32.partialorder %v14996_v6, 0.0  ;;  %v15143_v50 = vpop.eup %12623 }
 0x722   :  { %12633 = vrsqrt.f32 %v6740_v62  ;;  %v6559_v24 = vsel %vm6558_vm10, %v14960_v36, %v6557_v38  ;;  %v6529_v5 = vmul.f32 %v12622_v40, %v14996_v6  ;;  %v6538_v60 = vsel %vm6537_vm0, %v14967_v52, %v6536_v15  ;;  %v15169_v40 = vpop.eup %12625  ;;  %v12691_v52 = vld [vmem:[%s16659_s5] sm:$0xff] }
 0x723   :  { %17646 = vst [vmem:[#allocation105_spill] sm:$0xff] %v15129_v29  ;;  %17647 = vst [vmem:[#allocation109_spill] sm:$0xff] %v15134_v34  ;;  %12635 = vrsqrt.f32 %v6741_v28  ;;  %v6743_v62 = vsel %vm17083_vm1, %v15085_v17, 1.0  ;;  %vm17084_vm10 = vcmp.gt.f32.partialorder %v15071_v46, 0.0  ;;  %v15155_v47 = vmul.f32 %v6071_v18, %v6071_v18 }
 0x724   :  { %v6149_v25 = vpop.permute.xlu1 %6148  ;;  %v6155_v12 = vpop.permute.xlu0 %6154  ;;  %v6070_v51 = vsub.f32 %v14643_v16, %v15059_v32  ;;  %v15161_v15 = vsel %vm6560_vm14, %v6561_v44, %v6559_v24  ;;  %12637 = vrsqrt.f32 %v15129_v29  ;;  %v6531_v16 = vsel %vm6530_vm5, %v14996_v6, %v6529_v5 }
 0x725   :  { %v15137_v57 = vadd.f32 %v14631_v56, %v6149_v25  ;;  %v6265_v56 = vsub.f32 0.0, %v6233_v63  ;;  %v6232_v25 = vadd.f32 %v6155_v12, %v14667_v42  ;;  %v6451_v42 = vmul.f32 %v15134_v34, %v15134_v34 }
 0x726   :  { %v15176_v32 = vsel %vm6539_vm4, %v6540_v23, %v6538_v60  ;;  %vm6551_vm14 = vcmp.eq.f32.partialorder %v15085_v17, inf  ;;  %12639 = vrsqrt.f32 %v6743_v62  ;;  %vm17087_vm0 = vcmp.gt.f32.partialorder %v15090_v41, 0.0 }
 0x727   :  { %v6297_v44 = vmul.f32 %v6265_v56, %v6265_v56  ;;  %v6264_v18 = vsub.f32 0.0, %v6232_v25  ;;  %vm6572_vm1 = vcmp.eq.f32.partialorder %v15071_v46, inf  ;;  %vm17090_vm4 = vcmp.gt.f32.partialorder %v15129_v29, 0.0 }
 0x728   :  { %v6147_v54 = vpop.permute.xlu1 %6146  ;;  %v5997_v38 = vpop.permute.xlu0 %5996  ;;  %vm6544_vm5 = vcmp.eq.f32.partialorder %v15090_v41, inf  ;;  %v15190_v56 = vadd.f32 %v15083_v37, %v6451_v42  ;;  %v15203_v28 = vsel %vm6532_vm8, %v6533_v8, %v6531_v16  ;;  %v6742_v37 = vsel %vm17087_vm0, %v15090_v41, 1.0 }
 0x729   :  { %v6228_v12 = vadd.f32 %v6147_v54, %v14637_v43  ;;  %v6073_v63 = vsub.f32 %v14653_v53, %v5997_v38  ;;  %v6746_v43 = vsel %vm17084_vm10, %v15071_v46, 1.0  ;;  %v12628_v53 = vpop.eup %12627  ;;  %v15184_v54 = vmul.f32 %v6070_v51, %v6070_v51 }
 0x72a   :  { %v12630_v5 = vpop.eup %12629  ;;  %vm6553_vm10 = vcmp.eq.f32.partialorder %v15085_v17, 0.0  ;;  %12641 = vrsqrt.f32 %v6746_v43  ;;  %vm6546_vm11 = vcmp.eq.f32.partialorder %v15090_v41, 0.0  ;;  %vm6565_vm8 = vcmp.eq.f32.partialorder %v15129_v29, inf }
 0x72b   :  { %v6281_v24 = vmul.f32 %v6073_v63, %v6073_v63  ;;  %v12632_v38 = vpop.eup %12631  ;;  %v15199_v4 = vsub.f32 0.0, %v6228_v12  ;;  %v6550_v12 = vmul.f32 %v12630_v5, %v15085_v17  ;;  %v6745_v43 = vsel %vm17090_vm4, %v15129_v29, 1.0 }
 0x72c   :  { %v5987_v23 = vpop.permute.xlu1 %5986  ;;  %v5995_v60 = vpop.permute.xlu0 %5994  ;;  %vm17106_vm0 = vcmp.gt.f32.partialorder %v15190_v56, 0.0  ;;  %v15230_v62 = vsub.f32 0.0, %v15137_v57  ;;  %vm6567_vm4 = vcmp.eq.f32.partialorder %v15129_v29, 0.0 }
 0x72d   :  { %v15192_v25 = vadd.f32 %v6297_v44, %v6281_v24  ;;  %v15195_v63 = vsub.f32 %v14629_v27, %v5987_v23  ;;  %v6072_v51 = vsub.f32 %v14659_v49, %v5995_v60  ;;  %17649 = vst [vmem:[#allocation129_spill] sm:$0xff] %v15199_v4  ;;  %v15209_v42 = vpop.eup %12633  ;;  %v6296_v27 = vmul.f32 %v6264_v18, %v6264_v18 }
 0x72e   :  { %v15214_v44 = vpop.eup %12635  ;;  %v6543_v18 = vmul.f32 %v12632_v38, %v15090_v41  ;;  %v6571_v23 = vmul.f32 %v12628_v53, %v15071_v46  ;;  %17650 = vst [vmem:[#allocation132_spill] sm:$0xff] %v15230_v62  ;;  %v6568_v53 = vand.u32 2147483648, %v15129_v29 }
 0x72f   :  { %17648 = vst [vmem:[#allocation125_spill] sm:$0xff] %v15195_v63  ;;  %12643 = vrsqrt.f32 %v15192_v25  ;;  %v6280_v49 = vmul.f32 %v6072_v51, %v6072_v51  ;;  %v6452_v8 = vmul.f32 %v15195_v63, %v15195_v63  ;;  %v12638_v51 = vpop.eup %12637  ;;  %v6468_v63 = vmul.f32 %v15199_v4, %v15199_v4 }
 0x730   :  { %v6153_v16 = vpop.permute.xlu1 %6152  ;;  %v6161_v24 = vpop.permute.xlu0 %6160  ;;  %12645 = vrsqrt.f32 %v15190_v56 }
 0x731   :  { %v15224_v60 = vadd.f32 %v6296_v27, %v6280_v49  ;;  %v6231_v5 = vadd.f32 %v14645_v58, %v6153_v16  ;;  %v6235_v34 = vadd.f32 %v14677_v1, %v6161_v24  ;;  %12647 = vrsqrt.f32 %v6742_v37  ;;  %v15240_v27 = vpop.eup %12639 }
 0x732   :  { %12649 = vrsqrt.f32 %v6745_v43  ;;  %v6552_v58 = vsel %vm6551_vm14, %v15085_v17, %v6550_v12  ;;  %17651 = vst [vmem:[#allocation135_spill] sm:$0xff] %v15240_v27  ;;  %v15242_v57 = vadd.f32 %v6468_v63, %v6452_v8  ;;  %v6545_v1 = vsel %vm6544_vm5, %v15090_v41, %v6543_v18 }
 0x733   :  { %v6263_v38 = vsub.f32 0.0, %v6231_v5  ;;  %v6573_v37 = vsel %vm6572_vm1, %v15071_v46, %v6571_v23  ;;  %v6747_v24 = vsel %vm17106_vm0, %v15190_v56, 1.0  ;;  %12651 = vrsqrt.f32 %v15224_v60 }
 0x734   :  { %v6151_v49 = vpop.permute.xlu1 %6150  ;;  %v6159_v16 = vpop.permute.xlu0 %6158  ;;  %v6564_v8 = vmul.f32 %v12638_v51, %v15129_v29  ;;  %v15258_v43 = vmul.f32 %v15230_v62, %v15230_v62  ;;  %v6267_v18 = vsub.f32 0.0, %v6235_v34  ;;  %v17652_v23 = vand.u32 2147483648, %v15085_v17 }
 0x735   :  { %v6295_v12 = vmul.f32 %v6263_v38, %v6263_v38  ;;  %v6230_v63 = vadd.f32 %v6151_v49, %v14651_v21  ;;  %v6234_v5 = vadd.f32 %v6159_v16, %v14683_v45  ;;  %v17653_v21 = vand.u32 2147483648, %v15071_v46  ;;  %v15276_v34 = vpop.eup %12641 }
 0x736   :  { %v15265_v4 = vsel %vm6553_vm10, %v17652_v23, %v6552_v58  ;;  %12653 = vrsqrt.f32 %v6747_v24  ;;  %17654 = vst [vmem:[#allocation138_spill] sm:$0xff] %v15276_v34  ;;  %vm6349_vm1 = vcmp.eq.f32.partialorder %v15192_v25, inf  ;;  %v17655_v58 = vand.u32 2147483648, %v15090_v41 }
 0x737   :  { %v15268_v27 = vadd.f32 %v6295_v12, %v15155_v47  ;;  %v6262_v38 = vsub.f32 0.0, %v6230_v63  ;;  %v15274_v51 = vsel %vm6574_vm7, %v17653_v21, %v6573_v37  ;;  %12655 = vrsqrt.f32 %v15242_v57 }
 0x738   :  { %v6001_v45 = vpop.permute.xlu0 %6000  ;;  %v6009_v49 = vpop.permute.xlu1 %6008  ;;  %v15284_v47 = vsel %vm6546_vm11, %v17655_v58, %v6545_v1  ;;  %v6566_v63 = vsel %vm6565_vm8, %v15129_v29, %v6564_v8  ;;  %v6299_v23 = vmul.f32 %v6267_v18, %v6267_v18  ;;  %v6266_v21 = vsub.f32 0.0, %v6234_v5 }
 0x739   :  { %v12644_v12 = vpop.eup %12643  ;;  %12657 = vrsqrt.f32 %v15268_v27  ;;  %v6294_v37 = vmul.f32 %v6262_v38, %v6262_v38  ;;  %v6075_v24 = vsub.f32 %v14669_v33, %v6001_v45  ;;  %vm6351_vm7 = vcmp.eq.f32.partialorder %v15192_v25, 0.0 }
 0x73a   :  { %v6352_v46 = vand.u32 2147483648, %v15192_v25  ;;  %v12646_v1 = vpop.eup %12645  ;;  %v6348_v62 = vmul.f32 %v12644_v12, %v15192_v25  ;;  %vm17099_vm11 = vcmp.gt.f32.partialorder %v15242_v57, 0.0  ;;  %v6079_v38 = vsub.f32 %v14701_v48, %v6009_v49 }
 0x73b   :  { %v15295_v58 = vadd.f32 %v6294_v37, %v15184_v54  ;;  %v6283_v16 = vmul.f32 %v6075_v24, %v6075_v24  ;;  %v15299_v33 = vpop.eup %12647  ;;  %vm6342_vm10 = vcmp.eq.f32.partialorder %v15224_v60, inf  ;;  %v6345_v5 = vand.u32 2147483648, %v15224_v60 }
 0x73c   :  { %17656 = vst [vmem:[#allocation140_spill] sm:$0xff] %v15299_v33  ;;  %v5999_v8 = vpop.permute.xlu0 %5998  ;;  %v6173_v18 = vpop.permute.xlu1 %6172  ;;  %v15306_v45 = vsel %vm6567_vm4, %v6568_v53, %v6566_v63  ;;  %vm6344_vm14 = vcmp.eq.f32.partialorder %v15224_v60, 0.0  ;;  %v6298_v49 = vmul.f32 %v6266_v21, %v6266_v21  ;;  %v6350_v24 = vsel %vm6349_vm1, %v15192_v25, %v6348_v62 }
 0x73d   :  { %v15308_v54 = vpop.eup %12649  ;;  %12659 = vrsqrt.f32 %v15295_v58  ;;  %v15311_v12 = vadd.f32 %v6299_v23, %v6283_v16  ;;  %v6074_v37 = vsub.f32 %v14675_v19, %v5999_v8  ;;  %v6241_v48 = vadd.f32 %v14725_v9, %v6173_v18 }
 0x73e   :  { %v15322_v53 = vsel %vm17099_vm11, %v15242_v57, 1.0  ;;  %v15325_v63 = vmul.f32 %v12646_v1, %v15190_v56  ;;  %v12652_v16 = vpop.eup %12651  ;;  %v6353_v23 = vsel %vm6351_vm7, %v6352_v46, %v6350_v24  ;;  %vm6335_vm4 = vcmp.eq.f32.partialorder %v15268_v27, inf }
 0x73f   :  { %12661 = vrsqrt.f32 %v15311_v12  ;;  %v6282_v19 = vmul.f32 %v6074_v37, %v6074_v37  ;;  %v6273_v9 = vsub.f32 0.0, %v6241_v48  ;;  %vm6337_vm5 = vcmp.eq.f32.partialorder %v15268_v27, 0.0 }
 0x740   :  { %v6165_v21 = vpop.permute.xlu0 %6164  ;;  %v6171_v8 = vpop.permute.xlu1 %6170  ;;  %v6338_v62 = vand.u32 2147483648, %v15268_v27  ;;  %v6601_v18 = vsub.f32 %v6353_v23, %v14986_v61  ;;  %v15336_v41 = vmul.f32 %v6079_v38, %v6079_v38  ;;  %vm6328_vm8 = vcmp.eq.f32.partialorder %v15295_v58, inf }
 0x741   :  { %v15334_v1 = vpop.eup %12653  ;;  %v15338_v17 = vadd.f32 %v6298_v49, %v6282_v19  ;;  %v6237_v37 = vadd.f32 %v14693_v35, %v6165_v21  ;;  %v6240_v46 = vadd.f32 %v6171_v8, %v14731_v14  ;;  %vm6330_vm1 = vcmp.eq.f32.partialorder %v15295_v58, 0.0 }
 0x742   :  { %17657 = vst [vmem:[#allocation16_spill] sm:$0xff] %v15334_v1  ;;  %v12656_v25 = vpop.eup %12655  ;;  %v6689_v48 = vmul.f32 %v14763_v3, %v6601_v18  ;;  %v6341_v24 = vmul.f32 %v12652_v16, %v15224_v60  ;;  %v6305_v34 = vmul.f32 %v6273_v9, %v6273_v9  ;;  %v6331_v38 = vand.u32 2147483648, %v15295_v58  ;;  %v17659_v1 = vld [vmem:[#allocation23_spill] sm:$0xff] }
 0x743   :  { %v12658_v23 = vpop.eup %12657  ;;  %vm6363_vm7 = vcmp.eq.f32.partialorder %v15311_v12, inf  ;;  %v6366_v49 = vand.u32 2147483648, %v15311_v12  ;;  %v6269_v35 = vsub.f32 0.0, %v6237_v37  ;;  %v6272_v18 = vsub.f32 0.0, %v6240_v46 }
 0x744   :  { %v6163_v19 = vpop.permute.xlu0 %6162  ;;  %v6013_v14 = vpop.permute.xlu1 %6012  ;;  %v6334_v21 = vmul.f32 %v12658_v23, %v15268_v27  ;;  %v15351_v8 = vadd.f32 %v6689_v48, %v14986_v61  ;;  %v6343_v16 = vsel %vm6342_vm10, %v15224_v60, %v6341_v24  ;;  %vm6365_vm11 = vcmp.eq.f32.partialorder %v15311_v12, 0.0 }
 0x745   :  { %v6236_v9 = vadd.f32 %v6163_v19, %v14699_v59  ;;  %v6081_v33 = vsub.f32 %v17659_v1, %v6013_v14  ;;  %v15360_v37 = vmul.f32 %v12656_v25, %v15242_v57  ;;  %12663 = vrsqrt.f32 %v15338_v17 }
 0x746   :  { %17658 = vst [vmem:[#allocation18_spill] sm:$0xff] %v15351_v8  ;;  %v6336_v61 = vsel %vm6335_vm4, %v15268_v27, %v6334_v21  ;;  %v15368_v48 = vmul.f32 %v15028_v22, %v15351_v8  ;;  %v6346_v59 = vsel %vm6344_vm14, %v6345_v5, %v6343_v16  ;;  %v6301_v19 = vmul.f32 %v6269_v35, %v6269_v35  ;;  %v17662_v27 = vld [vmem:[#allocation25_spill] sm:$0xff] }
 0x747   :  { %v12660_v46 = vpop.eup %12659  ;;  %v6268_v1 = vsub.f32 0.0, %v6236_v9  ;;  %v6289_v24 = vmul.f32 %v6081_v33, %v6081_v33  ;;  %v6339_v25 = vsel %vm6337_vm5, %v6338_v62, %v6336_v61  ;;  %v6600_v23 = vsub.f32 %v6346_v59, %v15026_v7  ;;  %v17661_v33 = vld [vmem:[#allocation20_spill] sm:$0xff]  ;;  %v17663_v61 = vld [vmem:[#allocation31_spill] sm:$0xff] }
 0x748   :  { %17660 = vst [vmem:[#allocation21_spill] sm:$0xff] %v15368_v48  ;;  %v6005_v14 = vpop.permute.xlu0 %6004  ;;  %v6011_v36 = vpop.permute.xlu1 %6010  ;;  %v6599_v21 = vsub.f32 %v6339_v25, %v14931_v55  ;;  %v6817_v22 = vmul.f32 %v15368_v48, %v14826_v13  ;;  %v6327_v29 = vmul.f32 %v12660_v46, %v15295_v58  ;;  %v6304_v5 = vmul.f32 %v6272_v18, %v6272_v18 }
 0x749   :  { %v12662_v60 = vpop.eup %12661  ;;  %v15379_v16 = vadd.f32 %v6305_v34, %v6289_v24  ;;  %v6077_v9 = vsub.f32 %v17661_v33, %v6005_v14  ;;  %v6080_v62 = vsub.f32 %v17662_v27, %v6011_v36  ;;  %v6359_v13 = vand.u32 2147483648, %v15338_v17  ;;  %v17664_v33 = vld [vmem:[#allocation14_spill] sm:$0xff] }
 0x74a   :  { %v6687_v59 = vmul.f32 %v17663_v61, %v6599_v21  ;;  %v6329_v35 = vsel %vm6328_vm8, %v15295_v58, %v6327_v29  ;;  %v6362_v25 = vmul.f32 %v12662_v60, %v15311_v12  ;;  %v6300_v8 = vmul.f32 %v6268_v1, %v6268_v1 }
 0x74b   :  { %v6285_v46 = vmul.f32 %v6077_v9, %v6077_v9  ;;  %v6288_v48 = vmul.f32 %v6080_v62, %v6080_v62  ;;  %v6332_v34 = vsel %vm6330_vm1, %v6331_v38, %v6329_v35  ;;  %v6688_v21 = vmul.f32 %v14763_v3, %v6600_v23  ;;  %v17666_v35 = vld [vmem:[#allocation35_spill] sm:$0xff] }
 0x74c   :  { %v6003_v18 = vpop.permute.xlu0 %6002  ;;  %v6177_v24 = vpop.permute.xlu1 %6176  ;;  %v15392_v36 = vadd.f32 %v6687_v59, %v14931_v55  ;;  %v6598_v14 = vsub.f32 %v6332_v34, %v14946_v31  ;;  %v6364_v29 = vsel %vm6363_vm7, %v15311_v12, %v6362_v25  ;;  %vm6356_vm10 = vcmp.eq.f32.partialorder %v15338_v17, inf }
 0x74d   :  { %v15399_v60 = vadd.f32 %v6301_v19, %v6285_v46  ;;  %v15401_v1 = vadd.f32 %v6304_v5, %v6288_v48  ;;  %v6076_v58 = vsub.f32 %v17664_v33, %v6003_v18  ;;  %v6243_v38 = vadd.f32 %v14744_v20, %v6177_v24 }
 0x74e   :  { %v15408_v55 = vmul.f32 %v14958_v10, %v15392_v36  ;;  %v6686_v9 = vmul.f32 %v17663_v61, %v6598_v14  ;;  %v6367_v27 = vsel %vm6365_vm11, %v6366_v49, %v6364_v29  ;;  %v15414_v3 = vadd.f32 %v6688_v21, %v15026_v7  ;;  %v17665_v61 = vld [vmem:[#allocation24_spill] sm:$0xff]  ;;  %v17670_v14 = vld [vmem:[#allocation61_spill] sm:$0xff] }
 0x74f   :  { %vm6358_vm14 = vcmp.eq.f32.partialorder %v15338_v17, 0.0  ;;  %12665 = vrsqrt.f32 %v15399_v60  ;;  %v6284_v48 = vmul.f32 %v6076_v58, %v6076_v58  ;;  %v6275_v20 = vsub.f32 0.0, %v6243_v38  ;;  %v12664_v19 = vpop.eup %12663 }
 0x750   :  { %v6603_v23 = vsub.f32 %v6367_v27, %v15094_v0  ;;  %12667 = vrsqrt.f32 %v15401_v1  ;;  %v6169_v10 = vpop.permute.xlu0 %6168  ;;  %v6175_v5 = vpop.permute.xlu1 %6174  ;;  %v6815_v12 = vmul.f32 %v15408_v55, %v14799_v30  ;;  %v15423_v49 = vadd.f32 %v6686_v9, %v14946_v31  ;;  %v17668_v30 = vld [vmem:[#allocation93_spill] sm:$0xff]  ;;  %v17669_v31 = vld [vmem:[#allocation48_spill] sm:$0xff] }
 0x751   :  { %v15427_v7 = vmul.f32 %v15057_v26, %v15414_v3  ;;  %12669 = vrsqrt.f32 %v15379_v16  ;;  %v15430_v62 = vadd.f32 %v6300_v8, %v6284_v48  ;;  %v6239_v59 = vadd.f32 %v17665_v61, %v6169_v10  ;;  %v17672_v48 = vld [vmem:[#allocation60_spill] sm:$0xff] }
 0x752   :  { %v6242_v25 = vadd.f32 %v6175_v5, %v17666_v35  ;;  %v6831_v34 = vsel %vm6719_vm2, %v6815_v12, 0.0  ;;  %v15438_v18 = vmul.f32 %v17668_v30, %v15423_v49  ;;  %v6691_v24 = vmul.f32 %v17669_v31, %v6603_v23  ;;  %v17673_v12 = vld [vmem:[#allocation29_spill] sm:$0xff] }
 0x753   :  { %v6816_v26 = vmul.f32 %v15427_v7, %v17670_v14  ;;  %12671 = vrsqrt.f32 %v15430_v62  ;;  %v6271_v8 = vsub.f32 0.0, %v6239_v59  ;;  %6864 = vrot.lane.b32.xlu1 %v6831_v34, %s12794_s6  ;;  %v6355_v21 = vmul.f32 %v12664_v19, %v15338_v17  ;;  %v17674_v59 = vld [vmem:[#allocation28_spill] sm:$0xff] }
 0x754   :  { %v6274_v29 = vsub.f32 0.0, %v6242_v25  ;;  %v15446_v33 = vmul.f32 %v6275_v20, %v6275_v20  ;;  %v6167_v58 = vpop.permute.xlu0 %6166  ;;  %v6015_v38 = vpop.permute.xlu1 %6014  ;;  %v6833_v27 = vsel %vm6721_vm6, %v6817_v22, 0.0  ;;  %v6814_v23 = vmul.f32 %v15438_v18, %v17672_v48  ;;  %v17706_v25 = vld [vmem:[#allocation100_spill] sm:$0xff] }
 0x755   :  { %v15453_v10 = vadd.f32 %v6691_v24, %v15094_v0  ;;  %v6303_v5 = vmul.f32 %v6271_v8, %v6271_v8  ;;  %v6238_v61 = vadd.f32 %v6167_v58, %v17673_v12  ;;  %v6082_v35 = vsub.f32 %v17674_v59, %v6015_v38 }
 0x756   :  { %v6832_v20 = vsel %vm6720_vm9, %v6816_v26, 0.0  ;;  %v6306_v19 = vmul.f32 %v6274_v29, %v6274_v29  ;;  %v6830_v30 = vsel %vm6718_vm3, %v6814_v23, 0.0  ;;  %v6357_v0 = vsel %vm6356_vm10, %v15338_v17, %v6355_v21  ;;  %v17677_v29 = vld [vmem:[#allocation71_spill] sm:$0xff] }
 0x757   :  { %v15463_v22 = vmul.f32 %v15106_v2, %v15453_v10  ;;  %v15469_v24 = vadd.f32 %v6303_v5, %v15336_v41  ;;  %v6270_v14 = vsub.f32 0.0, %v6238_v61  ;;  %v6290_v8 = vmul.f32 %v6082_v35, %v6082_v35  ;;  %6868 = vrot.lane.b32.xlu1 %v6833_v27, %s12794_s6  ;;  %6862 = vrot.lane.b32.xlu0 %v6830_v30, %s12794_s6  ;;  %v17678_v27 = vld [vmem:[#allocation15_spill] sm:$0xff] }
 0x758   :  { %v6360_v26 = vsel %vm6358_vm14, %v6359_v13, %v6357_v0  ;;  %v6007_v2 = vpop.permute.xlu0 %6006  ;;  %vm6370_vm11 = vcmp.eq.f32.partialorder %v15430_v62, inf  ;;  %vm6372_vm4 = vcmp.eq.f32.partialorder %v15430_v62, 0.0  ;;  %v6373_v17 = vand.u32 2147483648, %v15430_v62 }
 0x759   :  { %v6819_v58 = vmul.f32 %v15463_v22, %v17677_v29  ;;  %v6602_v21 = vsub.f32 %v6360_v26, %v15123_v39  ;;  %v12666_v41 = vpop.eup %12665  ;;  %12673 = vrsqrt.f32 %v15469_v24  ;;  %v15483_v38 = vadd.f32 %v6306_v19, %v6290_v8 }
 0x75a   :  { %v6078_v48 = vsub.f32 %v17678_v27, %v6007_v2  ;;  %v12668_v13 = vpop.eup %12667  ;;  %v6376_v61 = vmul.f32 %v12666_v41, %v15399_v60  ;;  %vm6377_vm5 = vcmp.eq.f32.partialorder %v15399_v60, inf  ;;  %vm6579_vm8 = vcmp.eq.f32.partialorder %v15190_v56, inf }
 0x75b   :  { %v6835_v5 = vsel %vm6723_vm13, %v6819_v58, 0.0  ;;  %v6690_v12 = vmul.f32 %v17669_v31, %v6602_v21  ;;  %v12670_v59 = vpop.eup %12669  ;;  %v6302_v35 = vmul.f32 %v6270_v14, %v6270_v14  ;;  %6866 = vrot.lane.b32.xlu0 %v6832_v20, %s12794_s6  ;;  %v6380_v30 = vand.u32 2147483648, %v15399_v60  ;;  %v17680_v20 = vld [vmem:[#allocation30_spill] sm:$0xff] }
 0x75c   :  { %v6286_v19 = vmul.f32 %v6078_v48, %v6078_v48  ;;  %6872 = vrot.lane.b32.xlu1 %v6835_v5, %s12794_s6  ;;  %v6397_v0 = vmul.f32 %v12668_v13, %v15401_v1  ;;  %vm6586_vm1 = vcmp.eq.f32.partialorder %v15242_v57, inf  ;;  %v6017_v31 = vpop.permute.xlu0 %6016  ;;  %v6378_v26 = vsel %vm6377_vm5, %v15399_v60, %v6376_v61  ;;  %v17681_v5 = vld [vmem:[#allocation73_spill] sm:$0xff] }
 0x75d   :  { %v15499_v8 = vadd.f32 %v6690_v12, %v15123_v39  ;;  %vm6379_vm7 = vcmp.eq.f32.partialorder %v15399_v60, 0.0  ;;  %vm6398_vm10 = vcmp.eq.f32.partialorder %v15401_v1, inf  ;;  %v12672_v14 = vpop.eup %12671  ;;  %v6083_v29 = vsub.f32 %v17680_v20, %v6017_v31 }
 0x75e   :  { %v15504_v2 = vadd.f32 %v6302_v35, %v6286_v19  ;;  %v6381_v58 = vsel %vm6379_vm7, %v6380_v30, %v6378_v26  ;;  %v6399_v21 = vsel %vm6398_vm10, %v15401_v1, %v6397_v0  ;;  %vm6581_vm14 = vcmp.eq.f32.partialorder %v15190_v56, 0.0  ;;  %v17682_v30 = vld [vmem:[#allocation17_spill] sm:$0xff] }
 0x75f   :  { %v15511_v39 = vmul.f32 %v15143_v50, %v15499_v8  ;;  %v6369_v41 = vmul.f32 %v12672_v14, %v15430_v62  ;;  %v6605_v60 = vsub.f32 %v6381_v58, %v15176_v32  ;;  %v6401_v27 = vand.u32 2147483648, %v15401_v1 }
 0x760   :  { %vm6588_vm5 = vcmp.eq.f32.partialorder %v15242_v57, 0.0  ;;  %12675 = vrsqrt.f32 %v15504_v2  ;;  %v6291_v48 = vmul.f32 %v6083_v29, %v6083_v29  ;;  %vm6400_vm7 = vcmp.eq.f32.partialorder %v15401_v1, 0.0  ;;  %v5989_v50 = vpop.permute.xlu0 %5988 }
 0x761   :  { %v6404_v13 = vmul.f32 %v12670_v59, %v15379_v16  ;;  %v6818_v12 = vmul.f32 %v15511_v39, %v17681_v5  ;;  %v6371_v61 = vsel %vm6370_vm11, %v15430_v62, %v6369_v41  ;;  %v15525_v35 = vsel %vm6400_vm7, %v6401_v27, %v6399_v21 }
 0x762   :  { %vm6405_vm10 = vcmp.eq.f32.partialorder %v15379_v16, inf  ;;  %v15529_v19 = vadd.f32 %v15446_v33, %v6291_v48  ;;  %v15532_v0 = vsub.f32 %v17682_v30, %v5989_v50  ;;  %v6374_v1 = vsel %vm6372_vm4, %v6373_v17, %v6371_v61 }
 0x763   :  { %v6406_v59 = vsel %vm6405_vm10, %v15379_v16, %v6404_v13  ;;  %v6834_v31 = vsel %vm6722_vm15, %v6818_v12, 0.0  ;;  %v6604_v26 = vsub.f32 %v6374_v1, %v15203_v28  ;;  %v6408_v14 = vand.u32 2147483648, %v15379_v16  ;;  %v12674_v33 = vpop.eup %12673 }
 0x764   :  { %v6608_v20 = vsub.f32 %v15525_v35, %v15161_v15  ;;  %12677 = vrsqrt.f32 %v15483_v38  ;;  %6870 = vrot.lane.b32.xlu0 %v6834_v31, %s12794_s6  ;;  %v6453_v62 = vmul.f32 %v15532_v0, %v15532_v0  ;;  %vm6407_vm11 = vcmp.eq.f32.partialorder %v15379_v16, 0.0  ;;  %v6181_v29 = vpop.permute.xlu0 %6180  ;;  %v17683_v16 = vld [vmem:[#allocation45_spill] sm:$0xff] }
 0x765   :  { %v6580_v17 = vsel %vm6579_vm8, %v15190_v56, %v15325_v63  ;;  %v6409_v58 = vsel %vm6407_vm11, %v6408_v14, %v6406_v59  ;;  %v6587_v21 = vsel %vm6586_vm1, %v15242_v57, %v15360_v37  ;;  %v6589_v41 = vand.u32 2147483648, %v15242_v57  ;;  %v6668_v13 = vpop.permute.xlu1 %6667  ;;  %v17685_v59 = vld [vmem:[#allocation49_spill] sm:$0xff] }
 0x766   :  { %12679 = vrsqrt.f32 %v15322_v53  ;;  %v15559_v27 = vadd.f32 %v15258_v43, %v6453_v62  ;;  %v6245_v48 = vadd.f32 %v17683_v16, %v6181_v29  ;;  %v6609_v5 = vsub.f32 %v6409_v58, %v15306_v45  ;;  %v17686_v62 = vld [vmem:[#allocation44_spill] sm:$0xff] }
 0x767   :  { %v6390_v63 = vmul.f32 %v12674_v33, %v15469_v24  ;;  %12681 = vrsqrt.f32 %v15529_v19  ;;  %v6692_v12 = vmul.f32 %v6668_v13, %v6604_v26  ;;  %v6693_v50 = vmul.f32 %v6668_v13, %v6605_v60  ;;  %v17687_v13 = vld [vmem:[#allocation88_spill] sm:$0xff] }
 0x768   :  { %v17684_v37 = vand.u32 2147483648, %v15190_v56  ;;  %v6277_v53 = vsub.f32 0.0, %v6245_v48  ;;  %v15573_v43 = vsel %vm6588_vm5, %v6589_v41, %v6587_v21  ;;  %12683 = vrsqrt.f32 %v15559_v27  ;;  %v6179_v30 = vpop.permute.xlu0 %6178 }
 0x769   :  { %vm6384_vm4 = vcmp.eq.f32.partialorder %v15504_v2, inf  ;;  %v15578_v35 = vadd.f32 %v6692_v12, %v15203_v28  ;;  %v15581_v60 = vadd.f32 %v6693_v50, %v15176_v32  ;;  %vm6386_vm8 = vcmp.eq.f32.partialorder %v15504_v2, 0.0  ;;  %v6021_v26 = vpop.permute.xlu1 %6020 }
 0x76a   :  { %v15569_v61 = vsel %vm6581_vm14, %v17684_v37, %v6580_v17  ;;  %vm6391_vm1 = vcmp.eq.f32.partialorder %v15469_v24, inf  ;;  %v12676_v1 = vpop.eup %12675  ;;  %v6244_v31 = vadd.f32 %v6179_v30, %v17685_v59  ;;  %vm6733_vm14 = vcmp.gt.f32.partialorder %v15559_v27, 0.0  ;;  %v17688_v37 = vld [vmem:[#allocation39_spill] sm:$0xff] }
 0x76b   :  { %v6387_v14 = vand.u32 2147483648, %v15504_v2  ;;  %v6392_v33 = vsel %vm6391_vm1, %v15469_v24, %v6390_v63  ;;  %v6772_v28 = vmul.f32 %v15209_v42, %v15578_v35  ;;  %v6773_v32 = vmul.f32 %v15214_v44, %v15581_v60 }
 0x76c   :  { %v6085_v17 = vsub.f32 %v17686_v62, %v6021_v26  ;;  %v6394_v29 = vand.u32 2147483648, %v15469_v24  ;;  %v6309_v58 = vmul.f32 %v6277_v53, %v6277_v53  ;;  %v6276_v21 = vsub.f32 0.0, %v6244_v31  ;;  %v6019_v48 = vpop.permute.xlu0 %6018 }
 0x76d   :  { %v6383_v41 = vmul.f32 %v12676_v1, %v15504_v2  ;;  %vm6393_vm5 = vcmp.eq.f32.partialorder %v15469_v24, 0.0  ;;  %v6821_v63 = vmul.f32 %v6773_v32, %v17687_v13  ;;  %vm6593_vm7 = vcmp.eq.f32.partialorder %v15559_v27, inf  ;;  %v6676_v30 = vpop.permute.xlu1 %6675  ;;  %v17689_v1 = vld [vmem:[#allocation87_spill] sm:$0xff] }
 0x76e   :  { %v6293_v16 = vmul.f32 %v6085_v17, %v6085_v17  ;;  %v6749_v42 = vsel %vm6733_vm14, %v15559_v27, 1.0  ;;  %v15602_v44 = vsel %vm6393_vm5, %v6394_v29, %v6392_v33  ;;  %v12678_v12 = vpop.eup %12677  ;;  %v6308_v50 = vmul.f32 %v6276_v21, %v6276_v21 }
 0x76f   :  { %v6084_v53 = vsub.f32 %v17688_v37, %v6019_v48  ;;  %v6820_v59 = vmul.f32 %v6772_v28, %v17689_v1  ;;  %v6385_v24 = vsel %vm6384_vm4, %v15504_v2, %v6383_v41  ;;  %v6696_v62 = vmul.f32 %v6676_v30, %v6608_v20  ;;  %v17693_v1 = vld [vmem:[#allocation77_spill] sm:$0xff] }
 0x770   :  { %v15609_v31 = vpop.eup %12679  ;;  %v15611_v26 = vadd.f32 %v6309_v58, %v6293_v16  ;;  %v6697_v17 = vmul.f32 %v6676_v30, %v6609_v5  ;;  %v6837_v33 = vsel %vm6725_vm12, %v6821_v63, 0.0  ;;  %vm17690_vm10 = vcmp.gt.f32.partialorder %v14996_v6, 0.0 }
 0x771   :  { %v6292_v29 = vmul.f32 %v6084_v53, %v6084_v53  ;;  %6876 = vrot.lane.b32.xlu1 %v6837_v33, %s12794_s6  ;;  %v6836_v21 = vsel %vm17690_vm10, %v6820_v59, 0.0  ;;  %v15620_v48 = vsel %vm6386_vm8, %v6387_v14, %v6385_v24  ;;  %v12682_v58 = vpop.eup %12681  ;;  %v15626_v20 = vadd.f32 %v6696_v62, %v15161_v15  ;;  %v17699_v24 = vld [vmem:[#allocation21_spill] sm:$0xff] }
 0x772   :  { %12685 = vrsqrt.f32 %v15611_v26  ;;  %v15629_v5 = vadd.f32 %v6697_v17, %v15306_v45  ;;  %6874 = vrot.lane.b32.xlu0 %v6836_v21, %s12794_s6  ;;  %v6411_v16 = vmul.f32 %v12678_v12, %v15483_v38  ;;  %v12684_v13 = vpop.eup %12683  ;;  %vm6595_vm11 = vcmp.eq.f32.partialorder %v15559_v27, 0.0  ;;  %v17691_v12 = vld [vmem:[#allocation92_spill] sm:$0xff]  ;;  %v17694_v17 = vld [vmem:[#allocation97_spill] sm:$0xff] }
 0x773   :  { %v15633_v2 = vadd.f32 %v6308_v50, %v6292_v29  ;;  %v6596_v14 = vand.u32 2147483648, %v15559_v27  ;;  %v6606_v63 = vsub.f32 %v15620_v48, %v15284_v47  ;;  %v6776_v15 = vmul.f32 %v15169_v40, %v15626_v20  ;;  %v17692_v50 = vld [vmem:[#allocation80_spill] sm:$0xff]  ;;  %v17711_v48 = vld [vmem:[#allocation105_spill] sm:$0xff] }
 0x774   :  { %v6777_v45 = vmul.f32 %v15308_v54, %v15629_v5  ;;  %v6592_v37 = vmul.f32 %v12684_v13, %v15559_v27  ;;  %12687 = vrsqrt.f32 %v6749_v42  ;;  %v6788_v53 = vmul.f32 %v6772_v28, %v17691_v12 }
 0x775   :  { %v6789_v30 = vmul.f32 %v6773_v32, %v17692_v50  ;;  %12689 = vrsqrt.f32 %v15633_v2  ;;  %vm6412_vm4 = vcmp.eq.f32.partialorder %v15483_v38, inf  ;;  %v15649_v59 = vmul.f32 %v6776_v15, %v17693_v1 }
 0x776   :  { %vm6433_vm8 = vcmp.eq.f32.partialorder %v15611_v26, inf  ;;  %v6436_v40 = vand.u32 2147483648, %v15611_v26  ;;  %v6413_v54 = vsel %vm6412_vm4, %v15483_v38, %v6411_v16  ;;  %v6594_v28 = vsel %vm6593_vm7, %v15559_v27, %v6592_v37  ;;  %v17695_v16 = vld [vmem:[#allocation84_spill] sm:$0xff]  ;;  %v17697_v37 = vld [vmem:[#allocation119_spill] sm:$0xff] }
 0x777   :  { %vm6435_vm1 = vcmp.eq.f32.partialorder %v15611_v26, 0.0  ;;  %vm6414_vm5 = vcmp.eq.f32.partialorder %v15483_v38, 0.0  ;;  %v6415_v32 = vand.u32 2147483648, %v15483_v38  ;;  %v6418_v42 = vmul.f32 %v12682_v58, %v15529_v19  ;;  %v17696_v38 = vld [vmem:[#allocation40_spill] sm:$0xff] }
 0x778   :  { %vm6419_vm10 = vcmp.eq.f32.partialorder %v15529_v19, inf  ;;  %vm6421_vm0 = vcmp.eq.f32.partialorder %v15529_v19, 0.0  ;;  %v6422_v62 = vand.u32 2147483648, %v15529_v19  ;;  %v15666_v33 = vmul.f32 %v6777_v45, %v17694_v17  ;;  %v17698_v17 = vld [vmem:[#allocation52_spill] sm:$0xff] }
 0x779   :  { %vm6426_vm4 = vcmp.eq.f32.partialorder %v15633_v2, inf  ;;  %v6416_v29 = vsel %vm6414_vm5, %v6415_v32, %v6413_v54  ;;  %v6420_v21 = vsel %vm6419_vm10, %v15529_v19, %v6418_v42  ;;  %v15671_v13 = vmul.f32 %v6776_v15, %v17695_v16  ;;  %v15683_v19 = vld [vmem:[%s16659_s5 + $0x10] sm:$0xff]  ;;  %v15688_v15 = vld [vmem:[%s16659_s5 + $0x18] sm:$0xff] }
 0x77a   :  { %v6783_v58 = vmul.f32 %v15408_v55, %v17696_v38  ;;  %v6793_v12 = vmul.f32 %v6777_v45, %v17697_v37  ;;  %vm6428_vm7 = vcmp.eq.f32.partialorder %v15633_v2, 0.0  ;;  %v6423_v50 = vsel %vm6421_vm0, %v6422_v62, %v6420_v21  ;;  %v17701_v62 = vld [vmem:[#allocation18_spill] sm:$0xff]  ;;  %v17702_v21 = vld [vmem:[#allocation65_spill] sm:$0xff]  ;;  %v17704_v38 = vld [vmem:[#allocation72_spill] sm:$0xff] }
 0x77b   :  { %v6610_v1 = vsub.f32 %v6416_v29, %v15274_v51  ;;  %v6785_v41 = vmul.f32 %v17699_v24, %v17698_v17  ;;  %v6597_v55 = vsel %vm6595_vm11, %v6596_v14, %v6594_v28  ;;  %v6611_v45 = vsub.f32 %v6423_v50, %v15569_v61  ;;  %v17700_v24 = vld [vmem:[#allocation41_spill] sm:$0xff]  ;;  %v17703_v14 = vld [vmem:[#allocation56_spill] sm:$0xff] }
 0x77c   :  { %v15696_v54 = vsel %vm6719_vm2, %v6783_v58, %v15392_v36  ;;  %v6782_v32 = vmul.f32 %v15438_v18, %v17700_v24  ;;  %v12686_v42 = vpop.eup %12685  ;;  %v6787_v16 = vmul.f32 %v15463_v22, %v17702_v21  ;;  %v6784_v28 = vmul.f32 %v15427_v7, %v17703_v14  ;;  %v12692_v24 = vld [vmem:[%s16659_s5 + $0x8] sm:$0xff] }
 0x77d   :  { %v15703_v29 = vsel %vm6721_vm6, %v6785_v41, %v17701_v62  ;;  %v6786_v46 = vmul.f32 %v15511_v39, %v17704_v38  ;;  %v6432_v36 = vmul.f32 %v12686_v42, %v15611_v26  ;;  %v6982_v9 = vand.u32 4294901760, %v15683_v19  ;;  %v6672_v23 = vpop.permute.xlu0 %6671 }
 0x77e   :  { %v15715_v18 = vsel %vm6718_vm3, %v6782_v32, %v15423_v49  ;;  %v6985_v41 = vand.u32 4294901760, %v15688_v15  ;;  %v12688_v58 = vpop.eup %12687  ;;  %v15722_v22 = vsel %vm6723_vm13, %v6787_v16, %v15453_v10  ;;  %v15727_v7 = vsel %vm6720_vm9, %v6784_v28, %v15414_v3  ;;  %v17709_v32 = vld [vmem:[#allocation104_spill] sm:$0xff]  ;;  %v17713_v16 = vld [vmem:[#allocation89_spill] sm:$0xff] }
 0x77f   :  { %v15732_v49 = vsel %vm6722_vm15, %v6786_v46, %v15499_v8  ;;  %v15737_v34 = vsel %vm6725_vm12, %v6789_v30, %v15581_v60  ;;  %v12690_v39 = vpop.eup %12689  ;;  %v6434_v10 = vsel %vm6433_vm8, %v15611_v26, %v6432_v36  ;;  %vm17705_vm2 = vcmp.gt.f32.partialorder %v14996_v6, 0.0  ;;  %v17716_v36 = vld [vmem:[#allocation140_spill] sm:$0xff] }
 0x780   :  { %v15746_v3 = vpack.c.bf16 %v6985_v41, %v6982_v9  ;;  %v15751_v11 = vsel %vm17705_vm2, %v6788_v53, %v15578_v35  ;;  %v17707_v8 = vand.u32 4294901760, %v17706_v25  ;;  %v6425_v30 = vmul.f32 %v12690_v39, %v15633_v2 }
 0x781   :  { %v6437_v37 = vsel %vm6435_vm1, %v6436_v40, %v6434_v10  ;;  %v6694_v50 = vmul.f32 %v6672_v23, %v6606_v63  ;;  %v17708_v6 = vsub.f32 %v15602_v44, %v15265_v4  ;;  %v17710_v26 = vand.u32 4294901760, %v17709_v32  ;;  %v6684_v44 = vpop.permute.xlu1 %6683  ;;  %v6680_v38 = vpop.permute.xlu0 %6679  ;;  %v17717_v10 = vld [vmem:[#allocation135_spill] sm:$0xff]  ;;  %v17720_v32 = vld [vmem:[#allocation108_spill] sm:$0xff] }
 0x782   :  { %v15758_v60 = vsub.f32 %v12691_v52, %v17707_v8  ;;  %v6613_v53 = vsub.f32 %v6437_v37, %v6597_v55  ;;  %11852 = vmatprep.subr.bf16.mxu0 %v15746_v3  ;;  %vm17712_vm3 = vcmp.gt.f32.partialorder %v17711_v48, 0.0  ;;  %v6427_v42 = vsel %vm6426_vm4, %v15633_v2, %v6425_v30  ;;  %v17718_v30 = vld [vmem:[#allocation112_spill] sm:$0xff] }
 0x783   :  { %v6695_v35 = vmul.f32 %v6672_v23, %v17708_v6  ;;  %v15776_v40 = vsub.f32 %v12692_v24, %v17710_v26  ;;  %v15781_v63 = vsel %vm17712_vm3, %v6793_v12, %v15629_v5  ;;  %v6710_v62 = vadd.f32 %v6694_v50, %v15284_v47  ;;  %11854 = vmatpush3.bf16.msra.mxu0 %v15746_v3  ;;  %v17719_v50 = vld [vmem:[#allocation64_spill] sm:$0xff]  ;;  %vm17735_vm12 = vmmov %vm17712_vm3 }
 0x784   :  { %v7207_v17 = vand.u32 4294901760, %v15758_v60  ;;  %vm17714_vm6 = vcmp.gt.f32.partialorder %v17713_v16, 0.0  ;;  %v17715_v5 = vand.u32 2147483648, %v15633_v2  ;;  %v6701_v28 = vmul.f32 %v6684_v44, %v6613_v53 }
 0x785   :  { %v6711_v21 = vadd.f32 %v6695_v35, %v15265_v4  ;;  %v15793_v14 = vsel %vm17714_vm6, %v15649_v59, %v15626_v20  ;;  %v7214_v4 = vand.u32 4294901760, %v15776_v40  ;;  %v6774_v39 = vmul.f32 %v17716_v36, %v6710_v62  ;;  %vm17738_vm11 = vmmov %vm17714_vm6 }
 0x786   :  { %v6430_v12 = vsel %vm6428_vm7, %v17715_v5, %v6427_v42  ;;  %v7208_v47 = vsub.f32 %v15758_v60, %v7207_v17  ;;  %v6698_v59 = vmul.f32 %v6680_v38, %v6610_v1  ;;  %v6717_v23 = vadd.f32 %v6701_v28, %v6597_v55  ;;  %v17721_v1 = vld [vmem:[#allocation113_spill] sm:$0xff]  ;;  %v17722_v42 = vld [vmem:[#allocation138_spill] sm:$0xff] }
 0x787   :  { %v6612_v46 = vsub.f32 %v6430_v12, %v15573_v43  ;;  %v6775_v20 = vmul.f32 %v17717_v10, %v6711_v21  ;;  %v6699_v52 = vmul.f32 %v6680_v38, %v6611_v45  ;;  %v7215_v2 = vsub.f32 %v15776_v40, %v7214_v4  ;;  %v17723_v28 = vld [vmem:[#allocation121_spill] sm:$0xff] }
 0x788   :  { %v7209_v25 = vand.u32 4294901760, %v7208_v47  ;;  %v6790_v37 = vmul.f32 %v6774_v39, %v17718_v30  ;;  %v6714_v35 = vadd.f32 %v6698_v59, %v15274_v51  ;;  %v6781_v53 = vmul.f32 %v12688_v58, %v6717_v23  ;;  %v17725_v47 = vld [vmem:[#allocation16_spill] sm:$0xff] }
 0x789   :  { %v6700_v8 = vmul.f32 %v6684_v44, %v6612_v46  ;;  %v6791_v6 = vmul.f32 %v6775_v20, %v17719_v50  ;;  %v6715_v24 = vadd.f32 %v6699_v52, %v15569_v61  ;;  %v6823_v26 = vmul.f32 %v6775_v20, %v17720_v32  ;;  %v17727_v58 = vld [vmem:[#allocation128_spill] sm:$0xff]  ;;  %v17731_v20 = vld [vmem:[#allocation109_spill] sm:$0xff] }
 0x78a   :  { %v6822_v55 = vmul.f32 %v6774_v39, %v17721_v1  ;;  %v6778_v5 = vmul.f32 %v17722_v42, %v6714_v35  ;;  %v7216_v12 = vand.u32 4294901760, %v7215_v2  ;;  %vm17724_vm9 = vcmp.gt.f32.partialorder %v17723_v28, 0.0  ;;  %v17732_v59 = vld [vmem:[#allocation116_spill] sm:$0xff]  ;;  %v17734_v50 = vld [vmem:[#allocation125_spill] sm:$0xff] }
 0x78b   :  { %v6716_v45 = vadd.f32 %v6700_v8, %v15573_v43  ;;  %v15819_v44 = vsel %vm17724_vm9, %v6791_v6, %v6711_v21  ;;  %v6797_v38 = vmul.f32 %v6781_v53, %v15532_v0  ;;  %v6779_v51 = vmul.f32 %v17725_v47, %v6715_v24  ;;  %vm17726_vm13 = vmmov %vm17724_vm9  ;;  %v17729_v43 = vld [vmem:[#allocation96_spill] sm:$0xff]  ;;  %v17730_v21 = vld [vmem:[#allocation103_spill] sm:$0xff] }
 0x78c   :  { %v6839_v61 = vsel %vm17726_vm13, %v6823_v26, 0.0  ;;  %vm17728_vm15 = vcmp.gt.f32.partialorder %v17727_v58, 0.0  ;;  %v6794_v39 = vmul.f32 %v6778_v5, %v17729_v43  ;;  %v6826_v10 = vmul.f32 %v6778_v5, %v17730_v21  ;;  %v17733_v2 = vld [vmem:[#allocation132_spill] sm:$0xff]  ;;  %v17736_v32 = vld [vmem:[#allocation129_spill] sm:$0xff] }
 0x78d   :  { %v6838_v46 = vsel %vm17728_vm15, %v6822_v55, 0.0  ;;  %v6780_v36 = vmul.f32 %v15609_v31, %v6716_v45  ;;  %6880 = vrot.lane.b32.xlu1 %v6839_v61, %s12794_s6  ;;  %v6795_v0 = vmul.f32 %v6779_v51, %v17731_v20  ;;  %v6827_v52 = vmul.f32 %v6779_v51, %v17732_v59  ;;  %vm17737_vm0 = vmmov %vm17728_vm15 }
 0x78e   :  { %6878 = vrot.lane.b32.xlu0 %v6838_v46, %s12794_s6  ;;  %v6829_v8 = vmul.f32 %v6781_v53, %v17733_v2  ;;  %v15835_v30 = vpack.c.bf16 %v7216_v12, %v7209_v25  ;;  %v6841_v31 = vsel %vm17735_vm12, %v15666_v33, 0.0  ;;  %v15844_v1 = vsel %vm17737_vm0, %v6790_v37, %v6710_v62  ;;  %v17740_v33 = vld [vmem:[#allocation124_spill] sm:$0xff] }
 0x78f   :  { %v6796_v6 = vmul.f32 %v6780_v36, %v17734_v50  ;;  %v6828_v26 = vmul.f32 %v6780_v36, %v17736_v32  ;;  %v6840_v55 = vsel %vm17738_vm11, %v15671_v13, 0.0  ;;  %vm17739_vm8 = vcmp.gt.f32.partialorder %v15190_v56, 0.0 }
 0x790   :  { %v6845_v25 = vsel %vm6733_vm14, %v6829_v8, 0.0  ;;  %11856 = vmatprep.subr.bf16.mxu0 %v15835_v30  ;;  %v15854_v53 = vsel %vm17739_vm8, %v6795_v0, %v6715_v24  ;;  %vm17741_vm1 = vcmp.gt.f32.partialorder %v17740_v33, 0.0  ;;  %v15864_v13 = vsel %vm6733_vm14, %v6797_v38, %v6717_v23  ;;  %vm17743_vm10 = vmmov %vm17739_vm8 }
 0x791   :  { %v15858_v48 = vsel %vm17741_vm1, %v6794_v39, %v6714_v35  ;;  %6884 = vrot.lane.b32.xlu1 %v6841_v31, %s12794_s6  ;;  %vm17742_vm5 = vcmp.gt.f32.partialorder %v15242_v57, 0.0  ;;  %v15873_v16 = vsub.f32 %v15683_v19, %v6982_v9  ;;  %v15878_v37 = vsub.f32 %v15688_v15, %v6985_v41  ;;  %vm17744_vm14 = vmmov %vm17741_vm1 }
 0x792   :  { %6882 = vrot.lane.b32.xlu0 %v6840_v55, %s12794_s6  ;;  %v15868_v62 = vsel %vm17742_vm5, %v6796_v6, %v6716_v45  ;;  %v6843_v27 = vsel %vm17743_vm10, %v6827_v52, 0.0  ;;  %v6842_v23 = vsel %vm17744_vm14, %v6826_v10, 0.0  ;;  %vm17745_vm4 = vmmov %vm17742_vm5  ;;  %v15900_v42 = vpack.c.bf16 %v15776_v40, %v15758_v60 }
 0x793   :  { %v7221_v35 = vand.u32 4294901760, %v15873_v16  ;;  %v7228_v24 = vand.u32 4294901760, %v15878_v37  ;;  %v6844_v56 = vsel %vm17745_vm4, %v6828_v26, 0.0  ;;  %v15904_v5 = vpack.c.bf16 %v15878_v37, %v15873_v16 }
 0x794   :  { %vm6926_vm7 = vcmask 261120   ;;  %vm17746_vm2 = vcmask 130048  }
 0x795   :  { %6888 = vrot.lane.b32.xlu1 %v6843_v27, %s12794_s6  ;;  %v7222_v19 = vsub.f32 %v15873_v16, %v7221_v35  ;;  %v7229_v15 = vsub.f32 %v15878_v37, %v7228_v24  ;;  %vm17747_vm3 = vmmov %vm17746_vm2  ;;  %v11883_v60 = vpack.c.bf16 %v7228_v24, %v7221_v35 }
 0x796   :  { %6886 = vrot.lane.b32.xlu0 %v6842_v23, %s12794_s6  ;;  %vm17748_vm6 = vmmov %vm17746_vm2 }
 0x797   :  { %v7223_v9 = vand.u32 4294901760, %v7222_v19  ;;  %v7230_v41 = vand.u32 4294901760, %v7229_v15  ;;  %vm17749_vm9 = vmmov %vm17746_vm2 }
 0x798   :  { %vm17750_vm13 = vmmov %vm17746_vm2 }
 0x799   :  { %6892 = vrot.lane.b32.xlu1 %v6845_v25, %s12794_s6  ;;  %v11859_v45 = vpack.c.bf16 %v7230_v41, %v7223_v9  ;;  %vm17751_vm15 = vmmov %vm17746_vm2 }
 0x79a   :  { %6890 = vrot.lane.b32.xlu0 %v6844_v56, %s12794_s6  ;;  %vm17752_vm12 = vmmov %vm17746_vm2 }
 0x79b   :  { %vm17753_vm0 = vmmov %vm17746_vm2 }
 0x79c   :  { %vm17754_vm11 = vmmov %vm17753_vm0 }
 0x79d   :  { %vm17755_vm8 = vmmov %vm17753_vm0 }
 0x79e   :  { %vm17756_vm1 = vmmov %vm17753_vm0 }
 0x79f   :  { %vm17757_vm5 = vmmov %vm17753_vm0 }
 0x7a0   :  { %vm17758_vm10 = vmmov %vm17753_vm0 }
 0x7a1   :  { %vm17759_vm14 = vmmov %vm17753_vm0 }
 0x7a2   :  { %vm17760_vm4 = vmmov %vm17753_vm0 }
 0x7c5   :  { %v6865_v12 = vpop.permute.xlu1 %6864 }
 0x7c6   :  { %v6911_v57 = vsel %vm17746_vm2, %v15696_v54, %v6865_v12  ;;  %vm17761_vm2 = vmmov %vm17753_vm0 }
 0x7c7   :  { %v6931_v28 = vsel %vm6926_vm7, %v6911_v57, 0 }
 0x7c8   :  { %v15909_v38 = vand.u32 4294901760, %v6931_v28 }
 0x7c9   :  { %v6869_v47 = vpop.permute.xlu1 %6868  ;;  %v6863_v51 = vpop.permute.xlu0 %6862 }
 0x7ca   :  { %v15912_v61 = vsub.f32 %v6931_v28, %v15909_v38  ;;  %v6913_v58 = vsel %vm17747_vm3, %v15703_v29, %v6869_v47  ;;  %v6910_v46 = vsel %vm17748_vm6, %v15715_v18, %v6863_v51  ;;  %vm17768_vm3 = vmmov %vm17753_vm0 }
 0x7cb   :  { %v6937_v36 = vsel %vm6926_vm7, %v6913_v58, 0  ;;  %v6928_v43 = vsel %vm6926_vm7, %v6910_v46, 0  ;;  %vm17769_vm6 = vmmov %vm17753_vm0 }
 0x7cc   :  { %v15920_v54 = vand.u32 4294901760, %v6937_v36  ;;  %v15922_v39 = vand.u32 4294901760, %v6928_v43  ;;  %v7056_v21 = vand.u32 4294901760, %v15912_v61 }
 0x7cd   :  { %v6867_v20 = vpop.permute.xlu0 %6866 }
 0x7ce   :  { %v6873_v10 = vpop.permute.xlu1 %6872  ;;  %v15926_v0 = vsub.f32 %v6937_v36, %v15920_v54  ;;  %v15929_v29 = vsub.f32 %v6928_v43, %v15922_v39  ;;  %v6912_v52 = vsel %vm17750_vm13, %v15727_v7, %v6867_v20  ;;  %v7057_v50 = vsub.f32 %v15912_v61, %v7056_v21  ;;  %vm17771_vm13 = vmmov %vm17753_vm0 }
 0x7cf   :  { %v6915_v18 = vsel %vm17749_vm9, %v15722_v22, %v6873_v10  ;;  %v6934_v2 = vsel %vm6926_vm7, %v6912_v52, 0  ;;  %vm17770_vm9 = vmmov %vm17753_vm0 }
 0x7d0   :  { %v6943_v59 = vsel %vm6926_vm7, %v6915_v18, 0  ;;  %v7046_v8 = vand.u32 4294901760, %v15929_v29  ;;  %v15943_v31 = vand.u32 4294901760, %v6934_v2  ;;  %v7076_v32 = vand.u32 4294901760, %v15926_v0 }
 0x7d1   :  { %v15941_v6 = vand.u32 4294901760, %v6943_v59  ;;  %v7058_v55 = vand.u32 4294901760, %v7057_v50 }
 0x7d2   :  { %v7047_v22 = vsub.f32 %v15929_v29, %v7046_v8  ;;  %v15950_v7 = vsub.f32 %v6934_v2, %v15943_v31  ;;  %v7077_v19 = vsub.f32 %v15926_v0, %v7076_v32 }
 0x7d3   :  { %v15953_v25 = vsub.f32 %v6943_v59, %v15941_v6 }
 0x7d4   :  { %v7048_v26 = vand.u32 4294901760, %v7047_v22  ;;  %v7066_v27 = vand.u32 4294901760, %v15950_v7  ;;  %v7078_v57 = vand.u32 4294901760, %v7077_v19 }
 0x7d5   :  { %v7096_v12 = vand.u32 4294901760, %v15953_v25 }
 0x7d6   :  { %v6871_v33 = vpop.permute.xlu0 %6870  ;;  %11423 = vmatprep.mubr.f32.mxu0 %v7048_v26  ;;  %v7067_v9 = vsub.f32 %v15950_v7, %v7066_v27 }
 0x7d7   :  { %v6914_v23 = vsel %vm17751_vm15, %v15732_v49, %v6871_v33  ;;  %11424 = vmatmul.mubr.f32.vlgmr.msra.gmra.mrb[32].mxu0 %v7058_v55  ;;  %v7097_v47 = vsub.f32 %v15953_v25, %v7096_v12  ;;  %vm17772_vm15 = vmmov %vm17753_vm0 }
 0x7d8   :  { %v6940_v15 = vsel %vm6926_vm7, %v6914_v23, 0  ;;  %11858 = vmatpush3.bf16.msra.mxu0 %v15835_v30  ;;  %v7068_v41 = vand.u32 4294901760, %v7067_v9 }
 0x7d9   :  { %v15965_v56 = vand.u32 4294901760, %v6940_v15  ;;  %11860 = vmatprep.subr.bf16.mxu0 %v11859_v45  ;;  %v7098_v58 = vand.u32 4294901760, %v7097_v47 }
 0x7da   :  { %11426 = vmatprep.mubr.f32.mxu0 %v7068_v41 }
 0x7db   :  { %v15970_v49 = vsub.f32 %v6940_v15, %v15965_v56  ;;  %11427 = vmatmul.mubr.f32.gmra.mrb[34].mxu0 %v7078_v57 }
 0x7dc   :  { %11862 = vmatpush3.bf16.msra.mxu0 %v11859_v45 }
 0x7dd   :  { %v7086_v28 = vand.u32 4294901760, %v15970_v49  ;;  %11864 = vmatprep.subr.bf16.mxu0 %v15900_v42 }
 0x7df   :  { %v7087_v30 = vsub.f32 %v15970_v49, %v7086_v28 }
 0x7e1   :  { %v7088_v51 = vand.u32 4294901760, %v7087_v30 }
 0x7e3   :  { %v6877_v46 = vpop.permute.xlu1 %6876  ;;  %11429 = vmatprep.mubr.f32.mxu0 %v7088_v51 }
 0x7e4   :  { %v6917_v36 = vsel %vm17752_vm12, %v15737_v34, %v6877_v46  ;;  %v6875_v43 = vpop.permute.xlu0 %6874  ;;  %11430 = vmatmul.mubr.f32.gmra.mrb[36].mxu0 %v7098_v58  ;;  %vm17773_vm12 = vmmov %vm17753_vm0 }
 0x7e5   :  { %v6949_v10 = vsel %vm6926_vm7, %v6917_v36, 0  ;;  %v6916_v45 = vsel %vm17753_vm0, %v15751_v11, %v6875_v43 }
 0x7e6   :  { %v15985_v20 = vand.u32 4294901760, %v6949_v10  ;;  %v6946_v18 = vsel %vm6926_vm7, %v6916_v45, 0 }
 0x7e7   :  { %v15988_v59 = vand.u32 4294901760, %v6946_v18 }
 0x7e8   :  { %v15991_v52 = vsub.f32 %v6949_v10, %v15985_v20 }
 0x7e9   :  { %v15994_v2 = vsub.f32 %v6946_v18, %v15988_v59 }
 0x7ea   :  { %v7116_v34 = vand.u32 4294901760, %v15991_v52 }
 0x7eb   :  { %v7106_v50 = vand.u32 4294901760, %v15994_v2 }
 0x7ec   :  { %v7117_v11 = vsub.f32 %v15991_v52, %v7116_v34 }
 0x7ed   :  { %v7107_v22 = vsub.f32 %v15994_v2, %v7106_v50 }
 0x7ee   :  { %v7118_v26 = vand.u32 4294901760, %v7117_v11 }
 0x7ef   :  { %v7108_v55 = vand.u32 4294901760, %v7107_v22 }
 0x7f1   :  { %11432 = vmatprep.mubr.f32.mxu0 %v7108_v55 }
 0x7f2   :  { %11433 = vmatmul.mubr.f32.gmra.mrb[38].mxu0 %v7118_v26 }
 0x7ff   :  { %v6881_v33 = vpop.permute.xlu1 %6880 }
 0x800   :  { %v6879_v23 = vpop.permute.xlu0 %6878  ;;  %v6919_v19 = vsel %vm17754_vm11, %v15819_v44, %v6881_v33  ;;  %vm17774_vm11 = vmmov %vm17753_vm0 }
 0x801   :  { %v6918_v15 = vsel %vm17755_vm8, %v15844_v1, %v6879_v23  ;;  %v6955_v9 = vsel %vm6926_vm7, %v6919_v19, 0  ;;  %vm17775_vm8 = vmmov %vm17753_vm0 }
 0x802   :  { %v6952_v41 = vsel %vm6926_vm7, %v6918_v15, 0  ;;  %v16010_v57 = vand.u32 4294901760, %v6955_v9 }
 0x803   :  { %v16012_v47 = vand.u32 4294901760, %v6952_v41  ;;  %v6885_v30 = vpop.permute.xlu1 %6884 }
 0x804   :  { %v6883_v51 = vpop.permute.xlu0 %6882  ;;  %v16015_v58 = vsub.f32 %v6955_v9, %v16010_v57  ;;  %v6921_v44 = vsel %vm17756_vm1, %v15781_v63, %v6885_v30  ;;  %vm17776_vm1 = vmmov %vm17753_vm0 }
 0x805   :  { %v16018_v46 = vsub.f32 %v6952_v41, %v16012_v47  ;;  %v6920_v1 = vsel %vm17757_vm5, %v15793_v14, %v6883_v51  ;;  %v6961_v36 = vsel %vm6926_vm7, %v6921_v44, 0  ;;  %vm17777_vm5 = vmmov %vm17753_vm0 }
 0x806   :  { %v6958_v43 = vsel %vm6926_vm7, %v6920_v1, 0  ;;  %v16026_v10 = vand.u32 4294901760, %v6961_v36  ;;  %v17107_v11 = vand.u32 4294901760, %v16015_v58 }
 0x807   :  { %v16028_v45 = vand.u32 4294901760, %v6958_v43  ;;  %v7126_v18 = vand.u32 4294901760, %v16018_v46  ;;  %v6889_v22 = vpop.permute.xlu1 %6888 }
 0x808   :  { %v6887_v26 = vpop.permute.xlu0 %6886  ;;  %v16033_v55 = vsub.f32 %v6961_v36, %v16026_v10  ;;  %v6923_v14 = vsel %vm17758_vm10, %v15854_v53, %v6889_v22  ;;  %v7137_v9 = vsub.f32 %v16015_v58, %v17107_v11  ;;  %vm17778_vm10 = vmmov %vm17753_vm0 }
 0x809   :  { %v16036_v63 = vsub.f32 %v6958_v43, %v16028_v45  ;;  %v6922_v33 = vsel %vm17759_vm14, %v15858_v48, %v6887_v26  ;;  %v6967_v23 = vsel %vm6926_vm7, %v6923_v14, 0  ;;  %v7127_v15 = vsub.f32 %v16018_v46, %v7126_v18  ;;  %vm17779_vm14 = vmmov %vm17753_vm0 }
 0x80a   :  { %v6964_v19 = vsel %vm6926_vm7, %v6922_v33, 0  ;;  %v16050_v41 = vand.u32 4294901760, %v6967_v23  ;;  %v17108_v48 = vand.u32 4294901760, %v16033_v55  ;;  %v7138_v36 = vand.u32 4294901760, %v7137_v9 }
 0x80b   :  { %v16052_v30 = vand.u32 4294901760, %v6964_v19  ;;  %v17109_v53 = vand.u32 4294901760, %v16036_v63  ;;  %v6893_v51 = vpop.permute.xlu1 %6892  ;;  %v7128_v1 = vand.u32 4294901760, %v7127_v15  ;;  %v17764_v40 = vand.u32 4294901760, %v16036_v63 }
 0x80c   :  { %v6891_v44 = vpop.permute.xlu0 %6890  ;;  %v16057_v43 = vsub.f32 %v6967_v23, %v16050_v41  ;;  %v6925_v26 = vsel %vm17760_vm4, %v15864_v13, %v6893_v51  ;;  %v7157_v23 = vsub.f32 %v16033_v55, %v17108_v48  ;;  %vm17780_vm4 = vmmov %vm17753_vm0 }
 0x80d   :  { %v16060_v22 = vsub.f32 %v6964_v19, %v16052_v30  ;;  %v6924_v14 = vsel %vm17761_vm2, %v15868_v62, %v6891_v44  ;;  %v6973_v33 = vsel %vm6926_vm7, %v6925_v26, 0  ;;  %11435 = vmatprep.mubr.f32.mxu0 %v7128_v1  ;;  %v7147_v15 = vsub.f32 %v16036_v63, %v17109_v53  ;;  %vm17781_vm2 = vmmov %vm17753_vm0 }
 0x80e   :  { %v6970_v11 = vsel %vm6926_vm7, %v6924_v14, 0  ;;  %v16074_v19 = vand.u32 4294901760, %v6973_v33  ;;  %11436 = vmatmul.mubr.f32.gmra.mrb[40].mxu0 %v7138_v36  ;;  %v17111_v62 = vand.u32 4294901760, %v16057_v43  ;;  %v7158_v44 = vand.u32 4294901760, %v7157_v23 }
 0x80f   :  { %v16076_v9 = vand.u32 4294901760, %v6970_v11  ;;  %v17110_v13 = vand.u32 4294901760, %v16060_v22  ;;  %v7148_v51 = vand.u32 4294901760, %v7147_v15  ;;  %v17766_v16 = vand.u32 4294901760, %v16060_v22 }
 0x810   :  { %v16081_v1 = vsub.f32 %v6973_v33, %v16074_v19  ;;  %v7177_v36 = vsub.f32 %v16057_v43, %v17111_v62  ;;  %v17767_v37 = vand.u32 4294901760, %v16057_v43 }
 0x811   :  { %v16084_v26 = vsub.f32 %v6970_v11, %v16076_v9  ;;  %v7167_v14 = vsub.f32 %v16060_v22, %v17110_v13  ;;  %11438 = vmatprep.mubr.f32.mxu0 %v7148_v51 }
 0x812   :  { %11439 = vmatmul.mubr.f32.gmra.mrb[42].mxu0 %v7158_v44  ;;  %v7178_v53 = vand.u32 4294901760, %v7177_v36  ;;  %v7196_v33 = vand.u32 4294901760, %v16081_v1 }
 0x813   :  { %v7168_v48 = vand.u32 4294901760, %v7167_v14  ;;  %v7186_v15 = vand.u32 4294901760, %v16084_v26 }
 0x814   :  { %v7197_v23 = vsub.f32 %v16081_v1, %v7196_v33 }
 0x815   :  { %11441 = vmatprep.mubr.f32.mxu0 %v7168_v48  ;;  %v7187_v11 = vsub.f32 %v16084_v26, %v7186_v15 }
 0x816   :  { %11442 = vmatmul.mubr.f32.gmra.mrb[44].mxu0 %v7178_v53  ;;  %v7198_v62 = vand.u32 4294901760, %v7197_v23  ;;  %v17762_v53 = vld [vmem:[#allocation120_spill] sm:$0xff] }
 0x817   :  { %v7188_v13 = vand.u32 4294901760, %v7187_v11 }
 0x819   :  { %11444 = vmatprep.mubr.f32.mxu0 %v7188_v13 }
 0x81a   :  { %11445 = vmatmul.mubr.f32.gmra.mrb[46].mxu0 %v7198_v62 }
 0x81b   :  { %11455 = vmatprep.mubr.f32.mxu0 %v15922_v39 }
 0x81e   :  { %11456 = vmatmul.mubr.f32.vlgmr.msra.gmra.mrb[32].mxu0 %v15909_v38 }
 0x81f   :  { %11458 = vmatprep.mubr.f32.mxu0 %v15943_v31  ;;  %11866 = vmatpush3.bf16.msra.mxu0 %v15900_v42  ;;  %v11879_v42 = vpack.c.bf16 %v7214_v4, %v7207_v17  ;;  %v17763_v17 = vand.u32 4294901760, %v16015_v58  ;;  %v17765_v4 = vand.u32 4294901760, %v16033_v55 }
 0x820   :  { %11868 = vmatprep.subr.bf16.mxu0 %v15904_v5 }
 0x822   :  { %11459 = vmatmul.mubr.f32.gmra.mrb[34].mxu0 %v15920_v54 }
 0x823   :  { %11461 = vmatprep.mubr.f32.mxu0 %v15965_v56  ;;  %11870 = vmatpush3.bf16.msra.mxu0 %v15904_v5 }
 0x824   :  { %11872 = vmatprep.subr.bf16.mxu0 %v17762_v53 }
 0x826   :  { %11462 = vmatmul.mubr.f32.gmra.mrb[36].mxu0 %v15941_v6 }
 0x827   :  { %11464 = vmatprep.mubr.f32.mxu0 %v15988_v59 }
 0x82a   :  { %11465 = vmatmul.mubr.f32.gmra.mrb[38].mxu0 %v15985_v20 }
 0x82b   :  { %11467 = vmatprep.mubr.f32.mxu0 %v16012_v47 }
 0x82e   :  { %11468 = vmatmul.mubr.f32.gmra.mrb[40].mxu0 %v16010_v57 }
 0x82f   :  { %11470 = vmatprep.mubr.f32.mxu0 %v16028_v45 }
 0x832   :  { %11471 = vmatmul.mubr.f32.gmra.mrb[42].mxu0 %v16026_v10 }
 0x833   :  { %11473 = vmatprep.mubr.f32.mxu0 %v16052_v30 }
 0x836   :  { %11474 = vmatmul.mubr.f32.gmra.mrb[44].mxu0 %v16050_v41 }
 0x837   :  { %11476 = vmatprep.mubr.f32.mxu0 %v16076_v9 }
 0x83a   :  { %11477 = vmatmul.mubr.f32.gmra.mrb[46].mxu0 %v16074_v19 }
 0x83b   :  { %11487 = vmatprep.mubr.f32.mxu0 %v15929_v29 }
 0x83e   :  { %11488 = vmatmul.mubr.f32.vlgmr.msra.gmra.mrb[32].mxu0 %v15912_v61 }
 0x83f   :  { %11490 = vmatprep.mubr.f32.mxu0 %v15950_v7  ;;  %11874 = vmatpush3.bf16.msra.mxu0 %v17762_v53 }
 0x840   :  { %11876 = vmatprep.subr.bf16.mxu0 %v15746_v3 }
 0x842   :  { %11491 = vmatmul.mubr.f32.gmra.mrb[34].mxu0 %v15926_v0 }
 0x843   :  { %11493 = vmatprep.mubr.f32.mxu0 %v15970_v49  ;;  %11878 = vmatpush3.bf16.msra.mxu0 %v15746_v3 }
 0x844   :  { %11880 = vmatprep.subr.bf16.mxu0 %v11879_v42 }
 0x846   :  { %11494 = vmatmul.mubr.f32.gmra.mrb[36].mxu0 %v15953_v25 }
 0x847   :  { %11496 = vmatprep.mubr.f32.mxu0 %v15994_v2 }
 0x84a   :  { %11497 = vmatmul.mubr.f32.gmra.mrb[38].mxu0 %v15991_v52 }
 0x84b   :  { %11499 = vmatprep.mubr.f32.mxu0 %v16018_v46 }
 0x84e   :  { %11500 = vmatmul.mubr.f32.gmra.mrb[40].mxu0 %v16015_v58 }
 0x84f   :  { %11502 = vmatprep.mubr.f32.mxu0 %v16036_v63 }
 0x852   :  { %11503 = vmatmul.mubr.f32.gmra.mrb[42].mxu0 %v16033_v55 }
 0x853   :  { %11505 = vmatprep.mubr.f32.mxu0 %v16060_v22 }
 0x856   :  { %11506 = vmatmul.mubr.f32.gmra.mrb[44].mxu0 %v16057_v43 }
 0x857   :  { %11508 = vmatprep.mubr.f32.mxu0 %v16084_v26 }
 0x85a   :  { %11509 = vmatmul.mubr.f32.gmra.mrb[46].mxu0 %v16081_v1 }
 0x85b   :  { %11519 = vmatprep.mubr.f32.mxu0 %v7046_v8 }
 0x85e   :  { %11520 = vmatmul.mubr.f32.vlgmr.msra.gmra.mrb[32].mxu0 %v7056_v21 }
 0x85f   :  { %11522 = vmatprep.mubr.f32.mxu0 %v7066_v27  ;;  %11882 = vmatpush3.bf16.msra.mxu0 %v11879_v42 }
 0x860   :  { %11884 = vmatprep.subr.bf16.mxu0 %v11883_v60 }
 0x862   :  { %11523 = vmatmul.mubr.f32.gmra.mrb[34].mxu0 %v7076_v32 }
 0x863   :  { %11525 = vmatprep.mubr.f32.mxu0 %v7086_v28  ;;  %11886 = vmatpush3.bf16.msra.mxu0 %v11883_v60  ;;  %v121_v28 = vld [vmem:[%s16661_s7] sm:$0xff] }
 0x864   :  { %11888 = vmatprep.subr.bf16.mxu0 %v17762_v53  ;;  %v8490_v52 = vand.u32 4294901760, %v121_v28 }
 0x866   :  { %11526 = vmatmul.mubr.f32.gmra.mrb[36].mxu0 %v7096_v12  ;;  %v16267_v44 = vsub.f32 %v121_v28, %v8490_v52 }
 0x867   :  { %11528 = vmatprep.mubr.f32.mxu0 %v7106_v50 }
 0x868   :  { %v8721_v26 = vand.u32 4294901760, %v16267_v44 }
 0x86a   :  { %11529 = vmatmul.mubr.f32.gmra.mrb[38].mxu0 %v7116_v34  ;;  %v124_v34 = vld [vmem:[%s16661_s7 + $0x18] sm:$0xff] }
 0x86b   :  { %11531 = vmatprep.mubr.f32.mxu0 %v7126_v18  ;;  %v8499_v58 = vand.u32 4294901760, %v124_v34 }
 0x86e   :  { %11532 = vmatmul.mubr.f32.gmra.mrb[40].mxu0 %v17763_v17 }
 0x86f   :  { %11534 = vmatprep.mubr.f32.mxu0 %v17764_v40 }
 0x872   :  { %11535 = vmatmul.mubr.f32.gmra.mrb[42].mxu0 %v17765_v4 }
 0x873   :  { %11537 = vmatprep.mubr.f32.mxu0 %v17766_v16 }
 0x876   :  { %11538 = vmatmul.mubr.f32.gmra.mrb[44].mxu0 %v17767_v37 }
 0x877   :  { %11540 = vmatprep.mubr.f32.mxu0 %v7186_v15 }
 0x87a   :  { %11541 = vmatmul.mubr.f32.gmra.mrb[46].mxu0 %v7196_v33  ;;  %v8722_v33 = vsub.f32 %v16267_v44, %v8721_v26 }
 0x87b   :  { %11551 = vmatprep.mubr.f32.mxu0 %v15922_v39 }
 0x87c   :  { %v8723_v23 = vand.u32 4294901760, %v8722_v33 }
 0x87e   :  { %11552 = vmatmul.mubr.f32.vlgmr.msra.gmra.mrb[32].mxu0 %v15909_v38 }
 0x87f   :  { %11554 = vmatprep.mubr.f32.mxu0 %v15943_v31  ;;  %11890 = vmatpush3.bf16.msra.mxu0 %v17762_v53 }
 0x880   :  { %11892 = vmatprep.subr.bf16.mxu0 %v15746_v3 }
 0x882   :  { %11555 = vmatmul.mubr.f32.gmra.mrb[34].mxu0 %v15920_v54 }
 0x883   :  { %11557 = vmatprep.mubr.f32.mxu0 %v15965_v56  ;;  %11894 = vmatpush3.bf16.msra.mxu0 %v15746_v3 }
 0x886   :  { %11558 = vmatmul.mubr.f32.gmra.mrb[36].mxu0 %v15941_v6 }
 0x887   :  { %11560 = vmatprep.mubr.f32.mxu0 %v15988_v59 }
 0x88a   :  { %11561 = vmatmul.mubr.f32.gmra.mrb[38].mxu0 %v15985_v20 }
 0x88b   :  { %11563 = vmatprep.mubr.f32.mxu0 %v16012_v47 }
 0x88e   :  { %11564 = vmatmul.mubr.f32.gmra.mrb[40].mxu0 %v16010_v57 }
 0x88f   :  { %11566 = vmatprep.mubr.f32.mxu0 %v16028_v45 }
 0x892   :  { %11567 = vmatmul.mubr.f32.gmra.mrb[42].mxu0 %v16026_v10 }
 0x893   :  { %11569 = vmatprep.mubr.f32.mxu0 %v16052_v30 }
 0x896   :  { %11570 = vmatmul.mubr.f32.gmra.mrb[44].mxu0 %v16050_v41 }
 0x897   :  { %11572 = vmatprep.mubr.f32.mxu0 %v16076_v9 }
 0x89a   :  { %11573 = vmatmul.mubr.f32.gmra.mrb[46].mxu0 %v16074_v19 }
 0x89b   :  { %11583 = vmatprep.mubr.f32.mxu0 %v15922_v39 }
 0x89e   :  { %11584 = vmatmul.mubr.f32.vlgmr.msra.gmra.mrb[32].mxu0 %v15909_v38 }
 0x89f   :  { %11586 = vmatprep.mubr.f32.mxu0 %v15943_v31 }
 0x8a2   :  { %11587 = vmatmul.mubr.f32.gmra.mrb[34].mxu0 %v15920_v54 }
 0x8a3   :  { %11589 = vmatprep.mubr.f32.mxu0 %v15965_v56 }
 0x8a6   :  { %11590 = vmatmul.mubr.f32.gmra.mrb[36].mxu0 %v15941_v6 }
 0x8a7   :  { %11592 = vmatprep.mubr.f32.mxu0 %v15988_v59  ;;  %v123_v59 = vld [vmem:[%s16661_s7 + $0x10] sm:$0xff] }
 0x8a8   :  { %v8496_v50 = vand.u32 4294901760, %v123_v59 }
 0x8aa   :  { %11593 = vmatmul.mubr.f32.gmra.mrb[38].mxu0 %v15985_v20  ;;  %v122_v20 = vld [vmem:[%s16661_s7 + $0x8] sm:$0xff] }
 0x8ab   :  { %11595 = vmatprep.mubr.f32.mxu0 %v16012_v47  ;;  %v8493_v2 = vand.u32 4294901760, %v122_v20 }
 0x8ad   :  { %v16238_v46 = vpack.c.bf16 %v8493_v2, %v8490_v52  ;;  %v16269_v1 = vsub.f32 %v122_v20, %v8493_v2 }
 0x8ae   :  { %11596 = vmatmul.mubr.f32.gmra.mrb[40].mxu0 %v16010_v57 }
 0x8af   :  { %11598 = vmatprep.mubr.f32.mxu0 %v16028_v45  ;;  %11896 = vmatprep.subr.bf16.mxu0 %v16238_v46  ;;  %v8728_v14 = vand.u32 4294901760, %v16269_v1 }
 0x8b0   :  { %11898 = vmatpush3.bf16.msra.mxu0 %v16238_v46 }
 0x8b1   :  { %v8729_v11 = vsub.f32 %v16269_v1, %v8728_v14 }
 0x8b2   :  { %11599 = vmatmul.mubr.f32.gmra.mrb[42].mxu0 %v16026_v10  ;;  %v16240_v10 = vpack.c.bf16 %v8499_v58, %v8496_v50 }
 0x8b3   :  { %11601 = vmatprep.mubr.f32.mxu0 %v16052_v30  ;;  %v8730_v53 = vand.u32 4294901760, %v8729_v11 }
 0x8b4   :  { %11900 = vmatprep.subr.bf16.mxu0 %v16240_v10 }
 0x8b5   :  { %11902 = vmatpush3.bf16.msra.mxu0 %v16240_v10  ;;  %v11903_v17 = vpack.c.bf16 %v8730_v53, %v8723_v23 }
 0x8b6   :  { %11602 = vmatmul.mubr.f32.gmra.mrb[44].mxu0 %v16050_v41 }
 0x8b7   :  { %11604 = vmatprep.mubr.f32.mxu0 %v16076_v9  ;;  %11904 = vmatprep.subr.bf16.mxu0 %v11903_v17 }
 0x8ba   :  { %11605 = vmatmul.mubr.f32.gmra.mrb[46].mxu0 %v16074_v19 }
 0x971   :  { %v11585_v3 = vpop.f32.mrb[32].mxu0 }
 0x972   :  { %v8011_v35 = vpop.f32.mrb[33].mxu0 }
 0x973   :  { %8105 = vxpose.xlu0.b32.start [1/2] (short) (narrow) %v8011_v35, 32  ;;  %v16293_v35 = vsub.f32 %v124_v34, %v8499_v58 }
 0x975   :  { %v11588_v24 = vpop.f32.mrb[34].mxu0 }
 0x976   :  { %v8023_v5 = vpop.f32.mrb[35].mxu0 }
 0x977   :  { %8106 = vxpose.xlu0.b32.end [2/2] (short) (narrow) %v11585_v3, 32  ;;  %8137 = vxpose.xlu1.b32.start [1/2] (short) (narrow) %v8023_v5, 32  ;;  %v16291_v3 = vsub.f32 %v123_v59, %v8496_v50  ;;  %v8742_v5 = vand.u32 4294901760, %v16293_v35 }
 0x979   :  { %v11591_v38 = vpop.f32.mrb[36].mxu0 }
 0x97a   :  { %v8035_v61 = vpop.f32.mrb[37].mxu0 }
 0x97b   :  { %8138 = vxpose.xlu1.b32.end [2/2] (short) (narrow) %v11588_v24, 32  ;;  %v8735_v24 = vand.u32 4294901760, %v16291_v3 }
 0x97d   :  { %v11594_v54 = vpop.f32.mrb[38].mxu0 }
 0x97e   :  { %v8047_v39 = vpop.f32.mrb[39].mxu0 }
 0x980   :  { %8169 = vxpose.xlu0.b32.start [1/2] (short) (narrow) %v8035_v61, 32 }
 0x981   :  { %v11597_v21 = vpop.f32.mrb[40].mxu0 }
 0x982   :  { %v8059_v0 = vpop.f32.mrb[41].mxu0 }
 0x984   :  { %8170 = vxpose.xlu0.b32.end [2/2] (short) (narrow) %v11591_v38, 32  ;;  %8201 = vxpose.xlu1.b32.start [1/2] (short) (narrow) %v8047_v39, 32  ;;  %v8743_v39 = vsub.f32 %v16293_v35, %v8742_v5 }
 0x985   :  { %v11600_v29 = vpop.f32.mrb[42].mxu0 }
 0x986   :  { %v8071_v8 = vpop.f32.mrb[43].mxu0 }
 0x988   :  { %8202 = vxpose.xlu1.b32.end [2/2] (short) (narrow) %v11594_v54, 32  ;;  %v8736_v54 = vsub.f32 %v16291_v3, %v8735_v24 }
 0x989   :  { %v11603_v6 = vpop.f32.mrb[44].mxu0 }
 0x98a   :  { %v8083_v31 = vpop.f32.mrb[45].mxu0 }
 0x98d   :  { %8233 = vxpose.xlu0.b32.start [1/2] (short) (narrow) %v8059_v0, 32  ;;  %v11606_v32 = vpop.f32.mrb[46].mxu0  ;;  %v8744_v0 = vand.u32 4294901760, %v8743_v39 }
 0x98e   :  { %v8095_v7 = vpop.f32.mrb[47].mxu0 }
 0x991   :  { %8234 = vxpose.xlu0.b32.end [2/2] (short) (narrow) %v11597_v21, 32  ;;  %8265 = vxpose.xlu1.b32.start [1/2] (short) (narrow) %v8071_v8, 32  ;;  %v8737_v21 = vand.u32 4294901760, %v8736_v54 }
 0x993   :  { %v11907_v8 = vpack.c.bf16 %v8744_v0, %v8737_v21 }
 0x995   :  { %8266 = vxpose.xlu1.b32.end [2/2] (short) (narrow) %v11600_v29, 32 }
 0x99a   :  { %8297 = vxpose.xlu0.b32.start [1/2] (short) (narrow) %v8083_v31, 32  ;;  %v16313_v31 = vpack.c.bf16 %v16293_v35, %v16291_v3 }
 0x99e   :  { %8298 = vxpose.xlu0.b32.end [2/2] (short) (narrow) %v11603_v6, 32  ;;  %8329 = vxpose.xlu1.b32.start [1/2] (short) (narrow) %v8095_v7, 32  ;;  %v16309_v6 = vpack.c.bf16 %v16269_v1, %v16267_v44  ;;  %v11931_v44 = vpack.c.bf16 %v8742_v5, %v8735_v24 }
 0x9a2   :  { %8330 = vxpose.xlu1.b32.end [2/2] (short) (narrow) %v11606_v32, 32 }
 0x9f3   :  { %v16215_v25 = vpop.trf.xlu0 }
 0x9f7   :  { %v16217_v27 = vpop.trf.xlu0  ;;  %v16219_v56 = vpop.trf.xlu1 }
 0x9fb   :  { %v8123_v12 = vpop.trf.xlu0  ;;  %v16221_v49 = vpop.trf.xlu1 }
 0x9fc   :  { %8377 = vrot.lane.b32.xlu0 %v8123_v12, %s12794_s6 }
 0x9ff   :  { %v8124_v57 = vpop.trf.xlu0  ;;  %v8155_v47 = vpop.trf.xlu1 }
 0xa00   :  { %8381 = vrot.lane.b32.xlu0 %v8155_v47, %s12794_s6  ;;  %8379 = vrot.lane.b32.xlu1 %v8124_v57, %s12794_s6 }
 0xa03   :  { %v8156_v45 = vpop.trf.xlu1  ;;  %v16243_v18 = vpop.trf.xlu0 }
 0xa04   :  { %8383 = vrot.lane.b32.xlu1 %v8156_v45, %s12794_s6 }
 0xa07   :  { %v16248_v55 = vpop.trf.xlu0  ;;  %v16250_v63 = vpop.trf.xlu1 }
 0xa0b   :  { %v8187_v41 = vpop.trf.xlu0  ;;  %v16253_v30 = vpop.trf.xlu1 }
 0xa0c   :  { %8385 = vrot.lane.b32.xlu0 %v8187_v41, %s12794_s6 }
 0xa0f   :  { %v8188_v48 = vpop.trf.xlu0  ;;  %v8219_v43 = vpop.trf.xlu1 }
 0xa10   :  { %8389 = vrot.lane.b32.xlu0 %v8219_v43, %s12794_s6  ;;  %8387 = vrot.lane.b32.xlu1 %v8188_v48, %s12794_s6 }
 0xa13   :  { %v8220_v22 = vpop.trf.xlu1  ;;  %v16258_v19 = vpop.trf.xlu0 }
 0xa14   :  { %8391 = vrot.lane.b32.xlu1 %v8220_v22, %s12794_s6 }
 0xa17   :  { %v16261_v9 = vpop.trf.xlu0  ;;  %v16263_v13 = vpop.trf.xlu1 }
 0xa1b   :  { %v8251_v62 = vpop.trf.xlu0  ;;  %v16265_v51 = vpop.trf.xlu1 }
 0xa1c   :  { %8393 = vrot.lane.b32.xlu0 %v8251_v62, %s12794_s6 }
 0xa1f   :  { %v8252_v36 = vpop.trf.xlu0  ;;  %v8283_v15 = vpop.trf.xlu1 }
 0xa20   :  { %8397 = vrot.lane.b32.xlu0 %v8283_v15, %s12794_s6  ;;  %8395 = vrot.lane.b32.xlu1 %v8252_v36, %s12794_s6 }
 0xa23   :  { %v8284_v42 = vpop.trf.xlu1  ;;  %v16282_v60 = vpop.trf.xlu0 }
 0xa24   :  { %8399 = vrot.lane.b32.xlu1 %v8284_v42, %s12794_s6 }
 0xa27   :  { %v16285_v40 = vpop.trf.xlu0  ;;  %v16287_v4 = vpop.trf.xlu1 }
 0xa2b   :  { %v8315_v16 = vpop.trf.xlu0  ;;  %v16289_v37 = vpop.trf.xlu1 }
 0xa2c   :  { %8401 = vrot.lane.b32.xlu0 %v8315_v16, %s12794_s6 }
 0xa2f   :  { %v8316_v38 = vpop.trf.xlu0  ;;  %v8347_v61 = vpop.trf.xlu1 }
 0xa30   :  { %8403 = vrot.lane.b32.xlu1 %v8316_v38, %s12794_s6  ;;  %8405 = vrot.lane.b32.xlu0 %v8347_v61, %s12794_s6 }
 0xa33   :  { %v8348_v29 = vpop.trf.xlu1 }
 0xa34   :  { %8407 = vrot.lane.b32.xlu1 %v8348_v29, %s12794_s6 }
 0xa6e   :  { %v8378_v32 = vpop.permute.xlu0 %8377 }
 0xa6f   :  { %v8425_v7 = vsel %vm17768_vm3, %v16215_v25, %v8378_v32  ;;  %vm17782_vm3 = vmmov %vm17753_vm0 }
 0xa70   :  { %v8442_v12 = vsel %vm6926_vm7, %v8425_v7, 0 }
 0xa71   :  { %v16318_v28 = vand.u32 4294901760, %v8442_v12 }
 0xa72   :  { %v8382_v20 = vpop.permute.xlu0 %8381  ;;  %v8380_v59 = vpop.permute.xlu1 %8379 }
 0xa73   :  { %v16321_v52 = vsub.f32 %v8442_v12, %v16318_v28  ;;  %v8427_v2 = vsel %vm17769_vm6, %v16219_v56, %v8382_v20  ;;  %v8426_v34 = vsel %vm17770_vm9, %v16217_v27, %v8380_v59  ;;  %vm17787_vm6 = vmmov %vm17753_vm0 }
 0xa74   :  { %v8448_v50 = vsel %vm6926_vm7, %v8427_v2, 0  ;;  %v8445_v57 = vsel %vm6926_vm7, %v8426_v34, 0  ;;  %vm17788_vm9 = vmmov %vm17753_vm0 }
 0xa75   :  { %v16329_v25 = vand.u32 4294901760, %v8448_v50  ;;  %v16331_v47 = vand.u32 4294901760, %v8445_v57  ;;  %v8560_v58 = vand.u32 4294901760, %v16321_v52 }
 0xa76   :  { %v8384_v45 = vpop.permute.xlu1 %8383 }
 0xa77   :  { %v16335_v41 = vsub.f32 %v8448_v50, %v16329_v25  ;;  %v16338_v48 = vsub.f32 %v8445_v57, %v16331_v47  ;;  %v8428_v27 = vsel %vm17771_vm13, %v16221_v49, %v8384_v45  ;;  %v8561_v56 = vsub.f32 %v16321_v52, %v8560_v58  ;;  %vm17789_vm13 = vmmov %vm17753_vm0 }
 0xa78   :  { %v8451_v43 = vsel %vm6926_vm7, %v8428_v27, 0 }
 0xa79   :  { %v8570_v22 = vand.u32 4294901760, %v16338_v48  ;;  %v16347_v62 = vand.u32 4294901760, %v8451_v43  ;;  %v8562_v36 = vand.u32 4294901760, %v8561_v56  ;;  %v8580_v15 = vand.u32 4294901760, %v16335_v41 }
 0xa7b   :  { %v8571_v33 = vsub.f32 %v16338_v48, %v8570_v22  ;;  %v16354_v11 = vsub.f32 %v8451_v43, %v16347_v62  ;;  %11615 = vmatprep.mubr.f32.mxu0 %v8562_v36  ;;  %v8581_v49 = vsub.f32 %v16335_v41, %v8580_v15 }
 0xa7d   :  { %v8572_v23 = vand.u32 4294901760, %v8571_v33  ;;  %v8582_v53 = vand.u32 4294901760, %v8581_v49  ;;  %v8590_v42 = vand.u32 4294901760, %v16354_v11 }
 0xa7e   :  { %v8386_v16 = vpop.permute.xlu0 %8385 }
 0xa7f   :  { %v8429_v38 = vsel %vm17772_vm15, %v16243_v18, %v8386_v16  ;;  %11616 = vmatmul.mubr.f32.vlgmr.msra.gmra.mrb[48].mxu0 %v8572_v23  ;;  %v8591_v61 = vsub.f32 %v16354_v11, %v8590_v42  ;;  %vm17790_vm15 = vmmov %vm17753_vm0 }
 0xa80   :  { %v8454_v54 = vsel %vm6926_vm7, %v8429_v38, 0  ;;  %11618 = vmatprep.mubr.f32.mxu0 %v8582_v53  ;;  %11906 = vmatpush3.bf16.msra.mxu0 %v11903_v17 }
 0xa81   :  { %v16366_v39 = vand.u32 4294901760, %v8454_v54  ;;  %v8592_v21 = vand.u32 4294901760, %v8591_v61  ;;  %11908 = vmatprep.subr.bf16.mxu0 %v11907_v8 }
 0xa82   :  { %v8390_v0 = vpop.permute.xlu0 %8389  ;;  %v8388_v29 = vpop.permute.xlu1 %8387 }
 0xa83   :  { %v16369_v32 = vsub.f32 %v8454_v54, %v16366_v39  ;;  %v8431_v18 = vsel %vm17773_vm12, %v16250_v63, %v8390_v0  ;;  %v8430_v7 = vsel %vm17753_vm0, %v16248_v55, %v8388_v29  ;;  %11619 = vmatmul.mubr.f32.gmra.mrb[50].mxu0 %v8592_v21  ;;  %vm17791_vm12 = vmmov %vm17753_vm0 }
 0xa84   :  { %v8460_v12 = vsel %vm6926_vm7, %v8431_v18, 0  ;;  %v8457_v17 = vsel %vm6926_vm7, %v8430_v7, 0  ;;  %11910 = vmatpush3.bf16.msra.mxu0 %v11907_v8 }
 0xa85   :  { %v16377_v20 = vand.u32 4294901760, %v8460_v12  ;;  %v16379_v59 = vand.u32 4294901760, %v8457_v17  ;;  %v8600_v2 = vand.u32 4294901760, %v16369_v32  ;;  %11912 = vmatprep.subr.bf16.mxu0 %v16309_v6 }
 0xa86   :  { %v8392_v34 = vpop.permute.xlu1 %8391 }
 0xa87   :  { %v16384_v63 = vsub.f32 %v8460_v12, %v16377_v20  ;;  %v16387_v55 = vsub.f32 %v8457_v17, %v16379_v59  ;;  %v8432_v50 = vsel %vm17774_vm11, %v16253_v30, %v8392_v34  ;;  %v8601_v8 = vsub.f32 %v16369_v32, %v8600_v2  ;;  %vm17792_vm11 = vmmov %vm17753_vm0 }
 0xa88   :  { %v8463_v57 = vsel %vm6926_vm7, %v8432_v50, 0 }
 0xa89   :  { %v16395_v45 = vand.u32 4294901760, %v8463_v57  ;;  %v8602_v27 = vand.u32 4294901760, %v8601_v8  ;;  %v8610_v56 = vand.u32 4294901760, %v16387_v55  ;;  %v8620_v43 = vand.u32 4294901760, %v16384_v63 }
 0xa8b   :  { %v16400_v36 = vsub.f32 %v8463_v57, %v16395_v45  ;;  %11621 = vmatprep.mubr.f32.mxu0 %v8602_v27  ;;  %v8611_v30 = vsub.f32 %v16387_v55, %v8610_v56  ;;  %v8621_v33 = vsub.f32 %v16384_v63, %v8620_v43 }
 0xa8d   :  { %v8612_v49 = vand.u32 4294901760, %v8611_v30  ;;  %v8622_v23 = vand.u32 4294901760, %v8621_v33  ;;  %v8630_v53 = vand.u32 4294901760, %v16400_v36 }
 0xa8e   :  { %v8394_v16 = vpop.permute.xlu0 %8393 }
 0xa8f   :  { %v8433_v38 = vsel %vm17775_vm8, %v16258_v19, %v8394_v16  ;;  %11622 = vmatmul.mubr.f32.gmra.mrb[52].mxu0 %v8612_v49  ;;  %v8631_v61 = vsub.f32 %v16400_v36, %v8630_v53  ;;  %vm17793_vm8 = vmmov %vm17753_vm0 }
 0xa90   :  { %v8466_v54 = vsel %vm6926_vm7, %v8433_v38, 0  ;;  %11624 = vmatprep.mubr.f32.mxu0 %v8622_v23 }
 0xa91   :  { %v16415_v21 = vand.u32 4294901760, %v8466_v54  ;;  %v8632_v0 = vand.u32 4294901760, %v8631_v61 }
 0xa92   :  { %v8398_v29 = vpop.permute.xlu0 %8397  ;;  %v8396_v18 = vpop.permute.xlu1 %8395 }
 0xa93   :  { %v16418_v7 = vsub.f32 %v8466_v54, %v16415_v21  ;;  %v8435_v12 = vsel %vm17776_vm1, %v16263_v13, %v8398_v29  ;;  %v8434_v19 = vsel %vm17777_vm5, %v16261_v9, %v8396_v18  ;;  %11625 = vmatmul.mubr.f32.gmra.mrb[54].mxu0 %v8632_v0  ;;  %vm17794_vm1 = vmmov %vm17753_vm0 }
 0xa94   :  { %v8472_v17 = vsel %vm6926_vm7, %v8435_v12, 0  ;;  %v8469_v34 = vsel %vm6926_vm7, %v8434_v19, 0  ;;  %vm17795_vm5 = vmmov %vm17753_vm0 }
 0xa95   :  { %v16426_v50 = vand.u32 4294901760, %v8472_v17  ;;  %v16428_v8 = vand.u32 4294901760, %v8469_v34  ;;  %v8640_v57 = vand.u32 4294901760, %v16418_v7 }
 0xa96   :  { %v8400_v27 = vpop.permute.xlu1 %8399 }
 0xa97   :  { %v16432_v30 = vsub.f32 %v8472_v17, %v16426_v50  ;;  %v16435_v13 = vsub.f32 %v8469_v34, %v16428_v8  ;;  %v8436_v9 = vsel %vm17778_vm10, %v16265_v51, %v8400_v27  ;;  %v8641_v33 = vsub.f32 %v16418_v7, %v8640_v57  ;;  %vm17796_vm10 = vmmov %vm17753_vm0 }
 0xa98   :  { %v8475_v49 = vsel %vm6926_vm7, %v8436_v9, 0 }
 0xa99   :  { %v16443_v23 = vand.u32 4294901760, %v8475_v49  ;;  %v8642_v16 = vand.u32 4294901760, %v8641_v33  ;;  %v8650_v38 = vand.u32 4294901760, %v16435_v13  ;;  %v17113_v61 = vand.u32 4294901760, %v16432_v30 }
 0xa9a   :  { %v17783_v1 = vand.u32 4294901760, %v16432_v30 }
 0xa9b   :  { %v16448_v54 = vsub.f32 %v8475_v49, %v16443_v23  ;;  %11627 = vmatprep.mubr.f32.mxu0 %v8642_v16  ;;  %v8651_v51 = vsub.f32 %v16435_v13, %v8650_v38  ;;  %v8661_v0 = vsub.f32 %v16432_v30, %v17113_v61 }
 0xa9d   :  { %v8652_v29 = vand.u32 4294901760, %v8651_v51  ;;  %v8662_v18 = vand.u32 4294901760, %v8661_v0  ;;  %v17112_v12 = vand.u32 4294901760, %v16448_v54 }
 0xa9e   :  { %v8402_v19 = vpop.permute.xlu0 %8401 }
 0xa9f   :  { %v8437_v17 = vsel %vm17779_vm14, %v16282_v60, %v8402_v19  ;;  %11628 = vmatmul.mubr.f32.gmra.mrb[56].mxu0 %v8652_v29  ;;  %v8671_v34 = vsub.f32 %v16448_v54, %v17112_v12  ;;  %vm17797_vm14 = vmmov %vm17753_vm0 }
 0xaa0   :  { %v8478_v27 = vsel %vm6926_vm7, %v8437_v17, 0  ;;  %11630 = vmatprep.mubr.f32.mxu0 %v8662_v18 }
 0xaa1   :  { %v16463_v9 = vand.u32 4294901760, %v8478_v27  ;;  %v8672_v33 = vand.u32 4294901760, %v8671_v34 }
 0xaa2   :  { %v8406_v49 = vpop.permute.xlu0 %8405  ;;  %v8404_v16 = vpop.permute.xlu1 %8403 }
 0xaa3   :  { %v16466_v51 = vsub.f32 %v8478_v27, %v16463_v9  ;;  %v8439_v0 = vsel %vm17780_vm4, %v16287_v4, %v8406_v49  ;;  %v8438_v60 = vsel %vm17781_vm2, %v16285_v40, %v8404_v16  ;;  %11631 = vmatmul.mubr.f32.gmra.mrb[58].mxu0 %v8672_v33  ;;  %vm17798_vm4 = vmmov %vm17753_vm0 }
 0xaa4   :  { %v8484_v29 = vsel %vm6926_vm7, %v8439_v0, 0  ;;  %v8481_v19 = vsel %vm6926_vm7, %v8438_v60, 0  ;;  %vm17799_vm2 = vmmov %vm17753_vm0 }
 0xaa5   :  { %v16474_v18 = vand.u32 4294901760, %v8484_v29  ;;  %v16476_v17 = vand.u32 4294901760, %v8481_v19  ;;  %v17114_v34 = vand.u32 4294901760, %v16466_v51 }
 0xaa6   :  { %v8408_v12 = vpop.permute.xlu1 %8407 }
 0xaa7   :  { %v16480_v27 = vsub.f32 %v8484_v29, %v16474_v18  ;;  %v16483_v4 = vsub.f32 %v8481_v19, %v16476_v17  ;;  %v8440_v40 = vsel %vm17782_vm3, %v16289_v37, %v8408_v12  ;;  %v8681_v33 = vsub.f32 %v16466_v51, %v17114_v34  ;;  %vm17800_vm3 = vmmov %vm17753_vm0 }
 0xaa8   :  { %v8487_v49 = vsel %vm6926_vm7, %v8440_v40, 0  ;;  %vm17786_vm7 = vmmov %vm17753_vm0 }
 0xaa9   :  { %v16491_v16 = vand.u32 4294901760, %v8487_v49  ;;  %v8682_v0 = vand.u32 4294901760, %v8681_v33  ;;  %v8690_v60 = vand.u32 4294901760, %v16483_v4  ;;  %v8700_v29 = vand.u32 4294901760, %v16480_v27 }
 0xaab   :  { %v16496_v61 = vsub.f32 %v8487_v49, %v16491_v16  ;;  %11633 = vmatprep.mubr.f32.mxu0 %v8682_v0  ;;  %v8691_v37 = vsub.f32 %v16483_v4, %v8690_v60  ;;  %v8701_v12 = vsub.f32 %v16480_v27, %v8700_v29 }
 0xaad   :  { %v8692_v19 = vand.u32 4294901760, %v8691_v37  ;;  %v8702_v40 = vand.u32 4294901760, %v8701_v12  ;;  %v8710_v33 = vand.u32 4294901760, %v16496_v61 }
 0xaaf   :  { %11634 = vmatmul.mubr.f32.gmra.mrb[60].mxu0 %v8692_v19  ;;  %v8711_v34 = vsub.f32 %v16496_v61, %v8710_v33 }
 0xab0   :  { %11636 = vmatprep.mubr.f32.mxu0 %v8702_v40 }
 0xab1   :  { %v8712_v49 = vand.u32 4294901760, %v8711_v34 }
 0xab3   :  { %11637 = vmatmul.mubr.f32.gmra.mrb[62].mxu0 %v8712_v49 }
 0xab4   :  { %11647 = vmatprep.mubr.f32.mxu0 %v16318_v28 }
 0xab7   :  { %11648 = vmatmul.mubr.f32.vlgmr.msra.gmra.mrb[48].mxu0 %v16331_v47 }
 0xab8   :  { %11650 = vmatprep.mubr.f32.mxu0 %v16329_v25  ;;  %11914 = vmatpush3.bf16.msra.mxu0 %v16309_v6  ;;  %v11927_v6 = vpack.c.bf16 %v8728_v14, %v8721_v26  ;;  %v17784_v26 = vand.u32 4294901760, %v16448_v54  ;;  %v17785_v14 = vand.u32 4294901760, %v16466_v51 }
 0xab9   :  { %11916 = vmatprep.subr.bf16.mxu0 %v16313_v31 }
 0xabb   :  { %11651 = vmatmul.mubr.f32.gmra.mrb[50].mxu0 %v16347_v62 }
 0xabc   :  { %11653 = vmatprep.mubr.f32.mxu0 %v16366_v39  ;;  %11918 = vmatpush3.bf16.msra.mxu0 %v16313_v31 }
 0xabd   :  { %11920 = vmatprep.subr.bf16.mxu0 %v16238_v46 }
 0xabf   :  { %11654 = vmatmul.mubr.f32.gmra.mrb[52].mxu0 %v16379_v59 }
 0xac0   :  { %11656 = vmatprep.mubr.f32.mxu0 %v16377_v20 }
 0xac3   :  { %11657 = vmatmul.mubr.f32.gmra.mrb[54].mxu0 %v16395_v45 }
 0xac4   :  { %11659 = vmatprep.mubr.f32.mxu0 %v16415_v21 }
 0xac7   :  { %11660 = vmatmul.mubr.f32.gmra.mrb[56].mxu0 %v16428_v8 }
 0xac8   :  { %11662 = vmatprep.mubr.f32.mxu0 %v16426_v50 }
 0xacb   :  { %11663 = vmatmul.mubr.f32.gmra.mrb[58].mxu0 %v16443_v23 }
 0xacc   :  { %11665 = vmatprep.mubr.f32.mxu0 %v16463_v9 }
 0xacf   :  { %11666 = vmatmul.mubr.f32.gmra.mrb[60].mxu0 %v16476_v17 }
 0xad0   :  { %11668 = vmatprep.mubr.f32.mxu0 %v16474_v18 }
 0xad3   :  { %11669 = vmatmul.mubr.f32.gmra.mrb[62].mxu0 %v16491_v16 }
 0xad4   :  { %11679 = vmatprep.mubr.f32.mxu0 %v16321_v52 }
 0xad7   :  { %11680 = vmatmul.mubr.f32.vlgmr.msra.gmra.mrb[48].mxu0 %v16338_v48 }
 0xad8   :  { %11682 = vmatprep.mubr.f32.mxu0 %v16335_v41  ;;  %11922 = vmatpush3.bf16.msra.mxu0 %v16238_v46 }
 0xad9   :  { %11924 = vmatprep.subr.bf16.mxu0 %v16240_v10 }
 0xadb   :  { %11683 = vmatmul.mubr.f32.gmra.mrb[50].mxu0 %v16354_v11 }
 0xadc   :  { %11685 = vmatprep.mubr.f32.mxu0 %v16369_v32  ;;  %11926 = vmatpush3.bf16.msra.mxu0 %v16240_v10 }
 0xadd   :  { %11928 = vmatprep.subr.bf16.mxu0 %v11927_v6 }
 0xadf   :  { %11686 = vmatmul.mubr.f32.gmra.mrb[52].mxu0 %v16387_v55 }
 0xae0   :  { %11688 = vmatprep.mubr.f32.mxu0 %v16384_v63 }
 0xae3   :  { %11689 = vmatmul.mubr.f32.gmra.mrb[54].mxu0 %v16400_v36 }
 0xae4   :  { %11691 = vmatprep.mubr.f32.mxu0 %v16418_v7 }
 0xae7   :  { %11692 = vmatmul.mubr.f32.gmra.mrb[56].mxu0 %v16435_v13 }
 0xae8   :  { %11694 = vmatprep.mubr.f32.mxu0 %v16432_v30 }
 0xaeb   :  { %11695 = vmatmul.mubr.f32.gmra.mrb[58].mxu0 %v16448_v54 }
 0xaec   :  { %11697 = vmatprep.mubr.f32.mxu0 %v16466_v51 }
 0xaef   :  { %11698 = vmatmul.mubr.f32.gmra.mrb[60].mxu0 %v16483_v4 }
 0xaf0   :  { %11700 = vmatprep.mubr.f32.mxu0 %v16480_v27 }
 0xaf3   :  { %11701 = vmatmul.mubr.f32.gmra.mrb[62].mxu0 %v16496_v61 }
 0xaf4   :  { %11711 = vmatprep.mubr.f32.mxu0 %v8560_v58 }
 0xaf7   :  { %11712 = vmatmul.mubr.f32.vlgmr.msra.gmra.mrb[48].mxu0 %v8570_v22 }
 0xaf8   :  { %11714 = vmatprep.mubr.f32.mxu0 %v8580_v15  ;;  %11930 = vmatpush3.bf16.msra.mxu0 %v11927_v6 }
 0xaf9   :  { %11932 = vmatprep.subr.bf16.mxu0 %v11931_v44 }
 0xafb   :  { %11715 = vmatmul.mubr.f32.gmra.mrb[50].mxu0 %v8590_v42 }
 0xafc   :  { %11717 = vmatprep.mubr.f32.mxu0 %v8600_v2  ;;  %11934 = vmatpush3.bf16.msra.mxu0 %v11931_v44 }
 0xafd   :  { %11936 = vmatprep.subr.bf16.mxu0 %v16238_v46 }
 0xaff   :  { %11718 = vmatmul.mubr.f32.gmra.mrb[52].mxu0 %v8610_v56 }
 0xb00   :  { %11720 = vmatprep.mubr.f32.mxu0 %v8620_v43 }
 0xb03   :  { %11721 = vmatmul.mubr.f32.gmra.mrb[54].mxu0 %v8630_v53 }
 0xb04   :  { %11723 = vmatprep.mubr.f32.mxu0 %v8640_v57 }
 0xb07   :  { %11724 = vmatmul.mubr.f32.gmra.mrb[56].mxu0 %v8650_v38 }
 0xb08   :  { %11726 = vmatprep.mubr.f32.mxu0 %v17783_v1 }
 0xb0b   :  { %11727 = vmatmul.mubr.f32.gmra.mrb[58].mxu0 %v17784_v26 }
 0xb0c   :  { %11729 = vmatprep.mubr.f32.mxu0 %v17785_v14 }
 0xb0f   :  { %11730 = vmatmul.mubr.f32.gmra.mrb[60].mxu0 %v8690_v60 }
 0xb10   :  { %11732 = vmatprep.mubr.f32.mxu0 %v8700_v29 }
 0xb13   :  { %11733 = vmatmul.mubr.f32.gmra.mrb[62].mxu0 %v8710_v33 }
 0xb14   :  { %11743 = vmatprep.mubr.f32.mxu0 %v16318_v28 }
 0xb17   :  { %11744 = vmatmul.mubr.f32.vlgmr.msra.gmra.mrb[48].mxu0 %v16331_v47 }
 0xb18   :  { %11746 = vmatprep.mubr.f32.mxu0 %v16329_v25  ;;  %11938 = vmatpush3.bf16.msra.mxu0 %v16238_v46 }
 0xb19   :  { %11940 = vmatprep.subr.bf16.mxu0 %v16240_v10 }
 0xb1b   :  { %11747 = vmatmul.mubr.f32.gmra.mrb[50].mxu0 %v16347_v62 }
 0xb1c   :  { %11749 = vmatprep.mubr.f32.mxu0 %v16366_v39  ;;  %11942 = vmatpush3.bf16.msra.mxu0 %v16240_v10 }
 0xb1f   :  { %11750 = vmatmul.mubr.f32.gmra.mrb[52].mxu0 %v16379_v59 }
 0xb20   :  { %11752 = vmatprep.mubr.f32.mxu0 %v16377_v20 }
 0xb23   :  { %11753 = vmatmul.mubr.f32.gmra.mrb[54].mxu0 %v16395_v45 }
 0xb24   :  { %11755 = vmatprep.mubr.f32.mxu0 %v16415_v21 }
 0xb27   :  { %11756 = vmatmul.mubr.f32.gmra.mrb[56].mxu0 %v16428_v8 }
 0xb28   :  { %11758 = vmatprep.mubr.f32.mxu0 %v16426_v50 }
 0xb2b   :  { %11759 = vmatmul.mubr.f32.gmra.mrb[58].mxu0 %v16443_v23 }
 0xb2c   :  { %11761 = vmatprep.mubr.f32.mxu0 %v16463_v9 }
 0xb2f   :  { %11762 = vmatmul.mubr.f32.gmra.mrb[60].mxu0 %v16476_v17 }
 0xb30   :  { %11764 = vmatprep.mubr.f32.mxu0 %v16474_v18 }
 0xb33   :  { %11765 = vmatmul.mubr.f32.gmra.mrb[62].mxu0 %v16491_v16 }
 0xb34   :  { %11775 = vmatprep.mubr.f32.mxu0 %v16318_v28 }
 0xb37   :  { %11776 = vmatmul.mubr.f32.vlgmr.msra.gmra.mrb[48].mxu0 %v16331_v47 }
 0xb38   :  { %11778 = vmatprep.mubr.f32.mxu0 %v16329_v25 }
 0xb3b   :  { %11779 = vmatmul.mubr.f32.gmra.mrb[50].mxu0 %v16347_v62 }
 0xb3c   :  { %11781 = vmatprep.mubr.f32.mxu0 %v16366_v39 }
 0xb3f   :  { %11782 = vmatmul.mubr.f32.gmra.mrb[52].mxu0 %v16379_v59 }
 0xb40   :  { %11784 = vmatprep.mubr.f32.mxu0 %v16377_v20 }
 0xb43   :  { %11785 = vmatmul.mubr.f32.gmra.mrb[54].mxu0 %v16395_v45 }
 0xb44   :  { %11787 = vmatprep.mubr.f32.mxu0 %v16415_v21 }
 0xb47   :  { %11788 = vmatmul.mubr.f32.gmra.mrb[56].mxu0 %v16428_v8 }
 0xb48   :  { %11790 = vmatprep.mubr.f32.mxu0 %v16426_v50 }
 0xb4b   :  { %11791 = vmatmul.mubr.f32.gmra.mrb[58].mxu0 %v16443_v23 }
 0xb4c   :  { %11793 = vmatprep.mubr.f32.mxu0 %v16463_v9 }
 0xb4f   :  { %11794 = vmatmul.mubr.f32.gmra.mrb[60].mxu0 %v16476_v17 }
 0xb50   :  { %11796 = vmatprep.mubr.f32.mxu0 %v16474_v18 }
 0xb53   :  { %11797 = vmatmul.mubr.f32.gmra.mrb[62].mxu0 %v16491_v16 }
 0xc0a   :  { %v11777_v46 = vpop.f32.mrb[48].mxu0 }
 0xc0b   :  { %9620 = vst.msk [vmem:[#allocation10 + $0x8] sm:$0xff] %vm17786_vm7, %v11777_v46  ;;  %v9525_v10 = vpop.f32.mrb[49].mxu0 }
 0xc0c   :  { %9619 = vst.msk [vmem:[#allocation10] sm:$0xff] %vm17787_vm6, %v9525_v10 }
 0xc0e   :  { %v11780_v3 = vpop.f32.mrb[50].mxu0 }
 0xc0f   :  { %9622 = vst.msk [vmem:[#allocation10 + $0x18] sm:$0xff] %vm17788_vm9, %v11780_v3  ;;  %v9537_v35 = vpop.f32.mrb[51].mxu0 }
 0xc10   :  { %9621 = vst.msk [vmem:[#allocation10 + $0x10] sm:$0xff] %vm17789_vm13, %v9537_v35 }
 0xc12   :  { %v11783_v24 = vpop.f32.mrb[52].mxu0 }
 0xc13   :  { %9624 = vst.msk [vmem:[#allocation10 + $0x28] sm:$0xff] %vm17790_vm15, %v11783_v24  ;;  %v9549_v5 = vpop.f32.mrb[53].mxu0 }
 0xc14   :  { %9623 = vst.msk [vmem:[#allocation10 + $0x20] sm:$0xff] %vm17791_vm12, %v9549_v5 }
 0xc16   :  { %v11786_v31 = vpop.f32.mrb[54].mxu0 }
 0xc17   :  { %9626 = vst.msk [vmem:[#allocation10 + $0x38] sm:$0xff] %vm17753_vm0, %v11786_v31  ;;  %v9561_v28 = vpop.f32.mrb[55].mxu0 }
 0xc18   :  { %9625 = vst.msk [vmem:[#allocation10 + $0x30] sm:$0xff] %vm17792_vm11, %v9561_v28 }
 0xc1a   :  { %v11789_v52 = vpop.f32.mrb[56].mxu0 }
 0xc1b   :  { %9628 = vst.msk [vmem:[#allocation10 + $0x48] sm:$0xff] %vm17793_vm8, %v11789_v52  ;;  %v9573_v25 = vpop.f32.mrb[57].mxu0 }
 0xc1c   :  { %9627 = vst.msk [vmem:[#allocation10 + $0x40] sm:$0xff] %vm17794_vm1, %v9573_v25 }
 0xc1e   :  { %v11792_v47 = vpop.f32.mrb[58].mxu0 }
 0xc1f   :  { %9630 = vst.msk [vmem:[#allocation10 + $0x58] sm:$0xff] %vm17795_vm5, %v11792_v47  ;;  %v9585_v58 = vpop.f32.mrb[59].mxu0 }
 0xc20   :  { %9629 = vst.msk [vmem:[#allocation10 + $0x50] sm:$0xff] %vm17796_vm10, %v9585_v58 }
 0xc22   :  { %v11795_v41 = vpop.f32.mrb[60].mxu0 }
 0xc23   :  { %9632 = vst.msk [vmem:[#allocation10 + $0x68] sm:$0xff] %vm17797_vm14, %v11795_v41  ;;  %v9597_v48 = vpop.f32.mrb[61].mxu0 }
 0xc24   :  { %9631 = vst.msk [vmem:[#allocation10 + $0x60] sm:$0xff] %vm17798_vm4, %v9597_v48 }
 0xc26   :  { %v11798_v22 = vpop.f32.mrb[62].mxu0 }
 0xc27   :  { %9634 = vst.msk [vmem:[#allocation10 + $0x78] sm:$0xff] %vm17799_vm2, %v11798_v22  ;;  %v9609_v62 = vpop.f32.mrb[63].mxu0 }
 0xc28   :  { %9633 = vst.msk [vmem:[#allocation10 + $0x70] sm:$0xff] %vm17800_vm3, %v9609_v62 }
 0xc29 PF:  { %s12795_s7 = smov [#allocation10]  }
 0xc2a   :  { %s9640_s14 = sshll.u32 %s12795_s7, 4  ;;  %s9641_s14 = int_to_ptr.vmem [resolvable:$true] %s9640_s14 }
 0xc2b   :  { %s12759_s15 = scalar_lea.vmem %s9641_s14, 2048  ;;  %p12764_p13 = scmp.lt.s32.totalorder %s9641_s14, %s9641_s14 }
 0xc2c   :  { %p12760_p12 = scmp.ne.s32.totalorder %s9641_s14, %s12759_s15  ;;  %p12765_p0 = scmp.lt.s32.totalorder %s12759_s15, %s12759_s15 }
 0xc2e   :  { %p12766_p1 = por %p12765_p0, %p12764_p13 }
 0xc30   :  { %p12767_p2 = pnand %p12766_p1, %p12760_p12 }
 0xc32   :  { %12770 = shalt.err (!%p12767_p2)
}
 0xc33   :  { %s12771_s17 = scalar_lea.hbm %s16662_s8, 2048 }
 0xc34   :  { %p12772_p3 = scmp.ne.s32.totalorder %s16662_s8, %s12771_s17  ;;  %p12775_p4 = scmp.lt.u32.totalorder %s12771_s17, %s16662_s8 }
 0xc36   :  { %p12777_p5 = pnand %p12775_p4, %p12772_p3 }
 0xc38   :  { %12780 = shalt.err (!%p12777_p5)
}
 0xc39   :  { %9646 = dma.vmem_to_hbm [thread:$0]  %s9641_s14, 2048, %s16662_s8, [#allocation6], %s12789_s18, %s12789_s18, %s12790_s19  }
 0xc3a   :  { %12785 = dma.done.wait [#allocation6], 2048  }
 0xc3b   :  { %12786 = vsyncadd [#allocation6], 4294965248 }
 0xc3c   :  { %9650 = vsyncpa [#allocation5], 1 }
 0xc3d   :  { %9651 = vsyncpa [#allocation8], 1 }
 0xc3e   :  { %9652 = vsyncpa [#allocation6], 1 }

</bundles_post_ra>
